<compile_context>
chip_gen: v5e
topology: v5e:2x2
jax: 0.10.0
libtpu: 0.0.40
codegen_flags: <defaults>
</compile_context>

<pallas_src>
import functools

import jax
import jax.numpy as jnp
from jax import lax
from jax.experimental import pallas as pl
from jax.experimental.pallas import tpu as pltpu

# module hyper-parameters (small instance, consistent with the module)
EMBEDDING_SIZE = 32
HIDDEN_SIZE = 32
NUM_LAYERS = 4
VOCAB_SIZE = 64
SEQ_LEN = 8
BATCH = 4
BATCH_PAD = 8            # pad batch to one full f32 sublane tile
DROPOUT_RATE = 0.1       # TODO(synk): dropout is a no-op at inference; not implemented in-kernel.
VPAD = ((VOCAB_SIZE + 127) // 128) * 128   # logits last dim padded to a full 128-lane tile


# ---------------------------------------------------------------------------
# Single fused kernel: one-hot embedding matmul -> wavefronted 4-layer LSTM -> head.
# ---------------------------------------------------------------------------
def _neural_lm_kernel(ids_ref, e0_ref, wcomb_ref, ball_ref, h0p_ref, c0p_ref,
                      whead_ref, bhead_ref,
                      logits_ref, hn_ref, cn_ref,
                      y_scr,
                      *, seq_len, batch_p, hidden, num_layers, vocab):
    T, Bp, H, L = seq_len, batch_p, hidden, num_layers
    G = 4 * H

    # ---- Embedding fused offline with layer-0 input projection: one lane-dense
    #      one-hot matmul; gx0 stays vreg-resident and is sliced statically below.
    ids = ids_ref[...]                                             # (T*Bp, 1) int32
    vocab_iota = lax.broadcasted_iota(jnp.int32, (T * Bp, vocab), 1)
    one_hot = (ids == vocab_iota).astype(jnp.float32)              # (T*Bp, V)
    gx0 = jnp.dot(one_hot, e0_ref[...],
                  preferred_element_type=jnp.float32)              # (T*Bp, 4H)

    b_all = ball_ref[...]                                          # (1, L*4H), hoisted

    # ---- State: h packed lane-dense in the hn output ref (Bp, L*H) = one vreg;
    #      per-layer c kept as vreg values (never needs repacking).
    hn_ref[...] = h0p_ref[...]
    c = [c0p_ref[:, l * H:(l + 1) * H] for l in range(L)]

    # ---- Wavefront over diagonals w = t + l.  One (Bp, L*H) x (L*H, L*4H) MXU push
    #      per diagonal covers every active layer's recurrent AND inter-layer
    #      projection (W_comb is block-combined offline).  Fully static unroll.
    for w in range(T + L - 1):
        h_prev = hn_ref[...]                                       # (Bp, L*H) = 1 vreg
        gates_all = jnp.dot(h_prev, wcomb_ref[...],
                            preferred_element_type=jnp.float32) + b_all   # (Bp, L*4H)
        for l in range(L):
            t = w - l
            if t < 0 or t >= T:
                continue                                           # layer inactive on this diagonal
            g_l = gates_all[:, l * G:(l + 1) * G]                  # (Bp, 4H) static lane slice
            if l == 0:
                g_l = g_l + gx0[t * Bp:(t + 1) * Bp, :]            # static sublane slice (vreg)
            # Nonlinearities on the full 128-lane gates vreg (EUP), then slice.
            sg = jax.nn.sigmoid(g_l)
            tg = jnp.tanh(g_l)
            i_g = sg[:, 0 * H:1 * H]
            f_g = sg[:, 1 * H:2 * H]
            g_g = tg[:, 2 * H:3 * H]
            o_g = sg[:, 3 * H:4 * H]
            c_new = f_g * c[l] + i_g * g_g
            h_new = o_g * jnp.tanh(c_new)
            c[l] = c_new                                           # stays in vregs
            hn_ref[:, l * H:(l + 1) * H] = h_new                   # update packed h state
            if l == L - 1:
                y_scr[t * Bp:(t + 1) * Bp, :] = h_new              # top-layer output for head

    # ---- Head: the two Linears are folded offline -> single matmul, lane-dense store.
    logits_ref[...] = jnp.dot(y_scr[...], whead_ref[...],
                              preferred_element_type=jnp.float32) + bhead_ref[...]

    # ---- Final c states packed lane-dense (h is already in hn_ref).
    for l in range(L):
        cn_ref[:, l * H:(l + 1) * H] = c[l]


# ---------------------------------------------------------------------------
# One-time parameter preprocessing (outside the jitted forward).
# ---------------------------------------------------------------------------
def prepare_params(params):
    """Offline folds: embedding⊗W_ih0, block-combined wavefront weight, fused biases,
    folded + lane-padded head."""
    H, L, V, G = HIDDEN_SIZE, NUM_LAYERS, VOCAB_SIZE, 4 * HIDDEN_SIZE
    p = {}

    # Embedding fused with layer-0 input projection (exact: one-hot selects rows).
    p["e0"] = params["embedding"] @ params["w_ih_0"].T                      # (V, 4H)

    # Block-combined wavefront weight (L*H, L*4H):
    #   column block l gets  W_hh_l^T at row block l   (recurrent term)
    #                and     W_ih_l^T at row block l-1 (input from layer below), l >= 1.
    w_comb = jnp.zeros((L * H, L * G), jnp.float32)
    for l in range(L):
        w_comb = w_comb.at[l * H:(l + 1) * H, l * G:(l + 1) * G].set(
            params[f"w_hh_{l}"].T)
        if l >= 1:
            w_comb = w_comb.at[(l - 1) * H:l * H, l * G:(l + 1) * G].set(
                params[f"w_ih_{l}"].T)
    p["w_comb"] = w_comb

    p["b_all"] = jnp.concatenate(
        [params[f"b_ih_{l}"] + params[f"b_hh_{l}"] for l in range(L)]
    ).reshape(1, L * G)                                                     # (1, L*4H)

    # Head Linears folded (no nonlinearity between them); lanes padded to 128.
    w_head = params["w_fc"].T @ params["w_out"].T                           # (H, V)
    b_head = params["b_fc"] @ params["w_out"].T + params["b_out"]           # (V,)
    p["w_head"] = jnp.pad(w_head, ((0, 0), (0, VPAD - V)))                  # (H, 128)
    p["b_head"] = jnp.pad(b_head, (0, VPAD - V)).reshape(1, VPAD)           # (1, 128)
    return jax.tree_util.tree_map(lambda a: a.astype(jnp.float32), p)


@jax.jit
def neural_lm_forward(prepped, inp, previous_state):
    h_0, c_0 = previous_state                      # (L, B, H) each
    T, B = inp.shape
    Bp = BATCH_PAD
    L, H = NUM_LAYERS, HIDDEN_SIZE

    # Pad batch to a full 8-row sublane tile; padded h/c rows are zero.
    ids = jnp.pad(inp.astype(jnp.int32), ((0, 0), (0, Bp - B))).reshape(T * Bp, 1)
    h0p = jnp.pad(h_0, ((0, 0), (0, Bp - B), (0, 0)))            # (L, Bp, H)
    c0p = jnp.pad(c_0, ((0, 0), (0, Bp - B), (0, 0)))
    h0_packed = jnp.transpose(h0p, (1, 0, 2)).reshape(Bp, L * H)  # (Bp, L*H) lane-dense
    c0_packed = jnp.transpose(c0p, (1, 0, 2)).reshape(Bp, L * H)

    kernel = functools.partial(_neural_lm_kernel, seq_len=T, batch_p=Bp,
                               hidden=H, num_layers=L, vocab=VOCAB_SIZE)
    logits_pad, hn_packed, cn_packed = pl.pallas_call(
        kernel,
        out_shape=(jax.ShapeDtypeStruct((T * Bp, VPAD), jnp.float32),
                   jax.ShapeDtypeStruct((Bp, L * H), jnp.float32),
                   jax.ShapeDtypeStruct((Bp, L * H), jnp.float32)),
        scratch_shapes=[pltpu.VMEM((T * Bp, H), jnp.float32)],    # top-layer outputs
    )(ids, prepped["e0"], prepped["w_comb"], prepped["b_all"],
      h0_packed, c0_packed, prepped["w_head"], prepped["b_head"])

    logits = logits_pad.reshape(T, Bp, VPAD)[:, :B, :VOCAB_SIZE]
    h_n = hn_packed.reshape(Bp, L, H).transpose(1, 0, 2)[:, :B, :]
    c_n = cn_packed.reshape(Bp, L, H).transpose(1, 0, 2)[:, :B, :]
    return logits, (h_n, c_n)


# ---------------------------------------------------------------------------
# Pure-JAX reference (sanity check of the fused kernel).
# ---------------------------------------------------------------------------
def reference_forward(params, inp, previous_state):
    h_0, c_0 = previous_state
    x = params["embedding"][inp]
    h_ns, c_ns = [], []
    for l in range(NUM_LAYERS):
        w_ih, w_hh = params[f"w_ih_{l}"], params[f"w_hh_{l}"]
        b = params[f"b_ih_{l}"] + params[f"b_hh_{l}"]
        H = HIDDEN_SIZE

        def step(carry, x_t):
            h, c = carry
            gates = x_t @ w_ih.T + h @ w_hh.T + b
            i = jax.nn.sigmoid(gates[:, 0 * H:1 * H])
            f = jax.nn.sigmoid(gates[:, 1 * H:2 * H])
            g = jnp.tanh(gates[:, 2 * H:3 * H])
            o = jax.nn.sigmoid(gates[:, 3 * H:4 * H])
            c_new = f * c + i * g
            h_new = o * jnp.tanh(c_new)
            return (h_new, c_new), h_new

        (h_n, c_n), ys = jax.lax.scan(step, (h_0[l], c_0[l]), x)
        x = ys
        h_ns.append(h_n)
        c_ns.append(c_n)
    fc = x @ params["w_fc"].T + params["b_fc"]
    logits = fc @ params["w_out"].T + params["b_out"]
    return logits, (jnp.stack(h_ns), jnp.stack(c_ns))


# ---------------------------------------------------------------------------
# Deterministic parameter init (shapes match the PyTorch module).
# ---------------------------------------------------------------------------
def init_params(key):
    params = {}
    keys = jax.random.split(key, 4 + 4 * NUM_LAYERS + 8)
    ki = iter(range(len(keys)))
    scale = 0.1
    params["embedding"] = scale * jax.random.normal(
        keys[next(ki)], (VOCAB_SIZE, EMBEDDING_SIZE), jnp.float32)
    for l in range(NUM_LAYERS):
        in_dim = EMBEDDING_SIZE if l == 0 else HIDDEN_SIZE
        params[f"w_ih_{l}"] = scale * jax.random.normal(
            keys[next(ki)], (4 * HIDDEN_SIZE, in_dim), jnp.float32)
        params[f"w_hh_{l}"] = scale * jax.random.normal(
            keys[next(ki)], (4 * HIDDEN_SIZE, HIDDEN_SIZE), jnp.float32)
        params[f"b_ih_{l}"] = scale * jax.random.normal(
            keys[next(ki)], (4 * HIDDEN_SIZE,), jnp.float32)
        params[f"b_hh_{l}"] = scale * jax.random.normal(
            keys[next(ki)], (4 * HIDDEN_SIZE,), jnp.float32)
    params["w_fc"] = scale * jax.random.normal(
        keys[next(ki)], (HIDDEN_SIZE, HIDDEN_SIZE), jnp.float32)
    params["b_fc"] = scale * jax.random.normal(
        keys[next(ki)], (HIDDEN_SIZE,), jnp.float32)
    params["w_out"] = scale * jax.random.normal(
        keys[next(ki)], (VOCAB_SIZE, HIDDEN_SIZE), jnp.float32)
    params["b_out"] = scale * jax.random.normal(
        keys[next(ki)], (VOCAB_SIZE,), jnp.float32)
    return params


if __name__ == "__main__":
    key = jax.random.PRNGKey(0)
    pkey, ikey = jax.random.split(key)
    params = init_params(pkey)
    prepped = prepare_params(params)   # one-time: folds / block-combine / lane padding

    inp = jax.random.randint(ikey, (SEQ_LEN, BATCH), 0, VOCAB_SIZE, jnp.int32)
    h_0 = jnp.zeros((NUM_LAYERS, BATCH, HIDDEN_SIZE), jnp.float32)
    c_0 = jnp.zeros((NUM_LAYERS, BATCH, HIDDEN_SIZE), jnp.float32)

    logits, (h_n, c_n) = neural_lm_forward(prepped, inp, (h_0, c_0))
    jax.block_until_ready((logits, h_n, c_n))

    ref_logits, (ref_h, ref_c) = jax.jit(reference_forward)(params, inp, (h_0, c_0))
    jax.block_until_ready((ref_logits, ref_h, ref_c))

    assert logits.shape == (SEQ_LEN, BATCH, VOCAB_SIZE)
    assert h_n.shape == (NUM_LAYERS, BATCH, HIDDEN_SIZE)
    assert c_n.shape == (NUM_LAYERS, BATCH, HIDDEN_SIZE)
    assert jnp.allclose(logits, ref_logits, atol=5e-2, rtol=5e-2)
    assert jnp.allclose(h_n, ref_h, atol=5e-2, rtol=5e-2)
    assert jnp.allclose(c_n, ref_c, atol=5e-2, rtol=5e-2)

    print("KERNEL_OK")
</pallas_src>

<mosaic_0001>
module attributes {stable_mosaic.version = 11 : i64} {
  func.func @_neural_lm_kernel(%arg0: memref<64x1xi32, #tpu.memory_space<vmem>>, %arg1: memref<64x128xf32, #tpu.memory_space<vmem>>, %arg2: memref<128x512xf32, #tpu.memory_space<vmem>>, %arg3: memref<1x512xf32, #tpu.memory_space<vmem>>, %arg4: memref<8x128xf32, #tpu.memory_space<vmem>>, %arg5: memref<8x128xf32, #tpu.memory_space<vmem>>, %arg6: memref<32x128xf32, #tpu.memory_space<vmem>>, %arg7: memref<1x128xf32, #tpu.memory_space<vmem>>, %arg8: memref<64x128xf32, #tpu.memory_space<vmem>>, %arg9: memref<8x128xf32, #tpu.memory_space<vmem>>, %arg10: memref<8x128xf32, #tpu.memory_space<vmem>>, %arg11: memref<64x32xf32, #tpu.memory_space<vmem>>) attributes {dimension_semantics = [], scalar_prefetch = 0 : i64, scratch_operands = 1 : i64, tpu.core_type = #tpu.core_type<tc>} {
    %c0 = arith.constant 0 : index
    %c0_0 = arith.constant 0 : index
    %0 = vector.load %arg0[%c0, %c0_0] : memref<64x1xi32, #tpu.memory_space<vmem>>, vector<64x1xi32>
    %1 = tpu.iota {dimensions = array<i32: 1>} : vector<64x64xi32>
    %2 = vector.broadcast %0 : vector<64x1xi32> to vector<64x64xi32>
    %3 = arith.cmpi eq, %2, %1 : vector<64x64xi32>
    %4 = arith.extui %3 : vector<64x64xi1> to vector<64x64xi32>
    %5 = arith.sitofp %4 : vector<64x64xi32> to vector<64x64xf32>
    %c0_1 = arith.constant 0 : index
    %c0_2 = arith.constant 0 : index
    %6 = vector.load %arg1[%c0_1, %c0_2] : memref<64x128xf32, #tpu.memory_space<vmem>>, vector<64x128xf32>
    %cst = arith.constant dense<0.000000e+00> : vector<64x128xf32>
    %7 = tpu.matmul %5, %6, %cst {dimension_numbers = #tpu.dot_dimension_numbers<[1], [0], [0], [1], [0, 0, 1, 1], [], []>} : vector<64x64xf32>, vector<64x128xf32>, vector<64x128xf32> -> vector<64x128xf32>
    %c0_3 = arith.constant 0 : index
    %c0_4 = arith.constant 0 : index
    %8 = vector.load %arg3[%c0_3, %c0_4] : memref<1x512xf32, #tpu.memory_space<vmem>>, vector<1x512xf32>
    %c0_5 = arith.constant 0 : index
    %c0_6 = arith.constant 0 : index
    %9 = vector.load %arg4[%c0_5, %c0_6] : memref<8x128xf32, #tpu.memory_space<vmem>>, vector<8x128xf32>
    %c0_7 = arith.constant 0 : index
    %c0_8 = arith.constant 0 : index
    %10 = vector.load %arg9[%c0_7, %c0_8] : memref<8x128xf32, #tpu.memory_space<vmem>>, vector<8x128xf32>
    tpu.vector_store %arg9[%c0_7, %c0_8], %9 {strides = array<i32>} : memref<8x128xf32, #tpu.memory_space<vmem>>, vector<8x128xf32>,
    %c0_9 = arith.constant 0 : index
    %c0_10 = arith.constant 0 : index
    %11 = vector.load %arg5[%c0_9, %c0_10] : memref<8x128xf32, #tpu.memory_space<vmem>>, vector<8x32xf32>
    %c0_11 = arith.constant 0 : index
    %c32 = arith.constant 32 : index
    %12 = vector.load %arg5[%c0_11, %c32] : memref<8x128xf32, #tpu.memory_space<vmem>>, vector<8x32xf32>
    %c0_12 = arith.constant 0 : index
    %c64 = arith.constant 64 : index
    %13 = vector.load %arg5[%c0_12, %c64] : memref<8x128xf32, #tpu.memory_space<vmem>>, vector<8x32xf32>
    %c0_13 = arith.constant 0 : index
    %c96 = arith.constant 96 : index
    %14 = vector.load %arg5[%c0_13, %c96] : memref<8x128xf32, #tpu.memory_space<vmem>>, vector<8x32xf32>
    %c0_14 = arith.constant 0 : index
    %c0_15 = arith.constant 0 : index
    %15 = vector.load %arg9[%c0_14, %c0_15] : memref<8x128xf32, #tpu.memory_space<vmem>>, vector<8x128xf32>
    %c0_16 = arith.constant 0 : index
    %c0_17 = arith.constant 0 : index
    %16 = vector.load %arg2[%c0_16, %c0_17] : memref<128x512xf32, #tpu.memory_space<vmem>>, vector<128x512xf32>
    %cst_18 = arith.constant dense<0.000000e+00> : vector<8x512xf32>
    %17 = tpu.matmul %15, %16, %cst_18 {dimension_numbers = #tpu.dot_dimension_numbers<[1], [0], [0], [1], [0, 0, 1, 1], [], []>} : vector<8x128xf32>, vector<128x512xf32>, vector<8x512xf32> -> vector<8x512xf32>
    %18 = vector.broadcast %8 : vector<1x512xf32> to vector<8x512xf32>
    %19 = arith.addf %17, %18 : vector<8x512xf32>
    %20 = vector.extract_strided_slice %19 {offsets = [0, 0], sizes = [8, 128], strides = [1, 1]} : vector<8x512xf32> to vector<8x128xf32>
    %21 = vector.extract_strided_slice %7 {offsets = [0, 0], sizes = [8, 128], strides = [1, 1]} : vector<64x128xf32> to vector<8x128xf32>
    %22 = arith.addf %20, %21 : vector<8x128xf32>
    %23 = arith.negf %22 : vector<8x128xf32>
    %24 = math.exp %23 : vector<8x128xf32>
    %cst_19 = arith.constant 1.000000e+00 : f32
    %25 = vector.broadcast %cst_19 : f32 to vector<8x128xf32>
    %26 = arith.addf %25, %24 : vector<8x128xf32>
    %27 = arith.divf %25, %26 : vector<8x128xf32>
    %28 = math.tanh %22 : vector<8x128xf32>
    %29 = vector.extract_strided_slice %27 {offsets = [0, 0], sizes = [8, 32], strides = [1, 1]} : vector<8x128xf32> to vector<8x32xf32>
    %30 = vector.extract_strided_slice %27 {offsets = [0, 32], sizes = [8, 32], strides = [1, 1]} : vector<8x128xf32> to vector<8x32xf32>
    %31 = vector.extract_strided_slice %28 {offsets = [0, 64], sizes = [8, 32], strides = [1, 1]} : vector<8x128xf32> to vector<8x32xf32>
    %32 = vector.extract_strided_slice %27 {offsets = [0, 96], sizes = [8, 32], strides = [1, 1]} : vector<8x128xf32> to vector<8x32xf32>
    %33 = arith.mulf %30, %11 : vector<8x32xf32>
    %34 = arith.mulf %29, %31 : vector<8x32xf32>
    %35 = arith.addf %33, %34 : vector<8x32xf32>
    %36 = math.tanh %35 : vector<8x32xf32>
    %37 = arith.mulf %32, %36 : vector<8x32xf32>
    %c0_20 = arith.constant 0 : index
    %c0_21 = arith.constant 0 : index
    %38 = vector.load %arg9[%c0_20, %c0_21] : memref<8x128xf32, #tpu.memory_space<vmem>>, vector<8x32xf32>
    tpu.vector_store %arg9[%c0_20, %c0_21], %37 {strides = array<i32>} : memref<8x128xf32, #tpu.memory_space<vmem>>, vector<8x32xf32>,
    %c0_22 = arith.constant 0 : index
    %c0_23 = arith.constant 0 : index
    %39 = vector.load %arg9[%c0_22, %c0_23] : memref<8x128xf32, #tpu.memory_space<vmem>>, vector<8x128xf32>
    %c0_24 = arith.constant 0 : index
    %c0_25 = arith.constant 0 : index
    %40 = vector.load %arg2[%c0_24, %c0_25] : memref<128x512xf32, #tpu.memory_space<vmem>>, vector<128x512xf32>
    %cst_26 = arith.constant dense<0.000000e+00> : vector<8x512xf32>
    %41 = tpu.matmul %39, %40, %cst_26 {dimension_numbers = #tpu.dot_dimension_numbers<[1], [0], [0], [1], [0, 0, 1, 1], [], []>} : vector<8x128xf32>, vector<128x512xf32>, vector<8x512xf32> -> vector<8x512xf32>
    %42 = vector.broadcast %8 : vector<1x512xf32> to vector<8x512xf32>
    %43 = arith.addf %41, %42 : vector<8x512xf32>
    %44 = vector.extract_strided_slice %43 {offsets = [0, 0], sizes = [8, 128], strides = [1, 1]} : vector<8x512xf32> to vector<8x128xf32>
    %45 = vector.extract_strided_slice %7 {offsets = [8, 0], sizes = [8, 128], strides = [1, 1]} : vector<64x128xf32> to vector<8x128xf32>
    %46 = arith.addf %44, %45 : vector<8x128xf32>
    %47 = arith.negf %46 : vector<8x128xf32>
    %48 = math.exp %47 : vector<8x128xf32>
    %cst_27 = arith.constant 1.000000e+00 : f32
    %49 = vector.broadcast %cst_27 : f32 to vector<8x128xf32>
    %50 = arith.addf %49, %48 : vector<8x128xf32>
    %51 = arith.divf %49, %50 : vector<8x128xf32>
    %52 = math.tanh %46 : vector<8x128xf32>
    %53 = vector.extract_strided_slice %51 {offsets = [0, 0], sizes = [8, 32], strides = [1, 1]} : vector<8x128xf32> to vector<8x32xf32>
    %54 = vector.extract_strided_slice %51 {offsets = [0, 32], sizes = [8, 32], strides = [1, 1]} : vector<8x128xf32> to vector<8x32xf32>
    %55 = vector.extract_strided_slice %52 {offsets = [0, 64], sizes = [8, 32], strides = [1, 1]} : vector<8x128xf32> to vector<8x32xf32>
    %56 = vector.extract_strided_slice %51 {offsets = [0, 96], sizes = [8, 32], strides = [1, 1]} : vector<8x128xf32> to vector<8x32xf32>
    %57 = arith.mulf %54, %35 : vector<8x32xf32>
    %58 = arith.mulf %53, %55 : vector<8x32xf32>
    %59 = arith.addf %57, %58 : vector<8x32xf32>
    %60 = math.tanh %59 : vector<8x32xf32>
    %61 = arith.mulf %56, %60 : vector<8x32xf32>
    %c0_28 = arith.constant 0 : index
    %c0_29 = arith.constant 0 : index
    %62 = vector.load %arg9[%c0_28, %c0_29] : memref<8x128xf32, #tpu.memory_space<vmem>>, vector<8x32xf32>
    tpu.vector_store %arg9[%c0_28, %c0_29], %61 {strides = array<i32>} : memref<8x128xf32, #tpu.memory_space<vmem>>, vector<8x32xf32>,
    %63 = vector.extract_strided_slice %43 {offsets = [0, 128], sizes = [8, 128], strides = [1, 1]} : vector<8x512xf32> to vector<8x128xf32>
    %64 = arith.negf %63 : vector<8x128xf32>
    %65 = math.exp %64 : vector<8x128xf32>
    %cst_30 = arith.constant 1.000000e+00 : f32
    %66 = vector.broadcast %cst_30 : f32 to vector<8x128xf32>
    %67 = arith.addf %66, %65 : vector<8x128xf32>
    %68 = arith.divf %66, %67 : vector<8x128xf32>
    %69 = math.tanh %63 : vector<8x128xf32>
    %70 = vector.extract_strided_slice %68 {offsets = [0, 0], sizes = [8, 32], strides = [1, 1]} : vector<8x128xf32> to vector<8x32xf32>
    %71 = vector.extract_strided_slice %68 {offsets = [0, 32], sizes = [8, 32], strides = [1, 1]} : vector<8x128xf32> to vector<8x32xf32>
    %72 = vector.extract_strided_slice %69 {offsets = [0, 64], sizes = [8, 32], strides = [1, 1]} : vector<8x128xf32> to vector<8x32xf32>
    %73 = vector.extract_strided_slice %68 {offsets = [0, 96], sizes = [8, 32], strides = [1, 1]} : vector<8x128xf32> to vector<8x32xf32>
    %74 = arith.mulf %71, %12 : vector<8x32xf32>
    %75 = arith.mulf %70, %72 : vector<8x32xf32>
    %76 = arith.addf %74, %75 : vector<8x32xf32>
    %77 = math.tanh %76 : vector<8x32xf32>
    %78 = arith.mulf %73, %77 : vector<8x32xf32>
    %c0_31 = arith.constant 0 : index
    %c32_32 = arith.constant 32 : index
    %79 = vector.load %arg9[%c0_31, %c32_32] : memref<8x128xf32, #tpu.memory_space<vmem>>, vector<8x32xf32>
    tpu.vector_store %arg9[%c0_31, %c32_32], %78 {strides = array<i32>} : memref<8x128xf32, #tpu.memory_space<vmem>>, vector<8x32xf32>,
    %c0_33 = arith.constant 0 : index
    %c0_34 = arith.constant 0 : index
    %80 = vector.load %arg9[%c0_33, %c0_34] : memref<8x128xf32, #tpu.memory_space<vmem>>, vector<8x128xf32>
    %c0_35 = arith.constant 0 : index
    %c0_36 = arith.constant 0 : index
    %81 = vector.load %arg2[%c0_35, %c0_36] : memref<128x512xf32, #tpu.memory_space<vmem>>, vector<128x512xf32>
    %cst_37 = arith.constant dense<0.000000e+00> : vector<8x512xf32>
    %82 = tpu.matmul %80, %81, %cst_37 {dimension_numbers = #tpu.dot_dimension_numbers<[1], [0], [0], [1], [0, 0, 1, 1], [], []>} : vector<8x128xf32>, vector<128x512xf32>, vector<8x512xf32> -> vector<8x512xf32>
    %83 = vector.broadcast %8 : vector<1x512xf32> to vector<8x512xf32>
    %84 = arith.addf %82, %83 : vector<8x512xf32>
    %85 = vector.extract_strided_slice %84 {offsets = [0, 0], sizes = [8, 128], strides = [1, 1]} : vector<8x512xf32> to vector<8x128xf32>
    %86 = vector.extract_strided_slice %7 {offsets = [16, 0], sizes = [8, 128], strides = [1, 1]} : vector<64x128xf32> to vector<8x128xf32>
    %87 = arith.addf %85, %86 : vector<8x128xf32>
    %88 = arith.negf %87 : vector<8x128xf32>
    %89 = math.exp %88 : vector<8x128xf32>
    %cst_38 = arith.constant 1.000000e+00 : f32
    %90 = vector.broadcast %cst_38 : f32 to vector<8x128xf32>
    %91 = arith.addf %90, %89 : vector<8x128xf32>
    %92 = arith.divf %90, %91 : vector<8x128xf32>
    %93 = math.tanh %87 : vector<8x128xf32>
    %94 = vector.extract_strided_slice %92 {offsets = [0, 0], sizes = [8, 32], strides = [1, 1]} : vector<8x128xf32> to vector<8x32xf32>
    %95 = vector.extract_strided_slice %92 {offsets = [0, 32], sizes = [8, 32], strides = [1, 1]} : vector<8x128xf32> to vector<8x32xf32>
    %96 = vector.extract_strided_slice %93 {offsets = [0, 64], sizes = [8, 32], strides = [1, 1]} : vector<8x128xf32> to vector<8x32xf32>
    %97 = vector.extract_strided_slice %92 {offsets = [0, 96], sizes = [8, 32], strides = [1, 1]} : vector<8x128xf32> to vector<8x32xf32>
    %98 = arith.mulf %95, %59 : vector<8x32xf32>
    %99 = arith.mulf %94, %96 : vector<8x32xf32>
    %100 = arith.addf %98, %99 : vector<8x32xf32>
    %101 = math.tanh %100 : vector<8x32xf32>
    %102 = arith.mulf %97, %101 : vector<8x32xf32>
    %c0_39 = arith.constant 0 : index
    %c0_40 = arith.constant 0 : index
    %103 = vector.load %arg9[%c0_39, %c0_40] : memref<8x128xf32, #tpu.memory_space<vmem>>, vector<8x32xf32>
    tpu.vector_store %arg9[%c0_39, %c0_40], %102 {strides = array<i32>} : memref<8x128xf32, #tpu.memory_space<vmem>>, vector<8x32xf32>,
    %104 = vector.extract_strided_slice %84 {offsets = [0, 128], sizes = [8, 128], strides = [1, 1]} : vector<8x512xf32> to vector<8x128xf32>
    %105 = arith.negf %104 : vector<8x128xf32>
    %106 = math.exp %105 : vector<8x128xf32>
    %cst_41 = arith.constant 1.000000e+00 : f32
    %107 = vector.broadcast %cst_41 : f32 to vector<8x128xf32>
    %108 = arith.addf %107, %106 : vector<8x128xf32>
    %109 = arith.divf %107, %108 : vector<8x128xf32>
    %110 = math.tanh %104 : vector<8x128xf32>
    %111 = vector.extract_strided_slice %109 {offsets = [0, 0], sizes = [8, 32], strides = [1, 1]} : vector<8x128xf32> to vector<8x32xf32>
    %112 = vector.extract_strided_slice %109 {offsets = [0, 32], sizes = [8, 32], strides = [1, 1]} : vector<8x128xf32> to vector<8x32xf32>
    %113 = vector.extract_strided_slice %110 {offsets = [0, 64], sizes = [8, 32], strides = [1, 1]} : vector<8x128xf32> to vector<8x32xf32>
    %114 = vector.extract_strided_slice %109 {offsets = [0, 96], sizes = [8, 32], strides = [1, 1]} : vector<8x128xf32> to vector<8x32xf32>
    %115 = arith.mulf %112, %76 : vector<8x32xf32>
    %116 = arith.mulf %111, %113 : vector<8x32xf32>
    %117 = arith.addf %115, %116 : vector<8x32xf32>
    %118 = math.tanh %117 : vector<8x32xf32>
    %119 = arith.mulf %114, %118 : vector<8x32xf32>
    %c0_42 = arith.constant 0 : index
    %c32_43 = arith.constant 32 : index
    %120 = vector.load %arg9[%c0_42, %c32_43] : memref<8x128xf32, #tpu.memory_space<vmem>>, vector<8x32xf32>
    tpu.vector_store %arg9[%c0_42, %c32_43], %119 {strides = array<i32>} : memref<8x128xf32, #tpu.memory_space<vmem>>, vector<8x32xf32>,
    %121 = vector.extract_strided_slice %84 {offsets = [0, 256], sizes = [8, 128], strides = [1, 1]} : vector<8x512xf32> to vector<8x128xf32>
    %122 = arith.negf %121 : vector<8x128xf32>
    %123 = math.exp %122 : vector<8x128xf32>
    %cst_44 = arith.constant 1.000000e+00 : f32
    %124 = vector.broadcast %cst_44 : f32 to vector<8x128xf32>
    %125 = arith.addf %124, %123 : vector<8x128xf32>
    %126 = arith.divf %124, %125 : vector<8x128xf32>
    %127 = math.tanh %121 : vector<8x128xf32>
    %128 = vector.extract_strided_slice %126 {offsets = [0, 0], sizes = [8, 32], strides = [1, 1]} : vector<8x128xf32> to vector<8x32xf32>
    %129 = vector.extract_strided_slice %126 {offsets = [0, 32], sizes = [8, 32], strides = [1, 1]} : vector<8x128xf32> to vector<8x32xf32>
    %130 = vector.extract_strided_slice %127 {offsets = [0, 64], sizes = [8, 32], strides = [1, 1]} : vector<8x128xf32> to vector<8x32xf32>
    %131 = vector.extract_strided_slice %126 {offsets = [0, 96], sizes = [8, 32], strides = [1, 1]} : vector<8x128xf32> to vector<8x32xf32>
    %132 = arith.mulf %129, %13 : vector<8x32xf32>
    %133 = arith.mulf %128, %130 : vector<8x32xf32>
    %134 = arith.addf %132, %133 : vector<8x32xf32>
    %135 = math.tanh %134 : vector<8x32xf32>
    %136 = arith.mulf %131, %135 : vector<8x32xf32>
    %c0_45 = arith.constant 0 : index
    %c64_46 = arith.constant 64 : index
    %137 = vector.load %arg9[%c0_45, %c64_46] : memref<8x128xf32, #tpu.memory_space<vmem>>, vector<8x32xf32>
    tpu.vector_store %arg9[%c0_45, %c64_46], %136 {strides = array<i32>} : memref<8x128xf32, #tpu.memory_space<vmem>>, vector<8x32xf32>,
    %c0_47 = arith.constant 0 : index
    %c0_48 = arith.constant 0 : index
    %138 = vector.load %arg9[%c0_47, %c0_48] : memref<8x128xf32, #tpu.memory_space<vmem>>, vector<8x128xf32>
    %c0_49 = arith.constant 0 : index
    %c0_50 = arith.constant 0 : index
    %139 = vector.load %arg2[%c0_49, %c0_50] : memref<128x512xf32, #tpu.memory_space<vmem>>, vector<128x512xf32>
    %cst_51 = arith.constant dense<0.000000e+00> : vector<8x512xf32>
    %140 = tpu.matmul %138, %139, %cst_51 {dimension_numbers = #tpu.dot_dimension_numbers<[1], [0], [0], [1], [0, 0, 1, 1], [], []>} : vector<8x128xf32>, vector<128x512xf32>, vector<8x512xf32> -> vector<8x512xf32>
    %141 = vector.broadcast %8 : vector<1x512xf32> to vector<8x512xf32>
    %142 = arith.addf %140, %141 : vector<8x512xf32>
    %143 = vector.extract_strided_slice %142 {offsets = [0, 0], sizes = [8, 128], strides = [1, 1]} : vector<8x512xf32> to vector<8x128xf32>
    %144 = vector.extract_strided_slice %7 {offsets = [24, 0], sizes = [8, 128], strides = [1, 1]} : vector<64x128xf32> to vector<8x128xf32>
    %145 = arith.addf %143, %144 : vector<8x128xf32>
    %146 = arith.negf %145 : vector<8x128xf32>
    %147 = math.exp %146 : vector<8x128xf32>
    %cst_52 = arith.constant 1.000000e+00 : f32
    %148 = vector.broadcast %cst_52 : f32 to vector<8x128xf32>
    %149 = arith.addf %148, %147 : vector<8x128xf32>
    %150 = arith.divf %148, %149 : vector<8x128xf32>
    %151 = math.tanh %145 : vector<8x128xf32>
    %152 = vector.extract_strided_slice %150 {offsets = [0, 0], sizes = [8, 32], strides = [1, 1]} : vector<8x128xf32> to vector<8x32xf32>
    %153 = vector.extract_strided_slice %150 {offsets = [0, 32], sizes = [8, 32], strides = [1, 1]} : vector<8x128xf32> to vector<8x32xf32>
    %154 = vector.extract_strided_slice %151 {offsets = [0, 64], sizes = [8, 32], strides = [1, 1]} : vector<8x128xf32> to vector<8x32xf32>
    %155 = vector.extract_strided_slice %150 {offsets = [0, 96], sizes = [8, 32], strides = [1, 1]} : vector<8x128xf32> to vector<8x32xf32>
    %156 = arith.mulf %153, %100 : vector<8x32xf32>
    %157 = arith.mulf %152, %154 : vector<8x32xf32>
    %158 = arith.addf %156, %157 : vector<8x32xf32>
    %159 = math.tanh %158 : vector<8x32xf32>
    %160 = arith.mulf %155, %159 : vector<8x32xf32>
    %c0_53 = arith.constant 0 : index
    %c0_54 = arith.constant 0 : index
    %161 = vector.load %arg9[%c0_53, %c0_54] : memref<8x128xf32, #tpu.memory_space<vmem>>, vector<8x32xf32>
    tpu.vector_store %arg9[%c0_53, %c0_54], %160 {strides = array<i32>} : memref<8x128xf32, #tpu.memory_space<vmem>>, vector<8x32xf32>,
    %162 = vector.extract_strided_slice %142 {offsets = [0, 128], sizes = [8, 128], strides = [1, 1]} : vector<8x512xf32> to vector<8x128xf32>
    %163 = arith.negf %162 : vector<8x128xf32>
    %164 = math.exp %163 : vector<8x128xf32>
    %cst_55 = arith.constant 1.000000e+00 : f32
    %165 = vector.broadcast %cst_55 : f32 to vector<8x128xf32>
    %166 = arith.addf %165, %164 : vector<8x128xf32>
    %167 = arith.divf %165, %166 : vector<8x128xf32>
    %168 = math.tanh %162 : vector<8x128xf32>
    %169 = vector.extract_strided_slice %167 {offsets = [0, 0], sizes = [8, 32], strides = [1, 1]} : vector<8x128xf32> to vector<8x32xf32>
    %170 = vector.extract_strided_slice %167 {offsets = [0, 32], sizes = [8, 32], strides = [1, 1]} : vector<8x128xf32> to vector<8x32xf32>
    %171 = vector.extract_strided_slice %168 {offsets = [0, 64], sizes = [8, 32], strides = [1, 1]} : vector<8x128xf32> to vector<8x32xf32>
    %172 = vector.extract_strided_slice %167 {offsets = [0, 96], sizes = [8, 32], strides = [1, 1]} : vector<8x128xf32> to vector<8x32xf32>
    %173 = arith.mulf %170, %117 : vector<8x32xf32>
    %174 = arith.mulf %169, %171 : vector<8x32xf32>
    %175 = arith.addf %173, %174 : vector<8x32xf32>
    %176 = math.tanh %175 : vector<8x32xf32>
    %177 = arith.mulf %172, %176 : vector<8x32xf32>
    %c0_56 = arith.constant 0 : index
    %c32_57 = arith.constant 32 : index
    %178 = vector.load %arg9[%c0_56, %c32_57] : memref<8x128xf32, #tpu.memory_space<vmem>>, vector<8x32xf32>
    tpu.vector_store %arg9[%c0_56, %c32_57], %177 {strides = array<i32>} : memref<8x128xf32, #tpu.memory_space<vmem>>, vector<8x32xf32>,
    %179 = vector.extract_strided_slice %142 {offsets = [0, 256], sizes = [8, 128], strides = [1, 1]} : vector<8x512xf32> to vector<8x128xf32>
    %180 = arith.negf %179 : vector<8x128xf32>
    %181 = math.exp %180 : vector<8x128xf32>
    %cst_58 = arith.constant 1.000000e+00 : f32
    %182 = vector.broadcast %cst_58 : f32 to vector<8x128xf32>
    %183 = arith.addf %182, %181 : vector<8x128xf32>
    %184 = arith.divf %182, %183 : vector<8x128xf32>
    %185 = math.tanh %179 : vector<8x128xf32>
    %186 = vector.extract_strided_slice %184 {offsets = [0, 0], sizes = [8, 32], strides = [1, 1]} : vector<8x128xf32> to vector<8x32xf32>
    %187 = vector.extract_strided_slice %184 {offsets = [0, 32], sizes = [8, 32], strides = [1, 1]} : vector<8x128xf32> to vector<8x32xf32>
    %188 = vector.extract_strided_slice %185 {offsets = [0, 64], sizes = [8, 32], strides = [1, 1]} : vector<8x128xf32> to vector<8x32xf32>
    %189 = vector.extract_strided_slice %184 {offsets = [0, 96], sizes = [8, 32], strides = [1, 1]} : vector<8x128xf32> to vector<8x32xf32>
    %190 = arith.mulf %187, %134 : vector<8x32xf32>
    %191 = arith.mulf %186, %188 : vector<8x32xf32>
    %192 = arith.addf %190, %191 : vector<8x32xf32>
    %193 = math.tanh %192 : vector<8x32xf32>
    %194 = arith.mulf %189, %193 : vector<8x32xf32>
    %c0_59 = arith.constant 0 : index
    %c64_60 = arith.constant 64 : index
    %195 = vector.load %arg9[%c0_59, %c64_60] : memref<8x128xf32, #tpu.memory_space<vmem>>, vector<8x32xf32>
    tpu.vector_store %arg9[%c0_59, %c64_60], %194 {strides = array<i32>} : memref<8x128xf32, #tpu.memory_space<vmem>>, vector<8x32xf32>,
    %196 = vector.extract_strided_slice %142 {offsets = [0, 384], sizes = [8, 128], strides = [1, 1]} : vector<8x512xf32> to vector<8x128xf32>
    %197 = arith.negf %196 : vector<8x128xf32>
    %198 = math.exp %197 : vector<8x128xf32>
    %cst_61 = arith.constant 1.000000e+00 : f32
    %199 = vector.broadcast %cst_61 : f32 to vector<8x128xf32>
    %200 = arith.addf %199, %198 : vector<8x128xf32>
    %201 = arith.divf %199, %200 : vector<8x128xf32>
    %202 = math.tanh %196 : vector<8x128xf32>
    %203 = vector.extract_strided_slice %201 {offsets = [0, 0], sizes = [8, 32], strides = [1, 1]} : vector<8x128xf32> to vector<8x32xf32>
    %204 = vector.extract_strided_slice %201 {offsets = [0, 32], sizes = [8, 32], strides = [1, 1]} : vector<8x128xf32> to vector<8x32xf32>
    %205 = vector.extract_strided_slice %202 {offsets = [0, 64], sizes = [8, 32], strides = [1, 1]} : vector<8x128xf32> to vector<8x32xf32>
    %206 = vector.extract_strided_slice %201 {offsets = [0, 96], sizes = [8, 32], strides = [1, 1]} : vector<8x128xf32> to vector<8x32xf32>
    %207 = arith.mulf %204, %14 : vector<8x32xf32>
    %208 = arith.mulf %203, %205 : vector<8x32xf32>
    %209 = arith.addf %207, %208 : vector<8x32xf32>
    %210 = math.tanh %209 : vector<8x32xf32>
    %211 = arith.mulf %206, %210 : vector<8x32xf32>
    %c0_62 = arith.constant 0 : index
    %c96_63 = arith.constant 96 : index
    %212 = vector.load %arg9[%c0_62, %c96_63] : memref<8x128xf32, #tpu.memory_space<vmem>>, vector<8x32xf32>
    tpu.vector_store %arg9[%c0_62, %c96_63], %211 {strides = array<i32>} : memref<8x128xf32, #tpu.memory_space<vmem>>, vector<8x32xf32>,
    %c0_64 = arith.constant 0 : index
    %c0_65 = arith.constant 0 : index
    %213 = vector.load %arg11[%c0_64, %c0_65] : memref<64x32xf32, #tpu.memory_space<vmem>>, vector<8x32xf32>
    tpu.vector_store %arg11[%c0_64, %c0_65], %211 {strides = array<i32>} : memref<64x32xf32, #tpu.memory_space<vmem>>, vector<8x32xf32>,
    %c0_66 = arith.constant 0 : index
    %c0_67 = arith.constant 0 : index
    %214 = vector.load %arg9[%c0_66, %c0_67] : memref<8x128xf32, #tpu.memory_space<vmem>>, vector<8x128xf32>
    %c0_68 = arith.constant 0 : index
    %c0_69 = arith.constant 0 : index
    %215 = vector.load %arg2[%c0_68, %c0_69] : memref<128x512xf32, #tpu.memory_space<vmem>>, vector<128x512xf32>
    %cst_70 = arith.constant dense<0.000000e+00> : vector<8x512xf32>
    %216 = tpu.matmul %214, %215, %cst_70 {dimension_numbers = #tpu.dot_dimension_numbers<[1], [0], [0], [1], [0, 0, 1, 1], [], []>} : vector<8x128xf32>, vector<128x512xf32>, vector<8x512xf32> -> vector<8x512xf32>
    %217 = vector.broadcast %8 : vector<1x512xf32> to vector<8x512xf32>
    %218 = arith.addf %216, %217 : vector<8x512xf32>
    %219 = vector.extract_strided_slice %218 {offsets = [0, 0], sizes = [8, 128], strides = [1, 1]} : vector<8x512xf32> to vector<8x128xf32>
    %220 = vector.extract_strided_slice %7 {offsets = [32, 0], sizes = [8, 128], strides = [1, 1]} : vector<64x128xf32> to vector<8x128xf32>
    %221 = arith.addf %219, %220 : vector<8x128xf32>
    %222 = arith.negf %221 : vector<8x128xf32>
    %223 = math.exp %222 : vector<8x128xf32>
    %cst_71 = arith.constant 1.000000e+00 : f32
    %224 = vector.broadcast %cst_71 : f32 to vector<8x128xf32>
    %225 = arith.addf %224, %223 : vector<8x128xf32>
    %226 = arith.divf %224, %225 : vector<8x128xf32>
    %227 = math.tanh %221 : vector<8x128xf32>
    %228 = vector.extract_strided_slice %226 {offsets = [0, 0], sizes = [8, 32], strides = [1, 1]} : vector<8x128xf32> to vector<8x32xf32>
    %229 = vector.extract_strided_slice %226 {offsets = [0, 32], sizes = [8, 32], strides = [1, 1]} : vector<8x128xf32> to vector<8x32xf32>
    %230 = vector.extract_strided_slice %227 {offsets = [0, 64], sizes = [8, 32], strides = [1, 1]} : vector<8x128xf32> to vector<8x32xf32>
    %231 = vector.extract_strided_slice %226 {offsets = [0, 96], sizes = [8, 32], strides = [1, 1]} : vector<8x128xf32> to vector<8x32xf32>
    %232 = arith.mulf %229, %158 : vector<8x32xf32>
    %233 = arith.mulf %228, %230 : vector<8x32xf32>
    %234 = arith.addf %232, %233 : vector<8x32xf32>
    %235 = math.tanh %234 : vector<8x32xf32>
    %236 = arith.mulf %231, %235 : vector<8x32xf32>
    %c0_72 = arith.constant 0 : index
    %c0_73 = arith.constant 0 : index
    %237 = vector.load %arg9[%c0_72, %c0_73] : memref<8x128xf32, #tpu.memory_space<vmem>>, vector<8x32xf32>
    tpu.vector_store %arg9[%c0_72, %c0_73], %236 {strides = array<i32>} : memref<8x128xf32, #tpu.memory_space<vmem>>, vector<8x32xf32>,
    %238 = vector.extract_strided_slice %218 {offsets = [0, 128], sizes = [8, 128], strides = [1, 1]} : vector<8x512xf32> to vector<8x128xf32>
    %239 = arith.negf %238 : vector<8x128xf32>
    %240 = math.exp %239 : vector<8x128xf32>
    %cst_74 = arith.constant 1.000000e+00 : f32
    %241 = vector.broadcast %cst_74 : f32 to vector<8x128xf32>
    %242 = arith.addf %241, %240 : vector<8x128xf32>
    %243 = arith.divf %241, %242 : vector<8x128xf32>
    %244 = math.tanh %238 : vector<8x128xf32>
    %245 = vector.extract_strided_slice %243 {offsets = [0, 0], sizes = [8, 32], strides = [1, 1]} : vector<8x128xf32> to vector<8x32xf32>
    %246 = vector.extract_strided_slice %243 {offsets = [0, 32], sizes = [8, 32], strides = [1, 1]} : vector<8x128xf32> to vector<8x32xf32>
    %247 = vector.extract_strided_slice %244 {offsets = [0, 64], sizes = [8, 32], strides = [1, 1]} : vector<8x128xf32> to vector<8x32xf32>
    %248 = vector.extract_strided_slice %243 {offsets = [0, 96], sizes = [8, 32], strides = [1, 1]} : vector<8x128xf32> to vector<8x32xf32>
    %249 = arith.mulf %246, %175 : vector<8x32xf32>
    %250 = arith.mulf %245, %247 : vector<8x32xf32>
    %251 = arith.addf %249, %250 : vector<8x32xf32>
    %252 = math.tanh %251 : vector<8x32xf32>
    %253 = arith.mulf %248, %252 : vector<8x32xf32>
    %c0_75 = arith.constant 0 : index
    %c32_76 = arith.constant 32 : index
    %254 = vector.load %arg9[%c0_75, %c32_76] : memref<8x128xf32, #tpu.memory_space<vmem>>, vector<8x32xf32>
    tpu.vector_store %arg9[%c0_75, %c32_76], %253 {strides = array<i32>} : memref<8x128xf32, #tpu.memory_space<vmem>>, vector<8x32xf32>,
    %255 = vector.extract_strided_slice %218 {offsets = [0, 256], sizes = [8, 128], strides = [1, 1]} : vector<8x512xf32> to vector<8x128xf32>
    %256 = arith.negf %255 : vector<8x128xf32>
    %257 = math.exp %256 : vector<8x128xf32>
    %cst_77 = arith.constant 1.000000e+00 : f32
    %258 = vector.broadcast %cst_77 : f32 to vector<8x128xf32>
    %259 = arith.addf %258, %257 : vector<8x128xf32>
    %260 = arith.divf %258, %259 : vector<8x128xf32>
    %261 = math.tanh %255 : vector<8x128xf32>
    %262 = vector.extract_strided_slice %260 {offsets = [0, 0], sizes = [8, 32], strides = [1, 1]} : vector<8x128xf32> to vector<8x32xf32>
    %263 = vector.extract_strided_slice %260 {offsets = [0, 32], sizes = [8, 32], strides = [1, 1]} : vector<8x128xf32> to vector<8x32xf32>
    %264 = vector.extract_strided_slice %261 {offsets = [0, 64], sizes = [8, 32], strides = [1, 1]} : vector<8x128xf32> to vector<8x32xf32>
    %265 = vector.extract_strided_slice %260 {offsets = [0, 96], sizes = [8, 32], strides = [1, 1]} : vector<8x128xf32> to vector<8x32xf32>
    %266 = arith.mulf %263, %192 : vector<8x32xf32>
    %267 = arith.mulf %262, %264 : vector<8x32xf32>
    %268 = arith.addf %266, %267 : vector<8x32xf32>
    %269 = math.tanh %268 : vector<8x32xf32>
    %270 = arith.mulf %265, %269 : vector<8x32xf32>
    %c0_78 = arith.constant 0 : index
    %c64_79 = arith.constant 64 : index
    %271 = vector.load %arg9[%c0_78, %c64_79] : memref<8x128xf32, #tpu.memory_space<vmem>>, vector<8x32xf32>
    tpu.vector_store %arg9[%c0_78, %c64_79], %270 {strides = array<i32>} : memref<8x128xf32, #tpu.memory_space<vmem>>, vector<8x32xf32>,
    %272 = vector.extract_strided_slice %218 {offsets = [0, 384], sizes = [8, 128], strides = [1, 1]} : vector<8x512xf32> to vector<8x128xf32>
    %273 = arith.negf %272 : vector<8x128xf32>
    %274 = math.exp %273 : vector<8x128xf32>
    %cst_80 = arith.constant 1.000000e+00 : f32
    %275 = vector.broadcast %cst_80 : f32 to vector<8x128xf32>
    %276 = arith.addf %275, %274 : vector<8x128xf32>
    %277 = arith.divf %275, %276 : vector<8x128xf32>
    %278 = math.tanh %272 : vector<8x128xf32>
    %279 = vector.extract_strided_slice %277 {offsets = [0, 0], sizes = [8, 32], strides = [1, 1]} : vector<8x128xf32> to vector<8x32xf32>
    %280 = vector.extract_strided_slice %277 {offsets = [0, 32], sizes = [8, 32], strides = [1, 1]} : vector<8x128xf32> to vector<8x32xf32>
    %281 = vector.extract_strided_slice %278 {offsets = [0, 64], sizes = [8, 32], strides = [1, 1]} : vector<8x128xf32> to vector<8x32xf32>
    %282 = vector.extract_strided_slice %277 {offsets = [0, 96], sizes = [8, 32], strides = [1, 1]} : vector<8x128xf32> to vector<8x32xf32>
    %283 = arith.mulf %280, %209 : vector<8x32xf32>
    %284 = arith.mulf %279, %281 : vector<8x32xf32>
    %285 = arith.addf %283, %284 : vector<8x32xf32>
    %286 = math.tanh %285 : vector<8x32xf32>
    %287 = arith.mulf %282, %286 : vector<8x32xf32>
    %c0_81 = arith.constant 0 : index
    %c96_82 = arith.constant 96 : index
    %288 = vector.load %arg9[%c0_81, %c96_82] : memref<8x128xf32, #tpu.memory_space<vmem>>, vector<8x32xf32>
    tpu.vector_store %arg9[%c0_81, %c96_82], %287 {strides = array<i32>} : memref<8x128xf32, #tpu.memory_space<vmem>>, vector<8x32xf32>,
    %c8 = arith.constant 8 : index
    %c0_83 = arith.constant 0 : index
    %289 = vector.load %arg11[%c8, %c0_83] : memref<64x32xf32, #tpu.memory_space<vmem>>, vector<8x32xf32>
    tpu.vector_store %arg11[%c8, %c0_83], %287 {strides = array<i32>} : memref<64x32xf32, #tpu.memory_space<vmem>>, vector<8x32xf32>,
    %c0_84 = arith.constant 0 : index
    %c0_85 = arith.constant 0 : index
    %290 = vector.load %arg9[%c0_84, %c0_85] : memref<8x128xf32, #tpu.memory_space<vmem>>, vector<8x128xf32>
    %c0_86 = arith.constant 0 : index
    %c0_87 = arith.constant 0 : index
    %291 = vector.load %arg2[%c0_86, %c0_87] : memref<128x512xf32, #tpu.memory_space<vmem>>, vector<128x512xf32>
    %cst_88 = arith.constant dense<0.000000e+00> : vector<8x512xf32>
    %292 = tpu.matmul %290, %291, %cst_88 {dimension_numbers = #tpu.dot_dimension_numbers<[1], [0], [0], [1], [0, 0, 1, 1], [], []>} : vector<8x128xf32>, vector<128x512xf32>, vector<8x512xf32> -> vector<8x512xf32>
    %293 = vector.broadcast %8 : vector<1x512xf32> to vector<8x512xf32>
    %294 = arith.addf %292, %293 : vector<8x512xf32>
    %295 = vector.extract_strided_slice %294 {offsets = [0, 0], sizes = [8, 128], strides = [1, 1]} : vector<8x512xf32> to vector<8x128xf32>
    %296 = vector.extract_strided_slice %7 {offsets = [40, 0], sizes = [8, 128], strides = [1, 1]} : vector<64x128xf32> to vector<8x128xf32>
    %297 = arith.addf %295, %296 : vector<8x128xf32>
    %298 = arith.negf %297 : vector<8x128xf32>
    %299 = math.exp %298 : vector<8x128xf32>
    %cst_89 = arith.constant 1.000000e+00 : f32
    %300 = vector.broadcast %cst_89 : f32 to vector<8x128xf32>
    %301 = arith.addf %300, %299 : vector<8x128xf32>
    %302 = arith.divf %300, %301 : vector<8x128xf32>
    %303 = math.tanh %297 : vector<8x128xf32>
    %304 = vector.extract_strided_slice %302 {offsets = [0, 0], sizes = [8, 32], strides = [1, 1]} : vector<8x128xf32> to vector<8x32xf32>
    %305 = vector.extract_strided_slice %302 {offsets = [0, 32], sizes = [8, 32], strides = [1, 1]} : vector<8x128xf32> to vector<8x32xf32>
    %306 = vector.extract_strided_slice %303 {offsets = [0, 64], sizes = [8, 32], strides = [1, 1]} : vector<8x128xf32> to vector<8x32xf32>
    %307 = vector.extract_strided_slice %302 {offsets = [0, 96], sizes = [8, 32], strides = [1, 1]} : vector<8x128xf32> to vector<8x32xf32>
    %308 = arith.mulf %305, %234 : vector<8x32xf32>
    %309 = arith.mulf %304, %306 : vector<8x32xf32>
    %310 = arith.addf %308, %309 : vector<8x32xf32>
    %311 = math.tanh %310 : vector<8x32xf32>
    %312 = arith.mulf %307, %311 : vector<8x32xf32>
    %c0_90 = arith.constant 0 : index
    %c0_91 = arith.constant 0 : index
    %313 = vector.load %arg9[%c0_90, %c0_91] : memref<8x128xf32, #tpu.memory_space<vmem>>, vector<8x32xf32>
    tpu.vector_store %arg9[%c0_90, %c0_91], %312 {strides = array<i32>} : memref<8x128xf32, #tpu.memory_space<vmem>>, vector<8x32xf32>,
    %314 = vector.extract_strided_slice %294 {offsets = [0, 128], sizes = [8, 128], strides = [1, 1]} : vector<8x512xf32> to vector<8x128xf32>
    %315 = arith.negf %314 : vector<8x128xf32>
    %316 = math.exp %315 : vector<8x128xf32>
    %cst_92 = arith.constant 1.000000e+00 : f32
    %317 = vector.broadcast %cst_92 : f32 to vector<8x128xf32>
    %318 = arith.addf %317, %316 : vector<8x128xf32>
    %319 = arith.divf %317, %318 : vector<8x128xf32>
    %320 = math.tanh %314 : vector<8x128xf32>
    %321 = vector.extract_strided_slice %319 {offsets = [0, 0], sizes = [8, 32], strides = [1, 1]} : vector<8x128xf32> to vector<8x32xf32>
    %322 = vector.extract_strided_slice %319 {offsets = [0, 32], sizes = [8, 32], strides = [1, 1]} : vector<8x128xf32> to vector<8x32xf32>
    %323 = vector.extract_strided_slice %320 {offsets = [0, 64], sizes = [8, 32], strides = [1, 1]} : vector<8x128xf32> to vector<8x32xf32>
    %324 = vector.extract_strided_slice %319 {offsets = [0, 96], sizes = [8, 32], strides = [1, 1]} : vector<8x128xf32> to vector<8x32xf32>
    %325 = arith.mulf %322, %251 : vector<8x32xf32>
    %326 = arith.mulf %321, %323 : vector<8x32xf32>
    %327 = arith.addf %325, %326 : vector<8x32xf32>
    %328 = math.tanh %327 : vector<8x32xf32>
    %329 = arith.mulf %324, %328 : vector<8x32xf32>
    %c0_93 = arith.constant 0 : index
    %c32_94 = arith.constant 32 : index
    %330 = vector.load %arg9[%c0_93, %c32_94] : memref<8x128xf32, #tpu.memory_space<vmem>>, vector<8x32xf32>
    tpu.vector_store %arg9[%c0_93, %c32_94], %329 {strides = array<i32>} : memref<8x128xf32, #tpu.memory_space<vmem>>, vector<8x32xf32>,
    %331 = vector.extract_strided_slice %294 {offsets = [0, 256], sizes = [8, 128], strides = [1, 1]} : vector<8x512xf32> to vector<8x128xf32>
    %332 = arith.negf %331 : vector<8x128xf32>
    %333 = math.exp %332 : vector<8x128xf32>
    %cst_95 = arith.constant 1.000000e+00 : f32
    %334 = vector.broadcast %cst_95 : f32 to vector<8x128xf32>
    %335 = arith.addf %334, %333 : vector<8x128xf32>
    %336 = arith.divf %334, %335 : vector<8x128xf32>
    %337 = math.tanh %331 : vector<8x128xf32>
    %338 = vector.extract_strided_slice %336 {offsets = [0, 0], sizes = [8, 32], strides = [1, 1]} : vector<8x128xf32> to vector<8x32xf32>
    %339 = vector.extract_strided_slice %336 {offsets = [0, 32], sizes = [8, 32], strides = [1, 1]} : vector<8x128xf32> to vector<8x32xf32>
    %340 = vector.extract_strided_slice %337 {offsets = [0, 64], sizes = [8, 32], strides = [1, 1]} : vector<8x128xf32> to vector<8x32xf32>
    %341 = vector.extract_strided_slice %336 {offsets = [0, 96], sizes = [8, 32], strides = [1, 1]} : vector<8x128xf32> to vector<8x32xf32>
    %342 = arith.mulf %339, %268 : vector<8x32xf32>
    %343 = arith.mulf %338, %340 : vector<8x32xf32>
    %344 = arith.addf %342, %343 : vector<8x32xf32>
    %345 = math.tanh %344 : vector<8x32xf32>
    %346 = arith.mulf %341, %345 : vector<8x32xf32>
    %c0_96 = arith.constant 0 : index
    %c64_97 = arith.constant 64 : index
    %347 = vector.load %arg9[%c0_96, %c64_97] : memref<8x128xf32, #tpu.memory_space<vmem>>, vector<8x32xf32>
    tpu.vector_store %arg9[%c0_96, %c64_97], %346 {strides = array<i32>} : memref<8x128xf32, #tpu.memory_space<vmem>>, vector<8x32xf32>,
    %348 = vector.extract_strided_slice %294 {offsets = [0, 384], sizes = [8, 128], strides = [1, 1]} : vector<8x512xf32> to vector<8x128xf32>
    %349 = arith.negf %348 : vector<8x128xf32>
    %350 = math.exp %349 : vector<8x128xf32>
    %cst_98 = arith.constant 1.000000e+00 : f32
    %351 = vector.broadcast %cst_98 : f32 to vector<8x128xf32>
    %352 = arith.addf %351, %350 : vector<8x128xf32>
    %353 = arith.divf %351, %352 : vector<8x128xf32>
    %354 = math.tanh %348 : vector<8x128xf32>
    %355 = vector.extract_strided_slice %353 {offsets = [0, 0], sizes = [8, 32], strides = [1, 1]} : vector<8x128xf32> to vector<8x32xf32>
    %356 = vector.extract_strided_slice %353 {offsets = [0, 32], sizes = [8, 32], strides = [1, 1]} : vector<8x128xf32> to vector<8x32xf32>
    %357 = vector.extract_strided_slice %354 {offsets = [0, 64], sizes = [8, 32], strides = [1, 1]} : vector<8x128xf32> to vector<8x32xf32>
    %358 = vector.extract_strided_slice %353 {offsets = [0, 96], sizes = [8, 32], strides = [1, 1]} : vector<8x128xf32> to vector<8x32xf32>
    %359 = arith.mulf %356, %285 : vector<8x32xf32>
    %360 = arith.mulf %355, %357 : vector<8x32xf32>
    %361 = arith.addf %359, %360 : vector<8x32xf32>
    %362 = math.tanh %361 : vector<8x32xf32>
    %363 = arith.mulf %358, %362 : vector<8x32xf32>
    %c0_99 = arith.constant 0 : index
    %c96_100 = arith.constant 96 : index
    %364 = vector.load %arg9[%c0_99, %c96_100] : memref<8x128xf32, #tpu.memory_space<vmem>>, vector<8x32xf32>
    tpu.vector_store %arg9[%c0_99, %c96_100], %363 {strides = array<i32>} : memref<8x128xf32, #tpu.memory_space<vmem>>, vector<8x32xf32>,
    %c16 = arith.constant 16 : index
    %c0_101 = arith.constant 0 : index
    %365 = vector.load %arg11[%c16, %c0_101] : memref<64x32xf32, #tpu.memory_space<vmem>>, vector<8x32xf32>
    tpu.vector_store %arg11[%c16, %c0_101], %363 {strides = array<i32>} : memref<64x32xf32, #tpu.memory_space<vmem>>, vector<8x32xf32>,
    %c0_102 = arith.constant 0 : index
    %c0_103 = arith.constant 0 : index
    %366 = vector.load %arg9[%c0_102, %c0_103] : memref<8x128xf32, #tpu.memory_space<vmem>>, vector<8x128xf32>
    %c0_104 = arith.constant 0 : index
    %c0_105 = arith.constant 0 : index
    %367 = vector.load %arg2[%c0_104, %c0_105] : memref<128x512xf32, #tpu.memory_space<vmem>>, vector<128x512xf32>
    %cst_106 = arith.constant dense<0.000000e+00> : vector<8x512xf32>
    %368 = tpu.matmul %366, %367, %cst_106 {dimension_numbers = #tpu.dot_dimension_numbers<[1], [0], [0], [1], [0, 0, 1, 1], [], []>} : vector<8x128xf32>, vector<128x512xf32>, vector<8x512xf32> -> vector<8x512xf32>
    %369 = vector.broadcast %8 : vector<1x512xf32> to vector<8x512xf32>
    %370 = arith.addf %368, %369 : vector<8x512xf32>
    %371 = vector.extract_strided_slice %370 {offsets = [0, 0], sizes = [8, 128], strides = [1, 1]} : vector<8x512xf32> to vector<8x128xf32>
    %372 = vector.extract_strided_slice %7 {offsets = [48, 0], sizes = [8, 128], strides = [1, 1]} : vector<64x128xf32> to vector<8x128xf32>
    %373 = arith.addf %371, %372 : vector<8x128xf32>
    %374 = arith.negf %373 : vector<8x128xf32>
    %375 = math.exp %374 : vector<8x128xf32>
    %cst_107 = arith.constant 1.000000e+00 : f32
    %376 = vector.broadcast %cst_107 : f32 to vector<8x128xf32>
    %377 = arith.addf %376, %375 : vector<8x128xf32>
    %378 = arith.divf %376, %377 : vector<8x128xf32>
    %379 = math.tanh %373 : vector<8x128xf32>
    %380 = vector.extract_strided_slice %378 {offsets = [0, 0], sizes = [8, 32], strides = [1, 1]} : vector<8x128xf32> to vector<8x32xf32>
    %381 = vector.extract_strided_slice %378 {offsets = [0, 32], sizes = [8, 32], strides = [1, 1]} : vector<8x128xf32> to vector<8x32xf32>
    %382 = vector.extract_strided_slice %379 {offsets = [0, 64], sizes = [8, 32], strides = [1, 1]} : vector<8x128xf32> to vector<8x32xf32>
    %383 = vector.extract_strided_slice %378 {offsets = [0, 96], sizes = [8, 32], strides = [1, 1]} : vector<8x128xf32> to vector<8x32xf32>
    %384 = arith.mulf %381, %310 : vector<8x32xf32>
    %385 = arith.mulf %380, %382 : vector<8x32xf32>
    %386 = arith.addf %384, %385 : vector<8x32xf32>
    %387 = math.tanh %386 : vector<8x32xf32>
    %388 = arith.mulf %383, %387 : vector<8x32xf32>
    %c0_108 = arith.constant 0 : index
    %c0_109 = arith.constant 0 : index
    %389 = vector.load %arg9[%c0_108, %c0_109] : memref<8x128xf32, #tpu.memory_space<vmem>>, vector<8x32xf32>
    tpu.vector_store %arg9[%c0_108, %c0_109], %388 {strides = array<i32>} : memref<8x128xf32, #tpu.memory_space<vmem>>, vector<8x32xf32>,
    %390 = vector.extract_strided_slice %370 {offsets = [0, 128], sizes = [8, 128], strides = [1, 1]} : vector<8x512xf32> to vector<8x128xf32>
    %391 = arith.negf %390 : vector<8x128xf32>
    %392 = math.exp %391 : vector<8x128xf32>
    %cst_110 = arith.constant 1.000000e+00 : f32
    %393 = vector.broadcast %cst_110 : f32 to vector<8x128xf32>
    %394 = arith.addf %393, %392 : vector<8x128xf32>
    %395 = arith.divf %393, %394 : vector<8x128xf32>
    %396 = math.tanh %390 : vector<8x128xf32>
    %397 = vector.extract_strided_slice %395 {offsets = [0, 0], sizes = [8, 32], strides = [1, 1]} : vector<8x128xf32> to vector<8x32xf32>
    %398 = vector.extract_strided_slice %395 {offsets = [0, 32], sizes = [8, 32], strides = [1, 1]} : vector<8x128xf32> to vector<8x32xf32>
    %399 = vector.extract_strided_slice %396 {offsets = [0, 64], sizes = [8, 32], strides = [1, 1]} : vector<8x128xf32> to vector<8x32xf32>
    %400 = vector.extract_strided_slice %395 {offsets = [0, 96], sizes = [8, 32], strides = [1, 1]} : vector<8x128xf32> to vector<8x32xf32>
    %401 = arith.mulf %398, %327 : vector<8x32xf32>
    %402 = arith.mulf %397, %399 : vector<8x32xf32>
    %403 = arith.addf %401, %402 : vector<8x32xf32>
    %404 = math.tanh %403 : vector<8x32xf32>
    %405 = arith.mulf %400, %404 : vector<8x32xf32>
    %c0_111 = arith.constant 0 : index
    %c32_112 = arith.constant 32 : index
    %406 = vector.load %arg9[%c0_111, %c32_112] : memref<8x128xf32, #tpu.memory_space<vmem>>, vector<8x32xf32>
    tpu.vector_store %arg9[%c0_111, %c32_112], %405 {strides = array<i32>} : memref<8x128xf32, #tpu.memory_space<vmem>>, vector<8x32xf32>,
    %407 = vector.extract_strided_slice %370 {offsets = [0, 256], sizes = [8, 128], strides = [1, 1]} : vector<8x512xf32> to vector<8x128xf32>
    %408 = arith.negf %407 : vector<8x128xf32>
    %409 = math.exp %408 : vector<8x128xf32>
    %cst_113 = arith.constant 1.000000e+00 : f32
    %410 = vector.broadcast %cst_113 : f32 to vector<8x128xf32>
    %411 = arith.addf %410, %409 : vector<8x128xf32>
    %412 = arith.divf %410, %411 : vector<8x128xf32>
    %413 = math.tanh %407 : vector<8x128xf32>
    %414 = vector.extract_strided_slice %412 {offsets = [0, 0], sizes = [8, 32], strides = [1, 1]} : vector<8x128xf32> to vector<8x32xf32>
    %415 = vector.extract_strided_slice %412 {offsets = [0, 32], sizes = [8, 32], strides = [1, 1]} : vector<8x128xf32> to vector<8x32xf32>
    %416 = vector.extract_strided_slice %413 {offsets = [0, 64], sizes = [8, 32], strides = [1, 1]} : vector<8x128xf32> to vector<8x32xf32>
    %417 = vector.extract_strided_slice %412 {offsets = [0, 96], sizes = [8, 32], strides = [1, 1]} : vector<8x128xf32> to vector<8x32xf32>
    %418 = arith.mulf %415, %344 : vector<8x32xf32>
    %419 = arith.mulf %414, %416 : vector<8x32xf32>
    %420 = arith.addf %418, %419 : vector<8x32xf32>
    %421 = math.tanh %420 : vector<8x32xf32>
    %422 = arith.mulf %417, %421 : vector<8x32xf32>
    %c0_114 = arith.constant 0 : index
    %c64_115 = arith.constant 64 : index
    %423 = vector.load %arg9[%c0_114, %c64_115] : memref<8x128xf32, #tpu.memory_space<vmem>>, vector<8x32xf32>
    tpu.vector_store %arg9[%c0_114, %c64_115], %422 {strides = array<i32>} : memref<8x128xf32, #tpu.memory_space<vmem>>, vector<8x32xf32>,
    %424 = vector.extract_strided_slice %370 {offsets = [0, 384], sizes = [8, 128], strides = [1, 1]} : vector<8x512xf32> to vector<8x128xf32>
    %425 = arith.negf %424 : vector<8x128xf32>
    %426 = math.exp %425 : vector<8x128xf32>
    %cst_116 = arith.constant 1.000000e+00 : f32
    %427 = vector.broadcast %cst_116 : f32 to vector<8x128xf32>
    %428 = arith.addf %427, %426 : vector<8x128xf32>
    %429 = arith.divf %427, %428 : vector<8x128xf32>
    %430 = math.tanh %424 : vector<8x128xf32>
    %431 = vector.extract_strided_slice %429 {offsets = [0, 0], sizes = [8, 32], strides = [1, 1]} : vector<8x128xf32> to vector<8x32xf32>
    %432 = vector.extract_strided_slice %429 {offsets = [0, 32], sizes = [8, 32], strides = [1, 1]} : vector<8x128xf32> to vector<8x32xf32>
    %433 = vector.extract_strided_slice %430 {offsets = [0, 64], sizes = [8, 32], strides = [1, 1]} : vector<8x128xf32> to vector<8x32xf32>
    %434 = vector.extract_strided_slice %429 {offsets = [0, 96], sizes = [8, 32], strides = [1, 1]} : vector<8x128xf32> to vector<8x32xf32>
    %435 = arith.mulf %432, %361 : vector<8x32xf32>
    %436 = arith.mulf %431, %433 : vector<8x32xf32>
    %437 = arith.addf %435, %436 : vector<8x32xf32>
    %438 = math.tanh %437 : vector<8x32xf32>
    %439 = arith.mulf %434, %438 : vector<8x32xf32>
    %c0_117 = arith.constant 0 : index
    %c96_118 = arith.constant 96 : index
    %440 = vector.load %arg9[%c0_117, %c96_118] : memref<8x128xf32, #tpu.memory_space<vmem>>, vector<8x32xf32>
    tpu.vector_store %arg9[%c0_117, %c96_118], %439 {strides = array<i32>} : memref<8x128xf32, #tpu.memory_space<vmem>>, vector<8x32xf32>,
    %c24 = arith.constant 24 : index
    %c0_119 = arith.constant 0 : index
    %441 = vector.load %arg11[%c24, %c0_119] : memref<64x32xf32, #tpu.memory_space<vmem>>, vector<8x32xf32>
    tpu.vector_store %arg11[%c24, %c0_119], %439 {strides = array<i32>} : memref<64x32xf32, #tpu.memory_space<vmem>>, vector<8x32xf32>,
    %c0_120 = arith.constant 0 : index
    %c0_121 = arith.constant 0 : index
    %442 = vector.load %arg9[%c0_120, %c0_121] : memref<8x128xf32, #tpu.memory_space<vmem>>, vector<8x128xf32>
    %c0_122 = arith.constant 0 : index
    %c0_123 = arith.constant 0 : index
    %443 = vector.load %arg2[%c0_122, %c0_123] : memref<128x512xf32, #tpu.memory_space<vmem>>, vector<128x512xf32>
    %cst_124 = arith.constant dense<0.000000e+00> : vector<8x512xf32>
    %444 = tpu.matmul %442, %443, %cst_124 {dimension_numbers = #tpu.dot_dimension_numbers<[1], [0], [0], [1], [0, 0, 1, 1], [], []>} : vector<8x128xf32>, vector<128x512xf32>, vector<8x512xf32> -> vector<8x512xf32>
    %445 = vector.broadcast %8 : vector<1x512xf32> to vector<8x512xf32>
    %446 = arith.addf %444, %445 : vector<8x512xf32>
    %447 = vector.extract_strided_slice %446 {offsets = [0, 0], sizes = [8, 128], strides = [1, 1]} : vector<8x512xf32> to vector<8x128xf32>
    %448 = vector.extract_strided_slice %7 {offsets = [56, 0], sizes = [8, 128], strides = [1, 1]} : vector<64x128xf32> to vector<8x128xf32>
    %449 = arith.addf %447, %448 : vector<8x128xf32>
    %450 = arith.negf %449 : vector<8x128xf32>
    %451 = math.exp %450 : vector<8x128xf32>
    %cst_125 = arith.constant 1.000000e+00 : f32
    %452 = vector.broadcast %cst_125 : f32 to vector<8x128xf32>
    %453 = arith.addf %452, %451 : vector<8x128xf32>
    %454 = arith.divf %452, %453 : vector<8x128xf32>
    %455 = math.tanh %449 : vector<8x128xf32>
    %456 = vector.extract_strided_slice %454 {offsets = [0, 0], sizes = [8, 32], strides = [1, 1]} : vector<8x128xf32> to vector<8x32xf32>
    %457 = vector.extract_strided_slice %454 {offsets = [0, 32], sizes = [8, 32], strides = [1, 1]} : vector<8x128xf32> to vector<8x32xf32>
    %458 = vector.extract_strided_slice %455 {offsets = [0, 64], sizes = [8, 32], strides = [1, 1]} : vector<8x128xf32> to vector<8x32xf32>
    %459 = vector.extract_strided_slice %454 {offsets = [0, 96], sizes = [8, 32], strides = [1, 1]} : vector<8x128xf32> to vector<8x32xf32>
    %460 = arith.mulf %457, %386 : vector<8x32xf32>
    %461 = arith.mulf %456, %458 : vector<8x32xf32>
    %462 = arith.addf %460, %461 : vector<8x32xf32>
    %463 = math.tanh %462 : vector<8x32xf32>
    %464 = arith.mulf %459, %463 : vector<8x32xf32>
    %c0_126 = arith.constant 0 : index
    %c0_127 = arith.constant 0 : index
    %465 = vector.load %arg9[%c0_126, %c0_127] : memref<8x128xf32, #tpu.memory_space<vmem>>, vector<8x32xf32>
    tpu.vector_store %arg9[%c0_126, %c0_127], %464 {strides = array<i32>} : memref<8x128xf32, #tpu.memory_space<vmem>>, vector<8x32xf32>,
    %466 = vector.extract_strided_slice %446 {offsets = [0, 128], sizes = [8, 128], strides = [1, 1]} : vector<8x512xf32> to vector<8x128xf32>
    %467 = arith.negf %466 : vector<8x128xf32>
    %468 = math.exp %467 : vector<8x128xf32>
    %cst_128 = arith.constant 1.000000e+00 : f32
    %469 = vector.broadcast %cst_128 : f32 to vector<8x128xf32>
    %470 = arith.addf %469, %468 : vector<8x128xf32>
    %471 = arith.divf %469, %470 : vector<8x128xf32>
    %472 = math.tanh %466 : vector<8x128xf32>
    %473 = vector.extract_strided_slice %471 {offsets = [0, 0], sizes = [8, 32], strides = [1, 1]} : vector<8x128xf32> to vector<8x32xf32>
    %474 = vector.extract_strided_slice %471 {offsets = [0, 32], sizes = [8, 32], strides = [1, 1]} : vector<8x128xf32> to vector<8x32xf32>
    %475 = vector.extract_strided_slice %472 {offsets = [0, 64], sizes = [8, 32], strides = [1, 1]} : vector<8x128xf32> to vector<8x32xf32>
    %476 = vector.extract_strided_slice %471 {offsets = [0, 96], sizes = [8, 32], strides = [1, 1]} : vector<8x128xf32> to vector<8x32xf32>
    %477 = arith.mulf %474, %403 : vector<8x32xf32>
    %478 = arith.mulf %473, %475 : vector<8x32xf32>
    %479 = arith.addf %477, %478 : vector<8x32xf32>
    %480 = math.tanh %479 : vector<8x32xf32>
    %481 = arith.mulf %476, %480 : vector<8x32xf32>
    %c0_129 = arith.constant 0 : index
    %c32_130 = arith.constant 32 : index
    %482 = vector.load %arg9[%c0_129, %c32_130] : memref<8x128xf32, #tpu.memory_space<vmem>>, vector<8x32xf32>
    tpu.vector_store %arg9[%c0_129, %c32_130], %481 {strides = array<i32>} : memref<8x128xf32, #tpu.memory_space<vmem>>, vector<8x32xf32>,
    %483 = vector.extract_strided_slice %446 {offsets = [0, 256], sizes = [8, 128], strides = [1, 1]} : vector<8x512xf32> to vector<8x128xf32>
    %484 = arith.negf %483 : vector<8x128xf32>
    %485 = math.exp %484 : vector<8x128xf32>
    %cst_131 = arith.constant 1.000000e+00 : f32
    %486 = vector.broadcast %cst_131 : f32 to vector<8x128xf32>
    %487 = arith.addf %486, %485 : vector<8x128xf32>
    %488 = arith.divf %486, %487 : vector<8x128xf32>
    %489 = math.tanh %483 : vector<8x128xf32>
    %490 = vector.extract_strided_slice %488 {offsets = [0, 0], sizes = [8, 32], strides = [1, 1]} : vector<8x128xf32> to vector<8x32xf32>
    %491 = vector.extract_strided_slice %488 {offsets = [0, 32], sizes = [8, 32], strides = [1, 1]} : vector<8x128xf32> to vector<8x32xf32>
    %492 = vector.extract_strided_slice %489 {offsets = [0, 64], sizes = [8, 32], strides = [1, 1]} : vector<8x128xf32> to vector<8x32xf32>
    %493 = vector.extract_strided_slice %488 {offsets = [0, 96], sizes = [8, 32], strides = [1, 1]} : vector<8x128xf32> to vector<8x32xf32>
    %494 = arith.mulf %491, %420 : vector<8x32xf32>
    %495 = arith.mulf %490, %492 : vector<8x32xf32>
    %496 = arith.addf %494, %495 : vector<8x32xf32>
    %497 = math.tanh %496 : vector<8x32xf32>
    %498 = arith.mulf %493, %497 : vector<8x32xf32>
    %c0_132 = arith.constant 0 : index
    %c64_133 = arith.constant 64 : index
    %499 = vector.load %arg9[%c0_132, %c64_133] : memref<8x128xf32, #tpu.memory_space<vmem>>, vector<8x32xf32>
    tpu.vector_store %arg9[%c0_132, %c64_133], %498 {strides = array<i32>} : memref<8x128xf32, #tpu.memory_space<vmem>>, vector<8x32xf32>,
    %500 = vector.extract_strided_slice %446 {offsets = [0, 384], sizes = [8, 128], strides = [1, 1]} : vector<8x512xf32> to vector<8x128xf32>
    %501 = arith.negf %500 : vector<8x128xf32>
    %502 = math.exp %501 : vector<8x128xf32>
    %cst_134 = arith.constant 1.000000e+00 : f32
    %503 = vector.broadcast %cst_134 : f32 to vector<8x128xf32>
    %504 = arith.addf %503, %502 : vector<8x128xf32>
    %505 = arith.divf %503, %504 : vector<8x128xf32>
    %506 = math.tanh %500 : vector<8x128xf32>
    %507 = vector.extract_strided_slice %505 {offsets = [0, 0], sizes = [8, 32], strides = [1, 1]} : vector<8x128xf32> to vector<8x32xf32>
    %508 = vector.extract_strided_slice %505 {offsets = [0, 32], sizes = [8, 32], strides = [1, 1]} : vector<8x128xf32> to vector<8x32xf32>
    %509 = vector.extract_strided_slice %506 {offsets = [0, 64], sizes = [8, 32], strides = [1, 1]} : vector<8x128xf32> to vector<8x32xf32>
    %510 = vector.extract_strided_slice %505 {offsets = [0, 96], sizes = [8, 32], strides = [1, 1]} : vector<8x128xf32> to vector<8x32xf32>
    %511 = arith.mulf %508, %437 : vector<8x32xf32>
    %512 = arith.mulf %507, %509 : vector<8x32xf32>
    %513 = arith.addf %511, %512 : vector<8x32xf32>
    %514 = math.tanh %513 : vector<8x32xf32>
    %515 = arith.mulf %510, %514 : vector<8x32xf32>
    %c0_135 = arith.constant 0 : index
    %c96_136 = arith.constant 96 : index
    %516 = vector.load %arg9[%c0_135, %c96_136] : memref<8x128xf32, #tpu.memory_space<vmem>>, vector<8x32xf32>
    tpu.vector_store %arg9[%c0_135, %c96_136], %515 {strides = array<i32>} : memref<8x128xf32, #tpu.memory_space<vmem>>, vector<8x32xf32>,
    %c32_137 = arith.constant 32 : index
    %c0_138 = arith.constant 0 : index
    %517 = vector.load %arg11[%c32_137, %c0_138] : memref<64x32xf32, #tpu.memory_space<vmem>>, vector<8x32xf32>
    tpu.vector_store %arg11[%c32_137, %c0_138], %515 {strides = array<i32>} : memref<64x32xf32, #tpu.memory_space<vmem>>, vector<8x32xf32>,
    %c0_139 = arith.constant 0 : index
    %c0_140 = arith.constant 0 : index
    %518 = vector.load %arg9[%c0_139, %c0_140] : memref<8x128xf32, #tpu.memory_space<vmem>>, vector<8x128xf32>
    %c0_141 = arith.constant 0 : index
    %c0_142 = arith.constant 0 : index
    %519 = vector.load %arg2[%c0_141, %c0_142] : memref<128x512xf32, #tpu.memory_space<vmem>>, vector<128x512xf32>
    %cst_143 = arith.constant dense<0.000000e+00> : vector<8x512xf32>
    %520 = tpu.matmul %518, %519, %cst_143 {dimension_numbers = #tpu.dot_dimension_numbers<[1], [0], [0], [1], [0, 0, 1, 1], [], []>} : vector<8x128xf32>, vector<128x512xf32>, vector<8x512xf32> -> vector<8x512xf32>
    %521 = vector.broadcast %8 : vector<1x512xf32> to vector<8x512xf32>
    %522 = arith.addf %520, %521 : vector<8x512xf32>
    %523 = vector.extract_strided_slice %522 {offsets = [0, 128], sizes = [8, 128], strides = [1, 1]} : vector<8x512xf32> to vector<8x128xf32>
    %524 = arith.negf %523 : vector<8x128xf32>
    %525 = math.exp %524 : vector<8x128xf32>
    %cst_144 = arith.constant 1.000000e+00 : f32
    %526 = vector.broadcast %cst_144 : f32 to vector<8x128xf32>
    %527 = arith.addf %526, %525 : vector<8x128xf32>
    %528 = arith.divf %526, %527 : vector<8x128xf32>
    %529 = math.tanh %523 : vector<8x128xf32>
    %530 = vector.extract_strided_slice %528 {offsets = [0, 0], sizes = [8, 32], strides = [1, 1]} : vector<8x128xf32> to vector<8x32xf32>
    %531 = vector.extract_strided_slice %528 {offsets = [0, 32], sizes = [8, 32], strides = [1, 1]} : vector<8x128xf32> to vector<8x32xf32>
    %532 = vector.extract_strided_slice %529 {offsets = [0, 64], sizes = [8, 32], strides = [1, 1]} : vector<8x128xf32> to vector<8x32xf32>
    %533 = vector.extract_strided_slice %528 {offsets = [0, 96], sizes = [8, 32], strides = [1, 1]} : vector<8x128xf32> to vector<8x32xf32>
    %534 = arith.mulf %531, %479 : vector<8x32xf32>
    %535 = arith.mulf %530, %532 : vector<8x32xf32>
    %536 = arith.addf %534, %535 : vector<8x32xf32>
    %537 = math.tanh %536 : vector<8x32xf32>
    %538 = arith.mulf %533, %537 : vector<8x32xf32>
    %c0_145 = arith.constant 0 : index
    %c32_146 = arith.constant 32 : index
    %539 = vector.load %arg9[%c0_145, %c32_146] : memref<8x128xf32, #tpu.memory_space<vmem>>, vector<8x32xf32>
    tpu.vector_store %arg9[%c0_145, %c32_146], %538 {strides = array<i32>} : memref<8x128xf32, #tpu.memory_space<vmem>>, vector<8x32xf32>,
    %540 = vector.extract_strided_slice %522 {offsets = [0, 256], sizes = [8, 128], strides = [1, 1]} : vector<8x512xf32> to vector<8x128xf32>
    %541 = arith.negf %540 : vector<8x128xf32>
    %542 = math.exp %541 : vector<8x128xf32>
    %cst_147 = arith.constant 1.000000e+00 : f32
    %543 = vector.broadcast %cst_147 : f32 to vector<8x128xf32>
    %544 = arith.addf %543, %542 : vector<8x128xf32>
    %545 = arith.divf %543, %544 : vector<8x128xf32>
    %546 = math.tanh %540 : vector<8x128xf32>
    %547 = vector.extract_strided_slice %545 {offsets = [0, 0], sizes = [8, 32], strides = [1, 1]} : vector<8x128xf32> to vector<8x32xf32>
    %548 = vector.extract_strided_slice %545 {offsets = [0, 32], sizes = [8, 32], strides = [1, 1]} : vector<8x128xf32> to vector<8x32xf32>
    %549 = vector.extract_strided_slice %546 {offsets = [0, 64], sizes = [8, 32], strides = [1, 1]} : vector<8x128xf32> to vector<8x32xf32>
    %550 = vector.extract_strided_slice %545 {offsets = [0, 96], sizes = [8, 32], strides = [1, 1]} : vector<8x128xf32> to vector<8x32xf32>
    %551 = arith.mulf %548, %496 : vector<8x32xf32>
    %552 = arith.mulf %547, %549 : vector<8x32xf32>
    %553 = arith.addf %551, %552 : vector<8x32xf32>
    %554 = math.tanh %553 : vector<8x32xf32>
    %555 = arith.mulf %550, %554 : vector<8x32xf32>
    %c0_148 = arith.constant 0 : index
    %c64_149 = arith.constant 64 : index
    %556 = vector.load %arg9[%c0_148, %c64_149] : memref<8x128xf32, #tpu.memory_space<vmem>>, vector<8x32xf32>
    tpu.vector_store %arg9[%c0_148, %c64_149], %555 {strides = array<i32>} : memref<8x128xf32, #tpu.memory_space<vmem>>, vector<8x32xf32>,
    %557 = vector.extract_strided_slice %522 {offsets = [0, 384], sizes = [8, 128], strides = [1, 1]} : vector<8x512xf32> to vector<8x128xf32>
    %558 = arith.negf %557 : vector<8x128xf32>
    %559 = math.exp %558 : vector<8x128xf32>
    %cst_150 = arith.constant 1.000000e+00 : f32
    %560 = vector.broadcast %cst_150 : f32 to vector<8x128xf32>
    %561 = arith.addf %560, %559 : vector<8x128xf32>
    %562 = arith.divf %560, %561 : vector<8x128xf32>
    %563 = math.tanh %557 : vector<8x128xf32>
    %564 = vector.extract_strided_slice %562 {offsets = [0, 0], sizes = [8, 32], strides = [1, 1]} : vector<8x128xf32> to vector<8x32xf32>
    %565 = vector.extract_strided_slice %562 {offsets = [0, 32], sizes = [8, 32], strides = [1, 1]} : vector<8x128xf32> to vector<8x32xf32>
    %566 = vector.extract_strided_slice %563 {offsets = [0, 64], sizes = [8, 32], strides = [1, 1]} : vector<8x128xf32> to vector<8x32xf32>
    %567 = vector.extract_strided_slice %562 {offsets = [0, 96], sizes = [8, 32], strides = [1, 1]} : vector<8x128xf32> to vector<8x32xf32>
    %568 = arith.mulf %565, %513 : vector<8x32xf32>
    %569 = arith.mulf %564, %566 : vector<8x32xf32>
    %570 = arith.addf %568, %569 : vector<8x32xf32>
    %571 = math.tanh %570 : vector<8x32xf32>
    %572 = arith.mulf %567, %571 : vector<8x32xf32>
    %c0_151 = arith.constant 0 : index
    %c96_152 = arith.constant 96 : index
    %573 = vector.load %arg9[%c0_151, %c96_152] : memref<8x128xf32, #tpu.memory_space<vmem>>, vector<8x32xf32>
    tpu.vector_store %arg9[%c0_151, %c96_152], %572 {strides = array<i32>} : memref<8x128xf32, #tpu.memory_space<vmem>>, vector<8x32xf32>,
    %c40 = arith.constant 40 : index
    %c0_153 = arith.constant 0 : index
    %574 = vector.load %arg11[%c40, %c0_153] : memref<64x32xf32, #tpu.memory_space<vmem>>, vector<8x32xf32>
    tpu.vector_store %arg11[%c40, %c0_153], %572 {strides = array<i32>} : memref<64x32xf32, #tpu.memory_space<vmem>>, vector<8x32xf32>,
    %c0_154 = arith.constant 0 : index
    %c0_155 = arith.constant 0 : index
    %575 = vector.load %arg9[%c0_154, %c0_155] : memref<8x128xf32, #tpu.memory_space<vmem>>, vector<8x128xf32>
    %c0_156 = arith.constant 0 : index
    %c0_157 = arith.constant 0 : index
    %576 = vector.load %arg2[%c0_156, %c0_157] : memref<128x512xf32, #tpu.memory_space<vmem>>, vector<128x512xf32>
    %cst_158 = arith.constant dense<0.000000e+00> : vector<8x512xf32>
    %577 = tpu.matmul %575, %576, %cst_158 {dimension_numbers = #tpu.dot_dimension_numbers<[1], [0], [0], [1], [0, 0, 1, 1], [], []>} : vector<8x128xf32>, vector<128x512xf32>, vector<8x512xf32> -> vector<8x512xf32>
    %578 = vector.broadcast %8 : vector<1x512xf32> to vector<8x512xf32>
    %579 = arith.addf %577, %578 : vector<8x512xf32>
    %580 = vector.extract_strided_slice %579 {offsets = [0, 256], sizes = [8, 128], strides = [1, 1]} : vector<8x512xf32> to vector<8x128xf32>
    %581 = arith.negf %580 : vector<8x128xf32>
    %582 = math.exp %581 : vector<8x128xf32>
    %cst_159 = arith.constant 1.000000e+00 : f32
    %583 = vector.broadcast %cst_159 : f32 to vector<8x128xf32>
    %584 = arith.addf %583, %582 : vector<8x128xf32>
    %585 = arith.divf %583, %584 : vector<8x128xf32>
    %586 = math.tanh %580 : vector<8x128xf32>
    %587 = vector.extract_strided_slice %585 {offsets = [0, 0], sizes = [8, 32], strides = [1, 1]} : vector<8x128xf32> to vector<8x32xf32>
    %588 = vector.extract_strided_slice %585 {offsets = [0, 32], sizes = [8, 32], strides = [1, 1]} : vector<8x128xf32> to vector<8x32xf32>
    %589 = vector.extract_strided_slice %586 {offsets = [0, 64], sizes = [8, 32], strides = [1, 1]} : vector<8x128xf32> to vector<8x32xf32>
    %590 = vector.extract_strided_slice %585 {offsets = [0, 96], sizes = [8, 32], strides = [1, 1]} : vector<8x128xf32> to vector<8x32xf32>
    %591 = arith.mulf %588, %553 : vector<8x32xf32>
    %592 = arith.mulf %587, %589 : vector<8x32xf32>
    %593 = arith.addf %591, %592 : vector<8x32xf32>
    %594 = math.tanh %593 : vector<8x32xf32>
    %595 = arith.mulf %590, %594 : vector<8x32xf32>
    %c0_160 = arith.constant 0 : index
    %c64_161 = arith.constant 64 : index
    %596 = vector.load %arg9[%c0_160, %c64_161] : memref<8x128xf32, #tpu.memory_space<vmem>>, vector<8x32xf32>
    tpu.vector_store %arg9[%c0_160, %c64_161], %595 {strides = array<i32>} : memref<8x128xf32, #tpu.memory_space<vmem>>, vector<8x32xf32>,
    %597 = vector.extract_strided_slice %579 {offsets = [0, 384], sizes = [8, 128], strides = [1, 1]} : vector<8x512xf32> to vector<8x128xf32>
    %598 = arith.negf %597 : vector<8x128xf32>
    %599 = math.exp %598 : vector<8x128xf32>
    %cst_162 = arith.constant 1.000000e+00 : f32
    %600 = vector.broadcast %cst_162 : f32 to vector<8x128xf32>
    %601 = arith.addf %600, %599 : vector<8x128xf32>
    %602 = arith.divf %600, %601 : vector<8x128xf32>
    %603 = math.tanh %597 : vector<8x128xf32>
    %604 = vector.extract_strided_slice %602 {offsets = [0, 0], sizes = [8, 32], strides = [1, 1]} : vector<8x128xf32> to vector<8x32xf32>
    %605 = vector.extract_strided_slice %602 {offsets = [0, 32], sizes = [8, 32], strides = [1, 1]} : vector<8x128xf32> to vector<8x32xf32>
    %606 = vector.extract_strided_slice %603 {offsets = [0, 64], sizes = [8, 32], strides = [1, 1]} : vector<8x128xf32> to vector<8x32xf32>
    %607 = vector.extract_strided_slice %602 {offsets = [0, 96], sizes = [8, 32], strides = [1, 1]} : vector<8x128xf32> to vector<8x32xf32>
    %608 = arith.mulf %605, %570 : vector<8x32xf32>
    %609 = arith.mulf %604, %606 : vector<8x32xf32>
    %610 = arith.addf %608, %609 : vector<8x32xf32>
    %611 = math.tanh %610 : vector<8x32xf32>
    %612 = arith.mulf %607, %611 : vector<8x32xf32>
    %c0_163 = arith.constant 0 : index
    %c96_164 = arith.constant 96 : index
    %613 = vector.load %arg9[%c0_163, %c96_164] : memref<8x128xf32, #tpu.memory_space<vmem>>, vector<8x32xf32>
    tpu.vector_store %arg9[%c0_163, %c96_164], %612 {strides = array<i32>} : memref<8x128xf32, #tpu.memory_space<vmem>>, vector<8x32xf32>,
    %c48 = arith.constant 48 : index
    %c0_165 = arith.constant 0 : index
    %614 = vector.load %arg11[%c48, %c0_165] : memref<64x32xf32, #tpu.memory_space<vmem>>, vector<8x32xf32>
    tpu.vector_store %arg11[%c48, %c0_165], %612 {strides = array<i32>} : memref<64x32xf32, #tpu.memory_space<vmem>>, vector<8x32xf32>,
    %c0_166 = arith.constant 0 : index
    %c0_167 = arith.constant 0 : index
    %615 = vector.load %arg9[%c0_166, %c0_167] : memref<8x128xf32, #tpu.memory_space<vmem>>, vector<8x128xf32>
    %c0_168 = arith.constant 0 : index
    %c0_169 = arith.constant 0 : index
    %616 = vector.load %arg2[%c0_168, %c0_169] : memref<128x512xf32, #tpu.memory_space<vmem>>, vector<128x512xf32>
    %cst_170 = arith.constant dense<0.000000e+00> : vector<8x512xf32>
    %617 = tpu.matmul %615, %616, %cst_170 {dimension_numbers = #tpu.dot_dimension_numbers<[1], [0], [0], [1], [0, 0, 1, 1], [], []>} : vector<8x128xf32>, vector<128x512xf32>, vector<8x512xf32> -> vector<8x512xf32>
    %618 = vector.broadcast %8 : vector<1x512xf32> to vector<8x512xf32>
    %619 = arith.addf %617, %618 : vector<8x512xf32>
    %620 = vector.extract_strided_slice %619 {offsets = [0, 384], sizes = [8, 128], strides = [1, 1]} : vector<8x512xf32> to vector<8x128xf32>
    %621 = arith.negf %620 : vector<8x128xf32>
    %622 = math.exp %621 : vector<8x128xf32>
    %cst_171 = arith.constant 1.000000e+00 : f32
    %623 = vector.broadcast %cst_171 : f32 to vector<8x128xf32>
    %624 = arith.addf %623, %622 : vector<8x128xf32>
    %625 = arith.divf %623, %624 : vector<8x128xf32>
    %626 = math.tanh %620 : vector<8x128xf32>
    %627 = vector.extract_strided_slice %625 {offsets = [0, 0], sizes = [8, 32], strides = [1, 1]} : vector<8x128xf32> to vector<8x32xf32>
    %628 = vector.extract_strided_slice %625 {offsets = [0, 32], sizes = [8, 32], strides = [1, 1]} : vector<8x128xf32> to vector<8x32xf32>
    %629 = vector.extract_strided_slice %626 {offsets = [0, 64], sizes = [8, 32], strides = [1, 1]} : vector<8x128xf32> to vector<8x32xf32>
    %630 = vector.extract_strided_slice %625 {offsets = [0, 96], sizes = [8, 32], strides = [1, 1]} : vector<8x128xf32> to vector<8x32xf32>
    %631 = arith.mulf %628, %610 : vector<8x32xf32>
    %632 = arith.mulf %627, %629 : vector<8x32xf32>
    %633 = arith.addf %631, %632 : vector<8x32xf32>
    %634 = math.tanh %633 : vector<8x32xf32>
    %635 = arith.mulf %630, %634 : vector<8x32xf32>
    %c0_172 = arith.constant 0 : index
    %c96_173 = arith.constant 96 : index
    %636 = vector.load %arg9[%c0_172, %c96_173] : memref<8x128xf32, #tpu.memory_space<vmem>>, vector<8x32xf32>
    tpu.vector_store %arg9[%c0_172, %c96_173], %635 {strides = array<i32>} : memref<8x128xf32, #tpu.memory_space<vmem>>, vector<8x32xf32>,
    %c56 = arith.constant 56 : index
    %c0_174 = arith.constant 0 : index
    %637 = vector.load %arg11[%c56, %c0_174] : memref<64x32xf32, #tpu.memory_space<vmem>>, vector<8x32xf32>
    tpu.vector_store %arg11[%c56, %c0_174], %635 {strides = array<i32>} : memref<64x32xf32, #tpu.memory_space<vmem>>, vector<8x32xf32>,
    %c0_175 = arith.constant 0 : index
    %c0_176 = arith.constant 0 : index
    %638 = vector.load %arg11[%c0_175, %c0_176] : memref<64x32xf32, #tpu.memory_space<vmem>>, vector<64x32xf32>
    %c0_177 = arith.constant 0 : index
    %c0_178 = arith.constant 0 : index
    %639 = vector.load %arg6[%c0_177, %c0_178] : memref<32x128xf32, #tpu.memory_space<vmem>>, vector<32x128xf32>
    %cst_179 = arith.constant dense<0.000000e+00> : vector<64x128xf32>
    %640 = tpu.matmul %638, %639, %cst_179 {dimension_numbers = #tpu.dot_dimension_numbers<[1], [0], [0], [1], [0, 0, 1, 1], [], []>} : vector<64x32xf32>, vector<32x128xf32>, vector<64x128xf32> -> vector<64x128xf32>
    %c0_180 = arith.constant 0 : index
    %c0_181 = arith.constant 0 : index
    %641 = vector.load %arg7[%c0_180, %c0_181] : memref<1x128xf32, #tpu.memory_space<vmem>>, vector<1x128xf32>
    %642 = vector.broadcast %641 : vector<1x128xf32> to vector<64x128xf32>
    %643 = arith.addf %640, %642 : vector<64x128xf32>
    %c0_182 = arith.constant 0 : index
    %c0_183 = arith.constant 0 : index
    %644 = vector.load %arg8[%c0_182, %c0_183] : memref<64x128xf32, #tpu.memory_space<vmem>>, vector<64x128xf32>
    tpu.vector_store %arg8[%c0_182, %c0_183], %643 {strides = array<i32>} : memref<64x128xf32, #tpu.memory_space<vmem>>, vector<64x128xf32>,
    %c0_184 = arith.constant 0 : index
    %c0_185 = arith.constant 0 : index
    %645 = vector.load %arg10[%c0_184, %c0_185] : memref<8x128xf32, #tpu.memory_space<vmem>>, vector<8x32xf32>
    tpu.vector_store %arg10[%c0_184, %c0_185], %462 {strides = array<i32>} : memref<8x128xf32, #tpu.memory_space<vmem>>, vector<8x32xf32>,
    %c0_186 = arith.constant 0 : index
    %c32_187 = arith.constant 32 : index
    %646 = vector.load %arg10[%c0_186, %c32_187] : memref<8x128xf32, #tpu.memory_space<vmem>>, vector<8x32xf32>
    tpu.vector_store %arg10[%c0_186, %c32_187], %536 {strides = array<i32>} : memref<8x128xf32, #tpu.memory_space<vmem>>, vector<8x32xf32>,
    %c0_188 = arith.constant 0 : index
    %c64_189 = arith.constant 64 : index
    %647 = vector.load %arg10[%c0_188, %c64_189] : memref<8x128xf32, #tpu.memory_space<vmem>>, vector<8x32xf32>
    tpu.vector_store %arg10[%c0_188, %c64_189], %593 {strides = array<i32>} : memref<8x128xf32, #tpu.memory_space<vmem>>, vector<8x32xf32>,
    %c0_190 = arith.constant 0 : index
    %c96_191 = arith.constant 96 : index
    %648 = vector.load %arg10[%c0_190, %c96_191] : memref<8x128xf32, #tpu.memory_space<vmem>>, vector<8x32xf32>
    tpu.vector_store %arg10[%c0_190, %c96_191], %633 {strides = array<i32>} : memref<8x128xf32, #tpu.memory_space<vmem>>, vector<8x32xf32>,
    return
  }
}

</mosaic_0001>

<bundles_post_ra>
// kernel: neural_lm_forward.1
= control target key start
LH: loop header
LB: loop body
LE: loop exit
PB: predicated region body
PF: predicated region fallthrough
CT: control target
= control target key end

     0   :  { %16 = vsyncpa [#allocation4], 0  ;;  %s3198_s16 = smov [#allocation3]   ;;  %s3199_s18 = smov 512   ;;  %s4514_s0 = inlined_call_operand.vmem [shape: s32[64,1], index: 0, kind: input, shape index: {}]   ;;  %s4515_s1 = inlined_call_operand.vmem [shape: f32[64,128], index: 1, kind: input, shape index: {}]   ;;  %s4516_s2 = inlined_call_operand.hbm [shape: f32[128,512], index: 2, kind: input, shape index: {}]   ;;  %s4517_s3 = inlined_call_operand.vmem [shape: f32[1,512], index: 3, kind: input, shape index: {}]   ;;  %s4518_s4 = inlined_call_operand.vmem [shape: f32[8,128], index: 4, kind: input, shape index: {}]   ;;  %s4519_s5 = inlined_call_operand.vmem [shape: f32[8,128], index: 5, kind: input, shape index: {}]   ;;  %s4520_s6 = inlined_call_operand.vmem [shape: f32[32,128], index: 6, kind: input, shape index: {}]   ;;  %s4521_s7 = inlined_call_operand.vmem [shape: f32[1,128], index: 7, kind: input, shape index: {}]   ;;  %s4522_s8 = inlined_call_operand.vmem [shape: f32[64,128], index: 8, kind: output, shape index: {0}]   ;;  %s4523_s9 = inlined_call_operand.vmem [shape: f32[8,128], index: 9, kind: output, shape index: {1}]   ;;  %s4524_s10 = inlined_call_operand.vmem [shape: f32[8,128], index: 10, kind: output, shape index: {2}]  }
   0x1   :  { %s25_s15 = sshll.u32 %s4516_s2, 4  ;;  %s27_s17 = sshll.u32 %s3198_s16, 4  ;;  %s26_s15 = int_to_ptr.hbm [resolvable:$true] %s25_s15  ;;  %s28_s17 = int_to_ptr.vmem [resolvable:$true] %s27_s17 }
   0x2   :  { %s3200_s19 = smov 32  }
   0x3   :  { %33 = dma.hbm_to_vmem [thread:$0]  %s26_s15, 8192, %s28_s17, [#allocation4], %s3199_s18, %s3199_s18, %s3200_s19  }
   0x4   :  { %3196 = dma.done.wait [#allocation4], 8192  }
   0x5   :  { %3197 = vsyncadd [#allocation4], 4294959104  ;;  %v3201_v0 = vmov 0   ;;  %v48_v1 = vld [vmem:[%s4514_s0] sm:$0xff]  ;;  %v113_v5 = vld [vmem:[%s4515_s1 + $0x38] sm:$0xff]  ;;  %v56_v28 = vlaneseq  ;;  %vm114_vm0 = vcmask 523264  }
   0x6   :  { %2911 = vset.pattern.permute.xlu0 %v3201_v0  ;;  %2912 = vset.pattern.permute.xlu2 %v3201_v0  ;;  %v3267_v2 = vld [vmem:[#allocation3 + $0x1e0] sm:$0xff]  ;;  %v112_v7 = vld [vmem:[%s4515_s1 + $0x30] sm:$0xff]  ;;  %v111_v8 = vld [vmem:[%s4515_s1 + $0x28] sm:$0xff]  ;;  %v3202_v31 = vmov 0.0   ;;  %s3203_s23 = smov 64   ;;  %vm276_vm7 = vcmask 261120  }
   0x7   :  { %2913 = vset.pattern.permute.xlu1 %v3201_v0  ;;  %v3269_v3 = vld [vmem:[#allocation3 + $0x1c0] sm:$0xff]  ;;  %59 = vperm.xlu0 %2911, %v48_v1   ;;  %v109_v12 = vld [vmem:[%s4515_s1 + $0x18] sm:$0xff]  ;;  %v108_v14 = vld [vmem:[%s4515_s1 + $0x10] sm:$0xff]  ;;  %v3352_v29 = vand.u32 127, %v56_v28  ;;  %s3204_s17 = smov 96  }
   0x8   :  { %210 = vmatpush.msra.mxu1 %v3267_v2  ;;  %v3272_v4 = vld [vmem:[#allocation3 + $0x1a0] sm:$0xff]  ;;  %311 = vmatpush.msra.mxu3 %v3267_v2  ;;  %v107_v16 = vld [vmem:[%s4515_s1 + $0x8] sm:$0xff] }
   0x9   :  { %v3279_v6 = vld [vmem:[#allocation3 + $0x180] sm:$0xff]  ;;  %147 = vmatpush.msra.mxu0 %v113_v5  ;;  %v49_v40 = vld [vmem:[%s4514_s0 + $0x8] sm:$0xff] }
   0xa   :  { %211 = vmatpush.msra.mxu1 %v3269_v3  ;;  %312 = vmatpush.msra.mxu3 %v3269_v3  ;;  %v3289_v9 = vld [vmem:[#allocation3 + $0x160] sm:$0xff]  ;;  %v310_v63 = vld [vmem:[#allocation3 + $0x1e8] sm:$0xff] }
   0xb   :  { %148 = vmatpush.msra.mxu0 %v112_v7  ;;  %v110_v10 = vld [vmem:[%s4515_s1 + $0x20] sm:$0xff]  ;;  %v308_v0 = vld [vmem:[#allocation3 + $0x1c8] sm:$0xff]  ;;  %506 = vmatpush.msra.mxu2 %v310_v63 }
   0xc   :  { %212 = vmatpush.msra.mxu1 %v3272_v4  ;;  %313 = vmatpush.msra.mxu3 %v3272_v4  ;;  %v3296_v11 = vld [vmem:[#allocation3 + $0x140] sm:$0xff]  ;;  %v306_v1 = vld [vmem:[#allocation3 + $0x1a8] sm:$0xff] }
   0xd   :  { %149 = vmatpush.msra.mxu0 %v111_v8  ;;  %v3303_v13 = vld [vmem:[#allocation3 + $0x120] sm:$0xff]  ;;  %507 = vmatpush.msra.mxu2 %v308_v0  ;;  %v298_v5 = vld [vmem:[#allocation3 + $0x128] sm:$0xff] }
   0xe   :  { %213 = vmatpush.msra.mxu1 %v3279_v6  ;;  %314 = vmatpush.msra.mxu3 %v3279_v6  ;;  %v3310_v15 = vld [vmem:[#allocation3 + $0x100] sm:$0xff] }
   0xf   :  { %150 = vmatpush.msra.mxu0 %v110_v10  ;;  %v192_v17 = vld [vmem:[#allocation3 + $0xe0] sm:$0xff]  ;;  %508 = vmatpush.msra.mxu2 %v306_v1  ;;  %v292_v10 = vld [vmem:[#allocation3 + $0xc8] sm:$0xff] }
  0x10   :  { %214 = vmatpush.msra.mxu1 %v3289_v9  ;;  %315 = vmatpush.msra.mxu3 %v3289_v9  ;;  %v191_v18 = vld [vmem:[#allocation3 + $0xc0] sm:$0xff] }
  0x11   :  { %151 = vmatpush.msra.mxu0 %v109_v12  ;;  %v190_v19 = vld [vmem:[#allocation3 + $0xa0] sm:$0xff]  ;;  %v288_v12 = vld [vmem:[#allocation3 + $0x88] sm:$0xff] }
  0x12   :  { %215 = vmatpush.msra.mxu1 %v3296_v11  ;;  %316 = vmatpush.msra.mxu3 %v3296_v11  ;;  %v189_v20 = vld [vmem:[#allocation3 + $0x80] sm:$0xff] }
  0x13   :  { %152 = vmatpush.msra.mxu0 %v108_v14  ;;  %v188_v21 = vld [vmem:[#allocation3 + $0x60] sm:$0xff]  ;;  %v284_v14 = vld [vmem:[#allocation3 + $0x48] sm:$0xff] }
  0x14   :  { %216 = vmatpush.msra.mxu1 %v3303_v13  ;;  %317 = vmatpush.msra.mxu3 %v3303_v13  ;;  %v187_v22 = vld [vmem:[#allocation3 + $0x40] sm:$0xff] }
  0x15   :  { %153 = vmatpush.msra.mxu0 %v107_v16  ;;  %v186_v23 = vld [vmem:[#allocation3 + $0x20] sm:$0xff]  ;;  %v280_v16 = vld [vmem:[#allocation3 + $0x8] sm:$0xff] }
  0x16   :  { %217 = vmatpush.msra.mxu1 %v3310_v15  ;;  %318 = vmatpush.msra.mxu3 %v3310_v15  ;;  %v185_v24 = vld [vmem:[#allocation3] sm:$0xff] }
  0x17   :  { %v181_v25 = vld [vmem:[%s4518_s4] sm:$0xff] }
  0x18   :  { %218 = vmatpush.msra.mxu1 %v192_v17  ;;  %319 = vmatpush.msra.mxu3 %v192_v17  ;;  %182 = vst [vmem:[%s4523_s9] sm:$0xff] %v181_v25  ;;  %v106_v26 = vld [vmem:[%s4515_s1] sm:$0xff] }
  0x19   :  { %154 = vmatpush.msra.mxu0 %v106_v26  ;;  %v3340_v27 = vld [vmem:[%s4519_s5] sm:$0xff] }
  0x1a   :  { %219 = vmatpush.msra.mxu1 %v191_v18  ;;  %320 = vmatpush.msra.mxu3 %v191_v18  ;;  %v3360_v33 = vld [vmem:[%s4517_s3] sm:$0xf] }
  0x1b   :  { %742 = vmatpush.msrb.mxu0 %v3267_v2  ;;  %252 = vrot.lane.b32.xlu1 %v3340_v27, %s3200_s19  ;;  %v3363_v34 = vperm.slane %v3360_v33, 0 }
  0x1c   :  { %220 = vmatpush.msra.mxu1 %v190_v19  ;;  %321 = vmatpush.msra.mxu3 %v190_v19 }
  0x1d   :  { %743 = vmatpush.msrb.mxu0 %v3269_v3 }
  0x1e   :  { %221 = vmatpush.msra.mxu1 %v189_v20  ;;  %322 = vmatpush.msra.mxu3 %v189_v20 }
  0x1f   :  { %744 = vmatpush.msrb.mxu0 %v3272_v4 }
  0x20   :  { %222 = vmatpush.msra.mxu1 %v188_v21  ;;  %323 = vmatpush.msra.mxu3 %v188_v21 }
  0x21   :  { %745 = vmatpush.msrb.mxu0 %v3279_v6 }
  0x22   :  { %223 = vmatpush.msra.mxu1 %v187_v22  ;;  %324 = vmatpush.msra.mxu3 %v187_v22 }
  0x23   :  { %746 = vmatpush.msrb.mxu0 %v3289_v9 }
  0x24   :  { %224 = vmatpush.msra.mxu1 %v186_v23  ;;  %325 = vmatpush.msra.mxu3 %v186_v23 }
  0x25   :  { %747 = vmatpush.msrb.mxu0 %v3296_v11 }
  0x26   :  { %225 = vmatpush.msra.mxu1 %v185_v24  ;;  %326 = vmatpush.msra.mxu3 %v185_v24 }
  0x27   :  { %226 = vmatmul.f32.vlgmr.msra.gmra.mxu1 %v181_v25  ;;  %748 = vmatpush.msrb.mxu0 %v3303_v13 }
  0x28   :  { %486 = vmatpush.msrb.mxu1 %v3267_v2  ;;  %331 = vmatpush.msrb.mxu3 %v310_v63  ;;  %v304_v2 = vld [vmem:[#allocation3 + $0x188] sm:$0xff] }
  0x29   :  { %749 = vmatpush.msrb.mxu0 %v3310_v15  ;;  %509 = vmatpush.msra.mxu2 %v304_v2 }
  0x2a   :  { %487 = vmatpush.msrb.mxu1 %v3269_v3  ;;  %332 = vmatpush.msrb.mxu3 %v308_v0  ;;  %v302_v3 = vld [vmem:[#allocation3 + $0x168] sm:$0xff] }
  0x2b   :  { %750 = vmatpush.msrb.mxu0 %v192_v17  ;;  %510 = vmatpush.msra.mxu2 %v302_v3 }
  0x2c   :  { %488 = vmatpush.msrb.mxu1 %v3272_v4  ;;  %333 = vmatpush.msrb.mxu3 %v306_v1  ;;  %v300_v4 = vld [vmem:[#allocation3 + $0x148] sm:$0xff] }
  0x2d   :  { %751 = vmatpush.msrb.mxu0 %v191_v18  ;;  %511 = vmatpush.msra.mxu2 %v300_v4 }
  0x2e   :  { %489 = vmatpush.msrb.mxu1 %v3279_v6  ;;  %334 = vmatpush.msrb.mxu3 %v304_v2  ;;  %v296_v6 = vld [vmem:[#allocation3 + $0x108] sm:$0xff] }
  0x2f   :  { %752 = vmatpush.msrb.mxu0 %v190_v19  ;;  %512 = vmatpush.msra.mxu2 %v298_v5 }
  0x30   :  { %490 = vmatpush.msrb.mxu1 %v3289_v9  ;;  %335 = vmatpush.msrb.mxu3 %v302_v3  ;;  %v294_v9 = vld [vmem:[#allocation3 + $0xe8] sm:$0xff] }
  0x31   :  { %513 = vmatpush.msra.mxu2 %v296_v6 }
  0x32   :  { %491 = vmatpush.msrb.mxu1 %v3296_v11  ;;  %336 = vmatpush.msrb.mxu3 %v300_v4  ;;  %v290_v11 = vld [vmem:[#allocation3 + $0xa8] sm:$0xff] }
  0x33   :  { %514 = vmatpush.msra.mxu2 %v294_v9 }
  0x34   :  { %492 = vmatpush.msrb.mxu1 %v3303_v13  ;;  %337 = vmatpush.msrb.mxu3 %v298_v5  ;;  %v286_v13 = vld [vmem:[#allocation3 + $0x68] sm:$0xff] }
  0x35   :  { %515 = vmatpush.msra.mxu2 %v292_v10 }
  0x36   :  { %493 = vmatpush.msrb.mxu1 %v3310_v15  ;;  %338 = vmatpush.msrb.mxu3 %v296_v6  ;;  %v282_v15 = vld [vmem:[#allocation3 + $0x28] sm:$0xff] }
  0x37   :  { %516 = vmatpush.msra.mxu2 %v290_v11 }
  0x38   :  { %494 = vmatpush.msrb.mxu1 %v192_v17  ;;  %339 = vmatpush.msrb.mxu3 %v294_v9 }
  0x39   :  { %517 = vmatpush.msra.mxu2 %v288_v12 }
  0x3a   :  { %495 = vmatpush.msrb.mxu1 %v191_v18  ;;  %340 = vmatpush.msrb.mxu3 %v292_v10 }
  0x3b   :  { %518 = vmatpush.msra.mxu2 %v286_v13 }
  0x3c   :  { %496 = vmatpush.msrb.mxu1 %v190_v19  ;;  %341 = vmatpush.msrb.mxu3 %v290_v11 }
  0x3d   :  { %519 = vmatpush.msra.mxu2 %v284_v14 }
  0x3e   :  { %497 = vmatpush.msrb.mxu1 %v189_v20  ;;  %342 = vmatpush.msrb.mxu3 %v288_v12 }
  0x3f   :  { %520 = vmatpush.msra.mxu2 %v282_v15 }
  0x40   :  { %498 = vmatpush.msrb.mxu1 %v188_v21  ;;  %343 = vmatpush.msrb.mxu3 %v286_v13 }
  0x41   :  { %521 = vmatpush.msra.mxu2 %v280_v16 }
  0x42   :  { %499 = vmatpush.msrb.mxu1 %v187_v22  ;;  %344 = vmatpush.msrb.mxu3 %v284_v14 }
  0x44   :  { %500 = vmatpush.msrb.mxu1 %v186_v23  ;;  %345 = vmatpush.msrb.mxu3 %v282_v15  ;;  %v3388_v23 = vperm.slane %v3360_v33, 1 }
  0x46   :  { %501 = vmatpush.msrb.mxu1 %v185_v24  ;;  %346 = vmatpush.msrb.mxu3 %v280_v16 }
  0x48   :  { %762 = vmatpush.msra.mxu1 %v310_v63 }
  0x4a   :  { %763 = vmatpush.msra.mxu1 %v308_v0 }
  0x4c   :  { %764 = vmatpush.msra.mxu1 %v306_v1 }
  0x4e   :  { %765 = vmatpush.msra.mxu1 %v304_v2 }
  0x50   :  { %766 = vmatpush.msra.mxu1 %v302_v3 }
  0x52   :  { %767 = vmatpush.msra.mxu1 %v300_v4  ;;  %v50_v4 = vld [vmem:[%s4514_s0 + $0x10] sm:$0xff] }
  0x54   :  { %768 = vmatpush.msra.mxu1 %v298_v5 }
  0x56   :  { %769 = vmatpush.msra.mxu1 %v296_v6 }
  0x58   :  { %770 = vmatpush.msra.mxu1 %v294_v9  ;;  %v485_v9 = vld [vmem:[#allocation3 + $0x1f0] sm:$0xff] }
  0x59   :  { %782 = vmatpush.msrb.mxu2 %v485_v9 }
  0x5a   :  { %771 = vmatpush.msra.mxu1 %v292_v10  ;;  %v482_v10 = vld [vmem:[#allocation3 + $0x1d0] sm:$0xff] }
  0x5b   :  { %783 = vmatpush.msrb.mxu2 %v482_v10 }
  0x5c   :  { %772 = vmatpush.msra.mxu1 %v290_v11 }
  0x5e   :  { %773 = vmatpush.msra.mxu1 %v288_v12 }
  0x60   :  { %774 = vmatpush.msra.mxu1 %v286_v13 }
  0x62   :  { %775 = vmatpush.msra.mxu1 %v284_v14 }
  0x64   :  { %776 = vmatpush.msra.mxu1 %v282_v15 }
  0x66   :  { %777 = vmatpush.msra.mxu1 %v280_v16  ;;  %v479_v16 = vld [vmem:[#allocation3 + $0x1b0] sm:$0xff] }
  0x67   :  { %784 = vmatpush.msrb.mxu2 %v479_v16 }
  0x79   :  { %v60_v30 = vpop.permute.xlu0 %59 }
  0x7a   :  { %vm82_vm1 = vcmp.eq.s32.totalorder %v60_v30, %v3352_v29 }
  0x7b   :  { %v2848_v32 = vsel %vm82_vm1, 1.0, %v3202_v31 }
  0x7c   :  { %2856 = vmatmul.msk.f32.vlgmr.msra.gmra.mxu0 %vm114_vm0, %v2848_v32 }
  0x8d   :  { %v253_v58 = vpop.permute.xlu1 %252 }
  0xa4   :  { %v227_v35 = vpop.f32.mrf.mxu1 }
  0xa5   :  { %v228_v36 = vadd.f32 %v227_v35, %v3363_v34 }
  0xf9   :  { %v156_v37 = vpop.f32.mrf.mxu0 }
  0xfa   :  { %v230_v38 = vadd.f32 %v228_v36, %v156_v37 }
  0xfc   :  { %2915 = vtanh.f32 %v230_v38  ;;  %v2864_v41 = vmul.f32 -1.442695, %v230_v38 }
  0xfe   :  { %2917 = vpow2.f32 %v2864_v41 }
 0x102   :  { %v2916_v39 = vpop.eup %2915 }
 0x103   :  { %257 = vrot.lane.b32.xlu0 %v2916_v39, %s3203_s23 }
 0x104   :  { %v2918_v42 = vpop.eup %2917 }
 0x105   :  { %v234_v43 = vadd.f32 1.0, %v2918_v42 }
 0x107   :  { %2919 = vrcp.f32 %v234_v43  ;;  %v246_v49 = vand.u32 2147483648, %v234_v43  ;;  %vm240_vm3 = vweird.f32 %v234_v43  ;;  %v244_v50 = vand.u32 2147483647, %v234_v43 }
 0x109   :  { %v247_v52 = vor.u32 1.1754944e-38, %v246_v49  ;;  %vm245_vm5 = vcmp.eq.f32.partialorder %v244_v50, 8.507059e+37 }
 0x10b   :  { %62 = vperm.xlu0 %2911, %v49_v40  }
 0x10d   :  { %v2920_v44 = vpop.eup %2919 }
 0x10e   :  { %v236_v45 = vmul.f32 %v2920_v44, %v234_v43  ;;  %vm241_vm2 = vweird.f32 %v2920_v44 }
 0x10f   :  { %vm242_vm4 = vmor %vm240_vm3, %vm241_vm2  ;;  %vm435_vm2 = vcmask 523520  }
 0x110   :  { %v237_v46 = vsub.f32 1.0, %v236_v45 }
 0x112   :  { %v238_v47 = vmul.f32 %v2920_v44, %v237_v46 }
 0x114   :  { %v239_v48 = vadd.f32 %v2920_v44, %v238_v47 }
 0x116   :  { %v243_v51 = vsel %vm242_vm4, %v2920_v44, %v239_v48 }
 0x117   :  { %v248_v53 = vsel %vm245_vm5, %v247_v52, %v243_v51 }
 0x118   :  { %v255_v59 = vmul.f32 %v253_v58, %v248_v53 }
 0x175   :  { %v258_v54 = vpop.permute.xlu0 %257 }
 0x176   :  { %v260_v55 = vmul.f32 %v258_v54, %v248_v53 }
 0x178   :  { %262 = vrot.lane.b32.xlu1 %v260_v55, %s3200_s19 }
 0x17d   :  { %v63_v56 = vpop.permute.xlu0 %62 }
 0x17e   :  { %vm83_vm6 = vcmp.eq.s32.totalorder %v63_v56, %v3352_v29 }
 0x17f   :  { %v2849_v57 = vsel %vm83_vm6, 1.0, %v3202_v31 }
 0x180   :  { %2857 = vmatmul.msk.f32.gmra.mxu0 %vm114_vm0, %v2849_v57 }
 0x1ea   :  { %v263_v60 = vpop.permute.xlu1 %262 }
 0x1eb   :  { %v3374_v61 = vadd.f32 %v263_v60, %v255_v59 }
 0x1ed   :  { %2921 = vtanh.f32 %v3374_v61 }
 0x1f3   :  { %v2922_v62 = vpop.eup %2921 }
 0x1f4   :  { %268 = vrot.lane.b32.xlu2 %v2922_v62, %s3203_s23 }
 0x1fd   :  { %v159_v21 = vpop.f32.mrf.mxu0 }
 0x24e   :  { %v269_v7 = vpop.permute.xlu2 %268 }
 0x24f   :  { %v271_v8 = vmul.f32 %v269_v7, %v248_v53 }
 0x251   :  { %273 = vrot.lane.b32.xlu2 %v271_v8, %s3200_s19 }
 0x2ab   :  { %v274_v17 = vpop.permute.xlu2 %273 }
 0x2ac   :  { %277 = vst.msk [vmem:[%s4523_s9] sm:$0xff] %vm276_vm7, %v274_v17  ;;  %v476_v17 = vld [vmem:[#allocation3 + $0x190] sm:$0xff] }
 0x2ad   :  { %785 = vmatpush.msrb.mxu2 %v476_v17 }
 0x2b3   :  { %v278_v18 = vld [vmem:[%s4523_s9] sm:$0xff] }
 0x2b4   :  { %327 = vmatmul.f32.vlgmr.msra.gmra.mxu3 %v278_v18 }
 0x2b5   :  { %526 = vmatpush.msra.mxu3 %v485_v9 }
 0x2b7   :  { %527 = vmatpush.msra.mxu3 %v482_v10 }
 0x2b9   :  { %528 = vmatpush.msra.mxu3 %v479_v16 }
 0x2bb   :  { %529 = vmatpush.msra.mxu3 %v476_v17 }
 0x2bc   :  { %347 = vmatmul.f32.vlgmr.msrb.gmra.mxu3 %v278_v18  ;;  %v473_v18 = vld [vmem:[#allocation3 + $0x170] sm:$0xff] }
 0x2bd   :  { %530 = vmatpush.msra.mxu3 %v473_v18  ;;  %786 = vmatpush.msrb.mxu2 %v473_v18 }
 0x337   :  { %v328_v19 = vpop.f32.mrf.mxu3 }
 0x338   :  { %v329_v20 = vadd.f32 %v328_v19, %v3363_v34  ;;  %v470_v19 = vld [vmem:[#allocation3 + $0x150] sm:$0xff] }
 0x339   :  { %531 = vmatpush.msra.mxu3 %v470_v19  ;;  %787 = vmatpush.msrb.mxu2 %v470_v19 }
 0x33a   :  { %v351_v22 = vadd.f32 %v329_v20, %v159_v21  ;;  %v467_v20 = vld [vmem:[#allocation3 + $0x130] sm:$0xff] }
 0x33b   :  { %v464_v21 = vld [vmem:[#allocation3 + $0x110] sm:$0xff]  ;;  %532 = vmatpush.msra.mxu3 %v467_v20  ;;  %788 = vmatpush.msrb.mxu2 %v467_v20 }
 0x33c   :  { %2923 = vtanh.f32 %v351_v22  ;;  %v2865_v36 = vmul.f32 -1.442695, %v351_v22  ;;  %v461_v22 = vld [vmem:[#allocation3 + $0xf0] sm:$0xff] }
 0x33d   :  { %533 = vmatpush.msra.mxu3 %v464_v21  ;;  %789 = vmatpush.msrb.mxu2 %v464_v21 }
 0x33f   :  { %v348_v24 = vpop.f32.mrf.mxu3  ;;  %534 = vmatpush.msra.mxu3 %v461_v22  ;;  %790 = vmatpush.msrb.mxu2 %v461_v22 }
 0x340   :  { %v349_v25 = vadd.f32 %v348_v24, %v3388_v23  ;;  %v458_v24 = vld [vmem:[#allocation3 + $0xd0] sm:$0xff] }
 0x341   :  { %535 = vmatpush.msra.mxu3 %v458_v24  ;;  %791 = vmatpush.msrb.mxu2 %v458_v24 }
 0x342   :  { %v2924_v26 = vpop.eup %2923  ;;  %2925 = vtanh.f32 %v349_v25  ;;  %v2866_v30 = vmul.f32 -1.442695, %v349_v25  ;;  %v455_v25 = vld [vmem:[#allocation3 + $0xb0] sm:$0xff] }
 0x343   :  { %374 = vrot.lane.b32.xlu1 %v2924_v26, %s3203_s23  ;;  %536 = vmatpush.msra.mxu3 %v455_v25  ;;  %v452_v26 = vld [vmem:[#allocation3 + $0x90] sm:$0xff] }
 0x344   :  { %2927 = vpow2.f32 %v2866_v30  ;;  %792 = vmatpush.msrb.mxu2 %v455_v25  ;;  %v446_v30 = vld [vmem:[#allocation3 + $0x50] sm:$0xff] }
 0x345   :  { %537 = vmatpush.msra.mxu3 %v452_v26 }
 0x346   :  { %793 = vmatpush.msrb.mxu2 %v452_v26 }
 0x348   :  { %v2926_v28 = vpop.eup %2925 }
 0x349   :  { %416 = vrot.lane.b32.xlu2 %v2926_v28, %s3203_s23  ;;  %v449_v28 = vld [vmem:[#allocation3 + $0x70] sm:$0xff] }
 0x34a   :  { %v2928_v32 = vpop.eup %2927  ;;  %538 = vmatpush.msra.mxu3 %v449_v28  ;;  %794 = vmatpush.msrb.mxu2 %v449_v28 }
 0x34b   :  { %v397_v35 = vadd.f32 1.0, %v2928_v32  ;;  %v443_v32 = vld [vmem:[#allocation3 + $0x30] sm:$0xff] }
 0x34c   :  { %539 = vmatpush.msra.mxu3 %v446_v30  ;;  %795 = vmatpush.msrb.mxu2 %v446_v30 }
 0x34d   :  { %2929 = vrcp.f32 %v397_v35  ;;  %v409_v44 = vand.u32 2147483648, %v397_v35  ;;  %vm403_vm9 = vweird.f32 %v397_v35  ;;  %v407_v45 = vand.u32 2147483647, %v397_v35 }
 0x34e   :  { %2931 = vpow2.f32 %v2865_v36  ;;  %540 = vmatpush.msra.mxu3 %v443_v32  ;;  %796 = vmatpush.msrb.mxu2 %v443_v32 }
 0x34f   :  { %v410_v48 = vor.u32 1.1754944e-38, %v409_v44  ;;  %vm408_vm11 = vcmp.eq.f32.partialorder %v407_v45, 8.507059e+37 }
 0x353   :  { %v2930_v37 = vpop.eup %2929 }
 0x354   :  { %v399_v38 = vmul.f32 %v2930_v37, %v397_v35  ;;  %v2932_v39 = vpop.eup %2931  ;;  %vm404_vm8 = vweird.f32 %v2930_v37  ;;  %v440_v35 = vld [vmem:[#allocation3 + $0x10] sm:$0xff] }
 0x355   :  { %v355_v41 = vadd.f32 1.0, %v2932_v39  ;;  %vm405_vm10 = vmor %vm403_vm9, %vm404_vm8  ;;  %541 = vmatpush.msra.mxu3 %v440_v35  ;;  %797 = vmatpush.msrb.mxu2 %v440_v35 }
 0x356   :  { %v400_v40 = vsub.f32 1.0, %v399_v38 }
 0x357   :  { %2933 = vrcp.f32 %v355_v41  ;;  %v367_v56 = vand.u32 2147483648, %v355_v41  ;;  %vm361_vm13 = vweird.f32 %v355_v41  ;;  %v365_v57 = vand.u32 2147483647, %v355_v41 }
 0x358   :  { %v401_v42 = vmul.f32 %v2930_v37, %v400_v40 }
 0x359   :  { %v368_v59 = vor.u32 1.1754944e-38, %v367_v56  ;;  %vm366_vm15 = vcmp.eq.f32.partialorder %v365_v57, 8.507059e+37 }
 0x35a   :  { %v402_v43 = vadd.f32 %v2930_v37, %v401_v42 }
 0x35c   :  { %v406_v47 = vsel %vm405_vm10, %v2930_v37, %v402_v43  ;;  %v3426_v43 = vperm.slane %v3360_v33, 2 }
 0x35d   :  { %v2934_v46 = vpop.eup %2933  ;;  %v411_v51 = vsel %vm408_vm11, %v410_v48, %v406_v47 }
 0x35e   :  { %v357_v49 = vmul.f32 %v2934_v46, %v355_v41  ;;  %vm362_vm12 = vweird.f32 %v2934_v46  ;;  %v414_v0 = vmul.f32 %v411_v51, %v3340_v27 }
 0x35f   :  { %vm363_vm14 = vmor %vm361_vm13, %vm362_vm12 }
 0x360   :  { %v358_v53 = vsub.f32 1.0, %v357_v49 }
 0x362   :  { %v359_v54 = vmul.f32 %v2934_v46, %v358_v53 }
 0x364   :  { %v360_v55 = vadd.f32 %v2934_v46, %v359_v54 }
 0x366   :  { %v364_v58 = vsel %vm363_vm14, %v2934_v46, %v360_v55 }
 0x367   :  { %v369_v62 = vsel %vm366_vm15, %v368_v59, %v364_v58 }
 0x368   :  { %v372_v5 = vmul.f32 %v369_v62, %v3374_v61 }
 0x3a3   :  { %v417_v50 = vpop.permute.xlu2 %416 }
 0x3a4   :  { %v419_v52 = vmul.f32 %v417_v50, %v411_v51 }
 0x3a6   :  { %421 = vrot.lane.b32.xlu1 %v419_v52, %s3200_s19 }
 0x3b5   :  { %v375_v60 = vpop.permute.xlu1 %374 }
 0x3b6   :  { %v377_v63 = vmul.f32 %v375_v60, %v369_v62 }
 0x3b8   :  { %379 = vrot.lane.b32.xlu0 %v377_v63, %s3200_s19 }
 0x418   :  { %v422_v1 = vpop.permute.xlu1 %421 }
 0x419   :  { %v3396_v2 = vadd.f32 %v422_v1, %v414_v0 }
 0x41b   :  { %2935 = vtanh.f32 %v3396_v2 }
 0x421   :  { %v2936_v3 = vpop.eup %2935 }
 0x422   :  { %427 = vrot.lane.b32.xlu0 %v2936_v3, %s3203_s23 }
 0x42a   :  { %65 = vperm.xlu0 %2911, %v50_v4   ;;  %v380_v6 = vpop.permute.xlu0 %379 }
 0x42b   :  { %v3404_v7 = vadd.f32 %v380_v6, %v372_v5 }
 0x42d   :  { %2937 = vtanh.f32 %v3404_v7 }
 0x433   :  { %v2938_v8 = vpop.eup %2937 }
 0x434   :  { %385 = vrot.lane.b32.xlu2 %v2938_v8, %s3203_s23 }
 0x48e   :  { %v386_v11 = vpop.permute.xlu2 %385 }
 0x48f   :  { %v388_v12 = vmul.f32 %v386_v11, %v369_v62 }
 0x491   :  { %390 = vrot.lane.b32.xlu1 %v388_v12, %s3200_s19 }
 0x494   :  { %v428_v61 = vpop.permute.xlu0 %427 }
 0x495   :  { %v430_v13 = vmul.f32 %v428_v61, %v411_v51 }
 0x497   :  { %432 = vrot.lane.b32.xlu2 %v430_v13, %s3203_s23 }
 0x49c   :  { %v66_v14 = vpop.permute.xlu0 %65 }
 0x49d   :  { %vm84_vm1 = vcmp.eq.s32.totalorder %v66_v14, %v3352_v29 }
 0x49e   :  { %v2850_v15 = vsel %vm84_vm1, 1.0, %v3202_v31 }
 0x49f   :  { %2858 = vmatmul.msk.f32.gmra.mxu0 %vm114_vm0, %v2850_v15 }
 0x4f1   :  { %v433_v37 = vpop.permute.xlu2 %432 }
 0x503   :  { %v391_v36 = vpop.permute.xlu1 %390 }
 0x504   :  { %393 = vst.msk [vmem:[%s4523_s9] sm:$0xff] %vm276_vm7, %v391_v36 }
 0x505   :  { %436 = vst.msk [vmem:[%s4523_s9] sm:$0xff] %vm435_vm2, %v433_v37 }
 0x50c   :  { %v437_v38 = vld [vmem:[%s4523_s9] sm:$0xff] }
 0x50d   :  { %502 = vmatmul.f32.vlgmr.msrb.gmra.mxu1 %v437_v38  ;;  %522 = vmatmul.f32.vlgmr.msra.gmra.mxu2 %v437_v38 }
 0x50e   :  { %542 = vmatmul.f32.vlgmr.msra.gmra.mxu3 %v437_v38 }
 0x51c   :  { %v162_v41 = vpop.f32.mrf.mxu0 }
 0x58a   :  { %v503_v39 = vpop.f32.mrf.mxu1 }
 0x58b   :  { %v504_v40 = vadd.f32 %v503_v39, %v3363_v34 }
 0x58d   :  { %v546_v42 = vadd.f32 %v504_v40, %v162_v41 }
 0x58f   :  { %2939 = vtanh.f32 %v546_v42  ;;  %v2867_v54 = vmul.f32 -1.442695, %v546_v42 }
 0x590   :  { %v523_v44 = vpop.f32.mrf.mxu2 }
 0x591   :  { %v524_v45 = vadd.f32 %v523_v44, %v3388_v23  ;;  %v543_v46 = vpop.f32.mrf.mxu3  ;;  %v52_v44 = vld [vmem:[%s4514_s0 + $0x20] sm:$0xff] }
 0x592   :  { %v544_v47 = vadd.f32 %v543_v46, %v3426_v43 }
 0x593   :  { %2941 = vtanh.f32 %v524_v45  ;;  %v2868_v51 = vmul.f32 -1.442695, %v524_v45 }
 0x594   :  { %2943 = vtanh.f32 %v544_v47  ;;  %v2869_v57 = vmul.f32 -1.442695, %v544_v47 }
 0x595   :  { %v2940_v48 = vpop.eup %2939  ;;  %2945 = vpow2.f32 %v2868_v51 }
 0x596   :  { %569 = vrot.lane.b32.xlu1 %v2940_v48, %s3203_s23 }
 0x599   :  { %v2942_v49 = vpop.eup %2941 }
 0x59a   :  { %v2944_v50 = vpop.eup %2943  ;;  %611 = vrot.lane.b32.xlu2 %v2942_v49, %s3203_s23 }
 0x59b   :  { %656 = vrot.lane.b32.xlu0 %v2944_v50, %s3203_s23  ;;  %v2946_v52 = vpop.eup %2945 }
 0x59c   :  { %v592_v53 = vadd.f32 1.0, %v2946_v52  ;;  %v51_v52 = vld [vmem:[%s4514_s0 + $0x18] sm:$0xff] }
 0x59e   :  { %2947 = vrcp.f32 %v592_v53  ;;  %vm598_vm4 = vweird.f32 %v592_v53  ;;  %v602_v1 = vand.u32 2147483647, %v592_v53 }
 0x59f   :  { %2949 = vpow2.f32 %v2867_v54  ;;  %v54_v54 = vld [vmem:[%s4514_s0 + $0x30] sm:$0xff] }
 0x5a0   :  { %2951 = vpow2.f32 %v2869_v57  ;;  %vm603_vm6 = vcmp.eq.f32.partialorder %v602_v1, 8.507059e+37 }
 0x5a2   :  { %651 = vrot.lane.b32.xlu2 %v3340_v27, %s3204_s17  ;;  %v604_v27 = vand.u32 2147483648, %v592_v53 }
 0x5a4   :  { %v2948_v55 = vpop.eup %2947  ;;  %v605_v6 = vor.u32 1.1754944e-38, %v604_v27 }
 0x5a5   :  { %v594_v56 = vmul.f32 %v2948_v55, %v592_v53  ;;  %v2950_v58 = vpop.eup %2949  ;;  %vm599_vm3 = vweird.f32 %v2948_v55  ;;  %v53_v53 = vld [vmem:[%s4514_s0 + $0x28] sm:$0xff] }
 0x5a6   :  { %v550_v60 = vadd.f32 1.0, %v2950_v58  ;;  %v2952_v63 = vpop.eup %2951  ;;  %vm600_vm5 = vmor %vm598_vm4, %vm599_vm3 }
 0x5a7   :  { %v595_v59 = vsub.f32 1.0, %v594_v56  ;;  %v634_v3 = vadd.f32 1.0, %v2952_v63 }
 0x5a8   :  { %2953 = vrcp.f32 %v550_v60  ;;  %v562_v17 = vand.u32 2147483648, %v550_v60  ;;  %vm556_vm9 = vweird.f32 %v550_v60  ;;  %v560_v18 = vand.u32 2147483647, %v550_v60 }
 0x5a9   :  { %v596_v62 = vmul.f32 %v2948_v55, %v595_v59  ;;  %2955 = vrcp.f32 %v634_v3  ;;  %v646_v28 = vand.u32 2147483648, %v634_v3  ;;  %vm640_vm13 = vweird.f32 %v634_v3 }
 0x5aa   :  { %v563_v21 = vor.u32 1.1754944e-38, %v562_v17  ;;  %vm561_vm11 = vcmp.eq.f32.partialorder %v560_v18, 8.507059e+37  ;;  %v644_v30 = vand.u32 2147483647, %v634_v3  ;;  %v709_v17 = vld [vmem:[#allocation3 + $0xf8] sm:$0xff] }
 0x5ab   :  { %v597_v0 = vadd.f32 %v2948_v55, %v596_v62  ;;  %v647_v35 = vor.u32 1.1754944e-38, %v646_v28  ;;  %v705_v18 = vld [vmem:[#allocation3 + $0xd8] sm:$0xff]  ;;  %v3506_v28 = vld [vmem:[#allocation3] sm:$0xff] }
 0x5ac   :  { %vm645_vm15 = vcmp.eq.f32.partialorder %v644_v30, 8.507059e+37  ;;  %v685_v30 = vld [vmem:[#allocation3 + $0x38] sm:$0xff] }
 0x5ad   :  { %v601_v4 = vsel %vm600_vm5, %v2948_v55, %v597_v0  ;;  %v55_v55 = vld [vmem:[%s4514_s0 + $0x38] sm:$0xff] }
 0x5ae   :  { %v2954_v5 = vpop.eup %2953  ;;  %v3435_v9 = vsel %vm603_vm6, %v605_v6, %v601_v4 }
 0x5af   :  { %v552_v11 = vmul.f32 %v2954_v5, %v550_v60  ;;  %v2956_v61 = vpop.eup %2955  ;;  %vm557_vm8 = vweird.f32 %v2954_v5  ;;  %v609_v39 = vmul.f32 %v3435_v9, %v3396_v2 }
 0x5b0   :  { %v636_v13 = vmul.f32 %v2956_v61, %v634_v3  ;;  %vm558_vm10 = vmor %vm556_vm9, %vm557_vm8  ;;  %vm641_vm12 = vweird.f32 %v2956_v61 }
 0x5b1   :  { %v553_v12 = vsub.f32 1.0, %v552_v11  ;;  %vm642_vm14 = vmor %vm640_vm13, %vm641_vm12  ;;  %v737_v11 = vld [vmem:[#allocation3 + $0x1d8] sm:$0xff] }
 0x5b2   :  { %v637_v15 = vsub.f32 1.0, %v636_v13  ;;  %v725_v13 = vld [vmem:[#allocation3 + $0x178] sm:$0xff] }
 0x5b3   :  { %v554_v14 = vmul.f32 %v2954_v5, %v553_v12  ;;  %v733_v12 = vld [vmem:[#allocation3 + $0x1b8] sm:$0xff] }
 0x5b4   :  { %v638_v19 = vmul.f32 %v2956_v61, %v637_v15  ;;  %v3490_v15 = vld [vmem:[#allocation3 + $0x80] sm:$0xff] }
 0x5b5   :  { %v555_v16 = vadd.f32 %v2954_v5, %v554_v14  ;;  %v721_v14 = vld [vmem:[#allocation3 + $0x158] sm:$0xff]  ;;  %753 = vmatpush.msrb.mxu0 %v3490_v15 }
 0x5b6   :  { %v639_v25 = vadd.f32 %v2956_v61, %v638_v19  ;;  %v3496_v19 = vld [vmem:[#allocation3 + $0x40] sm:$0xff] }
 0x5b7   :  { %v559_v20 = vsel %vm558_vm10, %v2954_v5, %v555_v16  ;;  %v717_v16 = vld [vmem:[#allocation3 + $0x138] sm:$0xff] }
 0x5b8   :  { %v564_v24 = vsel %vm561_vm11, %v563_v21, %v559_v20  ;;  %v643_v32 = vsel %vm642_vm14, %v2956_v61, %v639_v25  ;;  %v729_v61 = vld [vmem:[#allocation3 + $0x198] sm:$0xff] }
 0x5b9   :  { %v648_v37 = vsel %vm645_vm15, %v647_v35, %v643_v32  ;;  %v567_v45 = vmul.f32 %v564_v24, %v3404_v7  ;;  %v701_v20 = vld [vmem:[#allocation3 + $0xb8] sm:$0xff] }
 0x5ba   :  { %v697_v21 = vld [vmem:[#allocation3 + $0x98] sm:$0xff] }
 0x5bb   :  { %v693_v25 = vld [vmem:[#allocation3 + $0x78] sm:$0xff] }
 0x5bc   :  { %v681_v35 = vld [vmem:[#allocation3 + $0x18] sm:$0xff] }
 0x5f4   :  { %v612_v8 = vpop.permute.xlu2 %611 }
 0x5f5   :  { %v614_v10 = vmul.f32 %v612_v8, %v3435_v9 }
 0x5f7   :  { %616 = vrot.lane.b32.xlu0 %v614_v10, %s3200_s19  ;;  %v741_v10 = vld [vmem:[#allocation3 + $0x1f8] sm:$0xff] }
 0x5f8   :  { %802 = vmatpush.msrb.mxu3 %v741_v10 }
 0x5fa   :  { %803 = vmatpush.msrb.mxu3 %v737_v11 }
 0x5fc   :  { %v652_v2 = vpop.permute.xlu2 %651  ;;  %804 = vmatpush.msrb.mxu3 %v733_v12 }
 0x5fd   :  { %v654_v48 = vmul.f32 %v652_v2, %v648_v37 }
 0x5fe   :  { %805 = vmatpush.msrb.mxu3 %v729_v61 }
 0x600   :  { %806 = vmatpush.msrb.mxu3 %v725_v13 }
 0x602   :  { %807 = vmatpush.msrb.mxu3 %v721_v14 }
 0x604   :  { %808 = vmatpush.msrb.mxu3 %v717_v16 }
 0x608   :  { %v570_v22 = vpop.permute.xlu1 %569 }
 0x609   :  { %v572_v26 = vmul.f32 %v570_v22, %v564_v24 }
 0x60b   :  { %574 = vrot.lane.b32.xlu1 %v572_v26, %s3200_s19  ;;  %v689_v26 = vld [vmem:[#allocation3 + $0x58] sm:$0xff] }
 0x60d   :  { %v657_v36 = vpop.permute.xlu0 %656 }
 0x60e   :  { %v659_v38 = vmul.f32 %v657_v36, %v648_v37 }
 0x613   :  { %661 = vrot.lane.b32.xlu1 %v659_v38, %s3200_s19 }
 0x669   :  { %v617_v40 = vpop.permute.xlu0 %616 }
 0x66a   :  { %v3443_v41 = vadd.f32 %v617_v40, %v609_v39 }
 0x66c   :  { %2957 = vtanh.f32 %v3443_v41 }
 0x672   :  { %v2958_v42 = vpop.eup %2957 }
 0x673   :  { %622 = vrot.lane.b32.xlu0 %v2958_v42, %s3203_s23 }
 0x67b   :  { %71 = vperm.xlu0 %2911, %v52_v44  }
 0x67d   :  { %v575_v46 = vpop.permute.xlu1 %574 }
 0x67e   :  { %v3451_v47 = vadd.f32 %v575_v46, %v567_v45 }
 0x680   :  { %2959 = vtanh.f32 %v3451_v47 }
 0x685   :  { %v662_v49 = vpop.permute.xlu1 %661 }
 0x686   :  { %v2960_v50 = vpop.eup %2959  ;;  %v3454_v51 = vadd.f32 %v662_v49, %v654_v48 }
 0x687   :  { %580 = vrot.lane.b32.xlu2 %v2960_v50, %s3203_s23 }
 0x688   :  { %2961 = vtanh.f32 %v3454_v51 }
 0x68e   :  { %v2962_v7 = vpop.eup %2961 }
 0x68f   :  { %667 = vrot.lane.b32.xlu1 %v2962_v7, %s3203_s23  ;;  %68 = vperm.xlu2 %2912, %v51_v52  }
 0x697   :  { %74 = vperm.xlu1 %2913, %v53_v53   ;;  %77 = vperm.xlu2 %2912, %v54_v54   ;;  %v3532_v53 = vperm.slane %v3360_v33, 3 }
 0x69f   :  { %80 = vperm.xlu2 %2912, %v55_v55  }
 0x6e1   :  { %v581_v56 = vpop.permute.xlu2 %580 }
 0x6e2   :  { %v583_v57 = vmul.f32 %v581_v56, %v564_v24  ;;  %v3503_v24 = vld [vmem:[#allocation3 + $0x20] sm:$0xff] }
 0x6e4   :  { %585 = vrot.lane.b32.xlu0 %v583_v57, %s3200_s19 }
 0x6e5   :  { %v623_v58 = vpop.permute.xlu0 %622 }
 0x6e6   :  { %v625_v59 = vmul.f32 %v623_v58, %v3435_v9 }
 0x6e8   :  { %627 = vrot.lane.b32.xlu1 %v625_v59, %s3203_s23 }
 0x6e9   :  { %v69_v60 = vpop.permute.xlu2 %68 }
 0x6ea   :  { %vm85_vm1 = vcmp.eq.s32.totalorder %v69_v60, %v3352_v29 }
 0x6eb   :  { %v2851_v62 = vsel %vm85_vm1, 1.0, %v3202_v31 }
 0x6ec   :  { %2859 = vmatmul.msk.f32.gmra.mxu0 %vm114_vm0, %v2851_v62 }
 0x6ed   :  { %v72_v63 = vpop.permute.xlu0 %71 }
 0x6ee   :  { %vm86_vm3 = vcmp.eq.s32.totalorder %v72_v63, %v3352_v29 }
 0x6ef   :  { %v2852_v0 = vsel %vm86_vm3, 1.0, %v3202_v31 }
 0x6f1   :  { %v78_v5 = vpop.permute.xlu2 %77 }
 0x6f2   :  { %vm88_vm5 = vcmp.eq.s32.totalorder %v78_v5, %v3352_v29 }
 0x6f3   :  { %v2854_v6 = vsel %vm88_vm5, 1.0, %v3202_v31 }
 0x6f4   :  { %2860 = vmatmul.msk.f32.gmra.mxu0 %vm114_vm0, %v2852_v0 }
 0x6f9   :  { %v81_v8 = vpop.permute.xlu2 %80 }
 0x6fa   :  { %vm89_vm6 = vcmp.eq.s32.totalorder %v81_v8, %v3352_v29 }
 0x6fb   :  { %v2855_v9 = vsel %vm89_vm6, 1.0, %v3202_v31 }
 0x701   :  { %v668_v27 = vpop.permute.xlu1 %667 }
 0x702   :  { %v670_v1 = vmul.f32 %v668_v27, %v648_v37 }
 0x704   :  { %672 = vrot.lane.b32.xlu0 %v670_v1, %s3204_s17 }
 0x709   :  { %v75_v3 = vpop.permute.xlu1 %74 }
 0x70a   :  { %vm87_vm4 = vcmp.eq.s32.totalorder %v75_v3, %v3352_v29  ;;  %v3493_v29 = vld [vmem:[#allocation3 + $0x60] sm:$0xff] }
 0x70b   :  { %v2853_v4 = vsel %vm87_vm4, 1.0, %v3202_v31  ;;  %v713_v31 = vld [vmem:[#allocation3 + $0x118] sm:$0xff]  ;;  %754 = vmatpush.msrb.mxu0 %v3493_v29 }
 0x70c   :  { %2861 = vmatmul.msk.f32.gmra.mxu0 %vm114_vm0, %v2853_v4  ;;  %809 = vmatpush.msrb.mxu3 %v713_v31 }
 0x70d   :  { %755 = vmatpush.msrb.mxu0 %v3496_v19 }
 0x70e   :  { %810 = vmatpush.msrb.mxu3 %v709_v17 }
 0x70f   :  { %756 = vmatpush.msrb.mxu0 %v3503_v24 }
 0x710   :  { %811 = vmatpush.msrb.mxu3 %v705_v18 }
 0x711   :  { %757 = vmatpush.msrb.mxu0 %v3506_v28 }
 0x712   :  { %812 = vmatpush.msrb.mxu3 %v701_v20 }
 0x714   :  { %2862 = vmatmul.msk.f32.gmra.mxu0 %vm114_vm0, %v2854_v6  ;;  %813 = vmatpush.msrb.mxu3 %v697_v21 }
 0x716   :  { %814 = vmatpush.msrb.mxu3 %v693_v25 }
 0x718   :  { %815 = vmatpush.msrb.mxu3 %v689_v26 }
 0x71a   :  { %816 = vmatpush.msrb.mxu3 %v685_v30 }
 0x71c   :  { %2863 = vmatmul.msk.f32.gmra.mxu0 %vm114_vm0, %v2855_v9  ;;  %817 = vmatpush.msrb.mxu3 %v681_v35  ;;  %vm675_vm0 = vcmask 785920  }
 0x71e   :  { %1121 = vmatpush.msra.mxu3 %v741_v10 }
 0x720   :  { %1122 = vmatpush.msra.mxu3 %v737_v11 }
 0x722   :  { %1123 = vmatpush.msra.mxu3 %v733_v12 }
 0x724   :  { %1124 = vmatpush.msra.mxu3 %v729_v61 }
 0x726   :  { %1125 = vmatpush.msra.mxu3 %v725_v13 }
 0x728   :  { %1126 = vmatpush.msra.mxu3 %v721_v14 }
 0x72a   :  { %1127 = vmatpush.msra.mxu3 %v717_v16 }
 0x72c   :  { %1128 = vmatpush.msra.mxu3 %v713_v31 }
 0x72e   :  { %1129 = vmatpush.msra.mxu3 %v709_v17 }
 0x730   :  { %1130 = vmatpush.msra.mxu3 %v705_v18 }
 0x732   :  { %1131 = vmatpush.msra.mxu3 %v701_v20 }
 0x734   :  { %1132 = vmatpush.msra.mxu3 %v697_v21 }
 0x736   :  { %1133 = vmatpush.msra.mxu3 %v693_v25 }
 0x738   :  { %1134 = vmatpush.msra.mxu3 %v689_v26 }
 0x73a   :  { %1135 = vmatpush.msra.mxu3 %v685_v30 }
 0x73c   :  { %1136 = vmatpush.msra.mxu3 %v681_v35 }
 0x756   :  { %v586_v22 = vpop.permute.xlu0 %585 }
 0x757   :  { %588 = vst.msk [vmem:[%s4523_s9] sm:$0xff] %vm276_vm7, %v586_v22  ;;  %v3171_v22 = vld [vmem:[%s4519_s5] sm:$0xff] }
 0x75a   :  { %v628_v32 = vpop.permute.xlu1 %627 }
 0x75b   :  { %630 = vst.msk [vmem:[%s4523_s9] sm:$0xff] %vm435_vm2, %v628_v32 }
 0x769   :  { %v165_v38 = vpop.f32.mrf.mxu0 }
 0x771   :  { %v3520_v39 = vpop.f32.mrf.mxu0 }
 0x776   :  { %v673_v36 = vpop.permute.xlu0 %672 }
 0x777   :  { %676 = vst.msk [vmem:[%s4523_s9] sm:$0xff] %vm675_vm0, %v673_v36 }
 0x77e   :  { %v677_v37 = vld [vmem:[%s4523_s9] sm:$0xff] }
 0x77f   :  { %758 = vmatmul.f32.vlgmr.msrb.gmra.mxu0 %v677_v37  ;;  %778 = vmatmul.f32.vlgmr.msra.gmra.mxu1 %v677_v37 }
 0x780   :  { %798 = vmatmul.f32.vlgmr.msrb.gmra.mxu2 %v677_v37  ;;  %818 = vmatmul.f32.vlgmr.msrb.gmra.mxu3 %v677_v37 }
 0x789   :  { %v3522_v40 = vpop.f32.mrf.mxu0 }
 0x791   :  { %v3524_v42 = vpop.f32.mrf.mxu0 }
 0x799   :  { %v3526_v44 = vpop.f32.mrf.mxu0 }
 0x7fc   :  { %v759_v45 = vpop.f32.mrf.mxu0  ;;  %v779_v46 = vpop.f32.mrf.mxu1 }
 0x7fd   :  { %v760_v2 = vadd.f32 %v759_v45, %v3363_v34  ;;  %v780_v48 = vadd.f32 %v779_v46, %v3388_v23 }
 0x7ff   :  { %v822_v49 = vadd.f32 %v760_v2, %v165_v38  ;;  %2963 = vtanh.f32 %v780_v48  ;;  %v2871_v59 = vmul.f32 -1.442695, %v780_v48 }
 0x801   :  { %2965 = vtanh.f32 %v822_v49  ;;  %v2870_v63 = vmul.f32 -1.442695, %v822_v49 }
 0x803   :  { %v799_v50 = vpop.f32.mrf.mxu2  ;;  %v819_v55 = vpop.f32.mrf.mxu3 }
 0x804   :  { %v800_v52 = vadd.f32 %v799_v50, %v3426_v43  ;;  %v820_v56 = vadd.f32 %v819_v55, %v3532_v53 }
 0x805   :  { %v2964_v7 = vpop.eup %2963 }
 0x806   :  { %2967 = vtanh.f32 %v800_v52  ;;  %887 = vrot.lane.b32.xlu2 %v2964_v7, %s3203_s23  ;;  %v2872_v1 = vmul.f32 -1.442695, %v800_v52  ;;  %v2873_v5 = vmul.f32 -1.442695, %v820_v56 }
 0x807   :  { %v2966_v54 = vpop.eup %2965  ;;  %2969 = vtanh.f32 %v820_v56 }
 0x808   :  { %845 = vrot.lane.b32.xlu1 %v2966_v54, %s3203_s23  ;;  %2971 = vpow2.f32 %v2871_v59 }
 0x80c   :  { %v2968_v57 = vpop.eup %2967 }
 0x80d   :  { %929 = vrot.lane.b32.xlu0 %v2968_v57, %s3203_s23  ;;  %v2970_v58 = vpop.eup %2969 }
 0x80e   :  { %v2972_v60 = vpop.eup %2971 }
 0x80f   :  { %v868_v33 = vadd.f32 1.0, %v2972_v60 }
 0x811   :  { %2973 = vrcp.f32 %v868_v33  ;;  %v880_v9 = vand.u32 2147483648, %v868_v33  ;;  %vm874_vm9 = vweird.f32 %v868_v33  ;;  %v878_v10 = vand.u32 2147483647, %v868_v33 }
 0x812   :  { %2975 = vpow2.f32 %v2870_v63 }
 0x813   :  { %2977 = vpow2.f32 %v2872_v1  ;;  %v881_v12 = vor.u32 1.1754944e-38, %v880_v9  ;;  %vm879_vm11 = vcmp.eq.f32.partialorder %v878_v10, 8.507059e+37 }
 0x814   :  { %2979 = vpow2.f32 %v2873_v5 }
 0x815   :  { %974 = vrot.lane.b32.xlu0 %v2970_v58, %s3203_s23 }
 0x817   :  { %v2974_v62 = vpop.eup %2973 }
 0x818   :  { %v870_v0 = vmul.f32 %v2974_v62, %v868_v33  ;;  %v2976_v4 = vpop.eup %2975  ;;  %vm875_vm8 = vweird.f32 %v2974_v62 }
 0x819   :  { %v826_v8 = vadd.f32 1.0, %v2976_v4  ;;  %vm876_vm10 = vmor %vm874_vm9, %vm875_vm8  ;;  %v2978_v61 = vpop.eup %2977 }
 0x81a   :  { %v871_v27 = vsub.f32 1.0, %v870_v0  ;;  %v910_v31 = vadd.f32 1.0, %v2978_v61  ;;  %v2980_v17 = vpop.eup %2979 }
 0x81b   :  { %2981 = vrcp.f32 %v826_v8  ;;  %v952_v20 = vadd.f32 1.0, %v2980_v17  ;;  %v838_v38 = vand.u32 2147483648, %v826_v8  ;;  %vm832_vm13 = vweird.f32 %v826_v8 }
 0x81c   :  { %v872_v3 = vmul.f32 %v2974_v62, %v871_v27  ;;  %2983 = vrcp.f32 %v910_v31  ;;  %v836_v46 = vand.u32 2147483647, %v826_v8  ;;  %v922_v56 = vand.u32 2147483648, %v910_v31 }
 0x81d   :  { %2985 = vrcp.f32 %v952_v20  ;;  %v839_v49 = vor.u32 1.1754944e-38, %v838_v38  ;;  %vm916_vm3 = vweird.f32 %v910_v31  ;;  %v920_v58 = vand.u32 2147483647, %v910_v31  ;;  %v3594_v38 = vld [vmem:[#allocation3 + $0x1c8] sm:$0xff] }
 0x81e   :  { %v873_v6 = vadd.f32 %v2974_v62, %v872_v3  ;;  %vm837_vm15 = vcmp.eq.f32.partialorder %v836_v46, 8.507059e+37  ;;  %v923_v33 = vor.u32 1.1754944e-38, %v922_v56  ;;  %v964_v63 = vand.u32 2147483648, %v952_v20  ;;  %v3601_v46 = vld [vmem:[#allocation3 + $0x1a8] sm:$0xff]  ;;  %v3626_v56 = vld [vmem:[#allocation3 + $0x140] sm:$0xff] }
 0x81f   :  { %vm921_vm6 = vcmp.eq.f32.partialorder %v920_v58, 8.507059e+37  ;;  %vm958_vm8 = vweird.f32 %v952_v20  ;;  %v962_v27 = vand.u32 2147483647, %v952_v20  ;;  %v3632_v58 = vld [vmem:[#allocation3 + $0x150] sm:$0xff] }
 0x820   :  { %v877_v11 = vsel %vm876_vm10, %v2974_v62, %v873_v6  ;;  %v965_v4 = vor.u32 1.1754944e-38, %v964_v63 }
 0x821   :  { %v3539_v13 = vsel %vm879_vm11, %v881_v12, %v877_v11  ;;  %v2982_v18 = vpop.eup %2981  ;;  %vm963_vm10 = vcmp.eq.f32.partialorder %v962_v27, 8.507059e+37  ;;  %vm989_vm11 = vcmask 1048320  }
 0x822   :  { %v828_v21 = vmul.f32 %v2982_v18, %v826_v8  ;;  %v2984_v26 = vpop.eup %2983  ;;  %vm833_vm12 = vweird.f32 %v2982_v18  ;;  %v885_v9 = vmul.f32 %v3539_v13, %v3443_v41 }
 0x823   :  { %v912_v32 = vmul.f32 %v2984_v26, %v910_v31  ;;  %v2986_v35 = vpop.eup %2985  ;;  %vm834_vm14 = vmor %vm832_vm13, %vm833_vm12  ;;  %vm917_vm1 = vweird.f32 %v2984_v26 }
 0x824   :  { %v829_v25 = vsub.f32 1.0, %v828_v21  ;;  %v954_v45 = vmul.f32 %v2986_v35, %v952_v20  ;;  %vm918_vm4 = vmor %vm916_vm3, %vm917_vm1  ;;  %vm959_vm5 = vweird.f32 %v2986_v35 }
 0x825   :  { %v913_v37 = vsub.f32 1.0, %v912_v32  ;;  %vm960_vm9 = vmor %vm958_vm8, %vm959_vm5  ;;  %v3584_v32 = vld [vmem:[#allocation3 + $0x1e0] sm:$0xff] }
 0x826   :  { %v830_v30 = vmul.f32 %v2982_v18, %v829_v25  ;;  %v955_v50 = vsub.f32 1.0, %v954_v45  ;;  %1061 = vmatpush.msra.mxu0 %v3584_v32  ;;  %v3596_v45 = vld [vmem:[#allocation3 + $0x1d0] sm:$0xff] }
 0x827   :  { %v914_v48 = vmul.f32 %v2984_v26, %v913_v37  ;;  %v3592_v37 = vld [vmem:[#allocation3 + $0x1c0] sm:$0xff] }
 0x828   :  { %v831_v36 = vadd.f32 %v2982_v18, %v830_v30  ;;  %v956_v57 = vmul.f32 %v2986_v35, %v955_v50  ;;  %1062 = vmatpush.msra.mxu0 %v3592_v37  ;;  %v3614_v50 = vld [vmem:[#allocation3 + $0x190] sm:$0xff] }
 0x829   :  { %v915_v55 = vadd.f32 %v2984_v26, %v914_v48  ;;  %v3608_v48 = vld [vmem:[#allocation3 + $0x180] sm:$0xff] }
 0x82a   :  { %v835_v2 = vsel %vm834_vm14, %v2982_v18, %v831_v36  ;;  %v957_v62 = vadd.f32 %v2986_v35, %v956_v57  ;;  %v3588_v36 = vld [vmem:[#allocation3 + $0x1f0] sm:$0xff]  ;;  %v3628_v57 = vld [vmem:[#allocation3 + $0x148] sm:$0xff] }
 0x82b   :  { %v3547_v7 = vsel %vm837_vm15, %v839_v49, %v835_v2  ;;  %v919_v60 = vsel %vm918_vm4, %v2984_v26, %v915_v55  ;;  %1101 = vmatpush.msra.mxu2 %v3588_v36  ;;  %v3605_v2 = vld [vmem:[#allocation3 + $0x1b0] sm:$0xff]  ;;  %v3610_v49 = vld [vmem:[#allocation3 + $0x188] sm:$0xff] }
 0x82c   :  { %v3551_v0 = vsel %vm921_vm6, %v923_v33, %v919_v60  ;;  %v961_v3 = vsel %vm960_vm9, %v2986_v35, %v957_v62  ;;  %v843_v61 = vmul.f32 %v3547_v7, %v3451_v47  ;;  %v3586_v35 = vld [vmem:[#allocation3 + $0x1e8] sm:$0xff]  ;;  %v3623_v55 = vld [vmem:[#allocation3 + $0x170] sm:$0xff] }
 0x82d   :  { %v3555_v5 = vsel %vm963_vm10, %v965_v4, %v961_v3  ;;  %v927_v31 = vmul.f32 %v3551_v0, %v3454_v51  ;;  %1081 = vmatpush.msrb.mxu1 %v3586_v35  ;;  %1102 = vmatpush.msra.mxu2 %v3596_v45  ;;  %v3637_v60 = vld [vmem:[#allocation3 + $0x128] sm:$0xff]  ;;  %v3641_v33 = vld [vmem:[#allocation3 + $0x130] sm:$0xff]  ;;  %v3651_v3 = vld [vmem:[#allocation3 + $0x100] sm:$0xff] }
 0x82e   :  { %v3653_v4 = vld [vmem:[#allocation3 + $0x108] sm:$0xff] }
 0x82f   :  { %1082 = vmatpush.msrb.mxu1 %v3594_v38  ;;  %1103 = vmatpush.msra.mxu2 %v3605_v2 }
 0x831   :  { %1083 = vmatpush.msrb.mxu1 %v3601_v46  ;;  %1104 = vmatpush.msra.mxu2 %v3614_v50 }
 0x833   :  { %1084 = vmatpush.msrb.mxu1 %v3610_v49  ;;  %1105 = vmatpush.msra.mxu2 %v3623_v55 }
 0x835   :  { %1106 = vmatpush.msra.mxu2 %v3632_v58 }
 0x837   :  { %1107 = vmatpush.msra.mxu2 %v3641_v33 }
 0x860   :  { %v888_v14 = vpop.permute.xlu2 %887 }
 0x861   :  { %v890_v16 = vmul.f32 %v888_v14, %v3539_v13 }
 0x863   :  { %892 = vrot.lane.b32.xlu2 %v890_v16, %s3200_s19 }
 0x86b   :  { %969 = vrot.lane.b32.xlu2 %v3171_v22, %s3203_s23 }
 0x87a   :  { %v846_v52 = vpop.permute.xlu1 %845 }
 0x87b   :  { %v848_v54 = vmul.f32 %v846_v52, %v3547_v7  ;;  %v3617_v52 = vld [vmem:[#allocation3 + $0x160] sm:$0xff] }
 0x87d   :  { %850 = vrot.lane.b32.xlu1 %v848_v54, %s3200_s19  ;;  %v3619_v54 = vld [vmem:[#allocation3 + $0x168] sm:$0xff] }
 0x87e   :  { %1085 = vmatpush.msrb.mxu1 %v3619_v54 }
 0x87f   :  { %v930_v59 = vpop.permute.xlu0 %929 }
 0x880   :  { %v932_v1 = vmul.f32 %v930_v59, %v3551_v0  ;;  %v3635_v59 = vld [vmem:[#allocation3 + $0x120] sm:$0xff]  ;;  %1086 = vmatpush.msrb.mxu1 %v3628_v57 }
 0x882   :  { %1087 = vmatpush.msrb.mxu1 %v3637_v60 }
 0x884   :  { %1088 = vmatpush.msrb.mxu1 %v3653_v4 }
 0x885   :  { %934 = vrot.lane.b32.xlu1 %v932_v1, %s3200_s19 }
 0x887   :  { %v975_v6 = vpop.permute.xlu0 %974 }
 0x888   :  { %v977_v8 = vmul.f32 %v975_v6, %v3555_v5  ;;  %v3655_v6 = vld [vmem:[#allocation3 + $0x110] sm:$0xff] }
 0x889   :  { %1108 = vmatpush.msra.mxu2 %v3655_v6 }
 0x88a   :  { %979 = vrot.lane.b32.xlu0 %v977_v8, %s3200_s19  ;;  %v3661_v8 = vld [vmem:[#allocation3 + $0xe8] sm:$0xff] }
 0x88b   :  { %1089 = vmatpush.msrb.mxu1 %v3661_v8 }
 0x8bd   :  { %v893_v10 = vpop.permute.xlu2 %892 }
 0x8be   :  { %v3561_v11 = vadd.f32 %v893_v10, %v885_v9  ;;  %v3663_v9 = vld [vmem:[#allocation3 + $0xf0] sm:$0xff]  ;;  %v3668_v10 = vld [vmem:[#allocation3 + $0xc8] sm:$0xff] }
 0x8bf   :  { %1109 = vmatpush.msra.mxu2 %v3663_v9  ;;  %1090 = vmatpush.msrb.mxu1 %v3668_v10 }
 0x8c0   :  { %2987 = vtanh.f32 %v3561_v11 }
 0x8c5   :  { %v970_v20 = vpop.permute.xlu2 %969 }
 0x8c6   :  { %v2988_v12 = vpop.eup %2987  ;;  %v972_v21 = vmul.f32 %v970_v20, %v3555_v5  ;;  %v3691_v20 = vld [vmem:[#allocation3 + $0x68] sm:$0xff] }
 0x8c7   :  { %898 = vrot.lane.b32.xlu2 %v2988_v12, %s3203_s23  ;;  %v3672_v12 = vld [vmem:[#allocation3 + $0xd0] sm:$0xff] }
 0x8c8   :  { %1110 = vmatpush.msra.mxu2 %v3672_v12 }
 0x8ef   :  { %v851_v14 = vpop.permute.xlu1 %850 }
 0x8f0   :  { %v3567_v16 = vadd.f32 %v851_v14, %v843_v61  ;;  %v3675_v61 = vld [vmem:[#allocation3 + $0xa0] sm:$0xff]  ;;  %v3677_v14 = vld [vmem:[#allocation3 + $0xa8] sm:$0xff] }
 0x8f1   :  { %1091 = vmatpush.msrb.mxu1 %v3677_v14 }
 0x8f2   :  { %2989 = vtanh.f32 %v3567_v16 }
 0x8f7   :  { %v935_v41 = vpop.permute.xlu1 %934 }
 0x8f8   :  { %v2990_v17 = vpop.eup %2989  ;;  %v3572_v18 = vadd.f32 %v935_v41, %v927_v31  ;;  %v3681_v31 = vld [vmem:[#allocation3 + $0xb0] sm:$0xff]  ;;  %v3687_v41 = vld [vmem:[#allocation3 + $0x88] sm:$0xff] }
 0x8f9   :  { %856 = vrot.lane.b32.xlu1 %v2990_v17, %s3203_s23  ;;  %1111 = vmatpush.msra.mxu2 %v3681_v31  ;;  %v3689_v17 = vld [vmem:[#allocation3 + $0x90] sm:$0xff] }
 0x8fa   :  { %2991 = vtanh.f32 %v3572_v18  ;;  %1092 = vmatpush.msrb.mxu1 %v3687_v41 }
 0x8fb   :  { %1112 = vmatpush.msra.mxu2 %v3689_v17 }
 0x8fc   :  { %v980_v47 = vpop.permute.xlu0 %979  ;;  %1093 = vmatpush.msrb.mxu1 %v3691_v20 }
 0x8fd   :  { %v3577_v22 = vadd.f32 %v980_v47, %v972_v21  ;;  %v3695_v21 = vld [vmem:[#allocation3 + $0x70] sm:$0xff]  ;;  %v3698_v47 = vld [vmem:[#allocation3 + $0x48] sm:$0xff] }
 0x8fe   :  { %1113 = vmatpush.msra.mxu2 %v3695_v21  ;;  %1094 = vmatpush.msrb.mxu1 %v3698_v47 }
 0x8ff   :  { %2993 = vtanh.f32 %v3577_v22 }
 0x900   :  { %v2992_v25 = vpop.eup %2991 }
 0x901   :  { %940 = vrot.lane.b32.xlu0 %v2992_v25, %s3203_s23  ;;  %v1007_v25 = vld [vmem:[#allocation3 + $0x50] sm:$0xff] }
 0x902   :  { %1114 = vmatpush.msra.mxu2 %v1007_v25 }
 0x905   :  { %v2994_v51 = vpop.eup %2993 }
 0x909   :  { %985 = vrot.lane.b32.xlu0 %v2994_v51, %s3203_s23  ;;  %v1002_v51 = vld [vmem:[#allocation3 + $0x28] sm:$0xff] }
 0x90a   :  { %1095 = vmatpush.msrb.mxu1 %v1002_v51 }
 0x921   :  { %v899_v26 = vpop.permute.xlu2 %898 }
 0x922   :  { %v901_v30 = vmul.f32 %v899_v26, %v3539_v13  ;;  %v3599_v13 = vld [vmem:[#allocation3 + $0x1a0] sm:$0xff]  ;;  %v3705_v26 = vld [vmem:[#allocation3 + $0x8] sm:$0xff] }
 0x923   :  { %1063 = vmatpush.msra.mxu0 %v3599_v13  ;;  %1096 = vmatpush.msrb.mxu1 %v3705_v26 }
 0x924   :  { %903 = vrot.lane.b32.xlu2 %v901_v30, %s3203_s23  ;;  %v999_v30 = vld [vmem:[#allocation3 + $0x10] sm:$0xff] }
 0x925   :  { %1064 = vmatpush.msra.mxu0 %v3608_v48  ;;  %1396 = vmatpush.msra.mxu1 %v3586_v35 }
 0x927   :  { %1065 = vmatpush.msra.mxu0 %v3617_v52  ;;  %1397 = vmatpush.msra.mxu1 %v3594_v38 }
 0x929   :  { %1066 = vmatpush.msra.mxu0 %v3626_v56  ;;  %1398 = vmatpush.msra.mxu1 %v3601_v46 }
 0x92b   :  { %1067 = vmatpush.msra.mxu0 %v3635_v59  ;;  %1399 = vmatpush.msra.mxu1 %v3610_v49 }
 0x92d   :  { %1068 = vmatpush.msra.mxu0 %v3651_v3  ;;  %1400 = vmatpush.msra.mxu1 %v3619_v54 }
 0x92f   :  { %1401 = vmatpush.msra.mxu1 %v3628_v57 }
 0x931   :  { %1402 = vmatpush.msra.mxu1 %v3637_v60 }
 0x933   :  { %1403 = vmatpush.msra.mxu1 %v3653_v4 }
 0x935   :  { %1404 = vmatpush.msra.mxu1 %v3661_v8 }
 0x937   :  { %1405 = vmatpush.msra.mxu1 %v3668_v10 }
 0x939   :  { %1406 = vmatpush.msra.mxu1 %v3677_v14 }
 0x93b   :  { %1407 = vmatpush.msra.mxu1 %v3687_v41 }
 0x93d   :  { %1408 = vmatpush.msra.mxu1 %v3691_v20 }
 0x93f   :  { %1409 = vmatpush.msra.mxu1 %v3698_v47 }
 0x941   :  { %1410 = vmatpush.msra.mxu1 %v1002_v51 }
 0x943   :  { %1411 = vmatpush.msra.mxu1 %v3705_v26 }
 0x96b   :  { %v857_v62 = vpop.permute.xlu1 %856 }
 0x96c   :  { %v859_v63 = vmul.f32 %v857_v62, %v3547_v7  ;;  %v3659_v7 = vld [vmem:[#allocation3 + $0xe0] sm:$0xff] }
 0x96d   :  { %1069 = vmatpush.msra.mxu0 %v3659_v7 }
 0x96e   :  { %861 = vrot.lane.b32.xlu1 %v859_v63, %s3200_s19 }
 0x973   :  { %v941_v27 = vpop.permute.xlu0 %940 }
 0x974   :  { %v943_v1 = vmul.f32 %v941_v27, %v3551_v0  ;;  %v3666_v0 = vld [vmem:[#allocation3 + $0xc0] sm:$0xff] }
 0x975   :  { %1070 = vmatpush.msra.mxu0 %v3666_v0 }
 0x976   :  { %945 = vrot.lane.b32.xlu1 %v943_v1, %s3204_s17 }
 0x977   :  { %1071 = vmatpush.msra.mxu0 %v3675_v61 }
 0x979   :  { %1072 = vmatpush.msra.mxu0 %v3490_v15  ;;  %v1003_v15 = vld [vmem:[#allocation3 + $0x30] sm:$0xff] }
 0x97a   :  { %1115 = vmatpush.msra.mxu2 %v1003_v15 }
 0x97b   :  { %1073 = vmatpush.msra.mxu0 %v3493_v29 }
 0x97c   :  { %1116 = vmatpush.msra.mxu2 %v999_v30 }
 0x97d   :  { %1074 = vmatpush.msra.mxu0 %v3496_v19 }
 0x97e   :  { %1416 = vmatpush.msrb.mxu2 %v3588_v36  ;;  %v904_v19 = vpop.permute.xlu2 %903 }
 0x97f   :  { %1075 = vmatpush.msra.mxu0 %v3503_v24  ;;  %v986_v24 = vpop.permute.xlu0 %985 }
 0x980   :  { %1417 = vmatpush.msrb.mxu2 %v3596_v45 }
 0x981   :  { %1076 = vmatpush.msra.mxu0 %v3506_v28  ;;  %v3749_v28 = vmul.f32 %v986_v24, %v3555_v5 }
 0x982   :  { %1418 = vmatpush.msrb.mxu2 %v3605_v2 }
 0x983   :  { %1376 = vmatpush.msrb.mxu0 %v3584_v32 }
 0x984   :  { %1419 = vmatpush.msrb.mxu2 %v3614_v50 }
 0x985   :  { %1377 = vmatpush.msrb.mxu0 %v3592_v37 }
 0x986   :  { %1420 = vmatpush.msrb.mxu2 %v3623_v55 }
 0x987   :  { %1378 = vmatpush.msrb.mxu0 %v3599_v13 }
 0x988   :  { %1421 = vmatpush.msrb.mxu2 %v3632_v58 }
 0x989   :  { %1379 = vmatpush.msrb.mxu0 %v3608_v48 }
 0x98a   :  { %1422 = vmatpush.msrb.mxu2 %v3641_v33 }
 0x98b   :  { %1380 = vmatpush.msrb.mxu0 %v3617_v52 }
 0x98c   :  { %1423 = vmatpush.msrb.mxu2 %v3655_v6 }
 0x98d   :  { %1381 = vmatpush.msrb.mxu0 %v3626_v56 }
 0x98e   :  { %1424 = vmatpush.msrb.mxu2 %v3663_v9 }
 0x98f   :  { %1382 = vmatpush.msrb.mxu0 %v3635_v59 }
 0x990   :  { %1425 = vmatpush.msrb.mxu2 %v3672_v12 }
 0x991   :  { %1383 = vmatpush.msrb.mxu0 %v3651_v3 }
 0x992   :  { %1426 = vmatpush.msrb.mxu2 %v3681_v31 }
 0x993   :  { %1384 = vmatpush.msrb.mxu0 %v3659_v7 }
 0x994   :  { %1427 = vmatpush.msrb.mxu2 %v3689_v17 }
 0x995   :  { %1385 = vmatpush.msrb.mxu0 %v3666_v0 }
 0x996   :  { %1428 = vmatpush.msrb.mxu2 %v3695_v21 }
 0x997   :  { %1386 = vmatpush.msrb.mxu0 %v3675_v61 }
 0x998   :  { %1429 = vmatpush.msrb.mxu2 %v1007_v25 }
 0x99a   :  { %1430 = vmatpush.msrb.mxu2 %v1003_v15 }
 0x99c   :  { %1431 = vmatpush.msrb.mxu2 %v999_v30 }
 0x9e0   :  { %v862_v29 = vpop.permute.xlu1 %861 }
 0x9e1   :  { %864 = vst.msk [vmem:[%s4523_s9] sm:$0xff] %vm276_vm7, %v862_v29 }
 0x9e2   :  { %906 = vst.msk [vmem:[%s4523_s9] sm:$0xff] %vm435_vm2, %v904_v19 }
 0x9e8   :  { %v946_v32 = vpop.permute.xlu1 %945 }
 0x9e9   :  { %948 = vst.msk [vmem:[%s4523_s9] sm:$0xff] %vm675_vm0, %v946_v32 }
 0x9ea   :  { %990 = vst.msk [vmem:[%s4523_s9] sm:$0xff] %vm989_vm11, %v3749_v28 }
 0x9f1   :  { %v996_v5 = vld [vmem:[%s4523_s9] sm:$0xff] }
 0x9f2   :  { %1077 = vmatmul.f32.vlgmr.msra.gmra.mxu0 %v996_v5  ;;  %1097 = vmatmul.f32.vlgmr.msrb.gmra.mxu1 %v996_v5 }
 0x9f3   :  { %1117 = vmatmul.f32.vlgmr.msra.gmra.mxu2 %v996_v5  ;;  %1137 = vmatmul.f32.vlgmr.msra.gmra.mxu3 %v996_v5 }
 0xa6f   :  { %v1078_v35 = vpop.f32.mrf.mxu0  ;;  %v1098_v36 = vpop.f32.mrf.mxu1 }
 0xa70   :  { %v1079_v37 = vadd.f32 %v1078_v35, %v3363_v34  ;;  %v1099_v38 = vadd.f32 %v1098_v36, %v3388_v23 }
 0xa72   :  { %v1141_v45 = vadd.f32 %v1079_v37, %v3520_v39  ;;  %2995 = vtanh.f32 %v1099_v38  ;;  %v2875_v57 = vmul.f32 -1.442695, %v1099_v38 }
 0xa74   :  { %2997 = vtanh.f32 %v1141_v45  ;;  %v2874_v54 = vmul.f32 -1.442695, %v1141_v45 }
 0xa76   :  { %v1118_v13 = vpop.f32.mrf.mxu2  ;;  %v1138_v49 = vpop.f32.mrf.mxu3 }
 0xa77   :  { %v1119_v46 = vadd.f32 %v1118_v13, %v3426_v43  ;;  %v1139_v50 = vadd.f32 %v1138_v49, %v3532_v53 }
 0xa78   :  { %v2996_v2 = vpop.eup %2995 }
 0xa79   :  { %2999 = vtanh.f32 %v1119_v46  ;;  %1206 = vrot.lane.b32.xlu0 %v2996_v2, %s3203_s23  ;;  %v2876_v60 = vmul.f32 -1.442695, %v1119_v46  ;;  %v2877_v1 = vmul.f32 -1.442695, %v1139_v50 }
 0xa7a   :  { %v2998_v48 = vpop.eup %2997  ;;  %3001 = vtanh.f32 %v1139_v50 }
 0xa7b   :  { %1164 = vrot.lane.b32.xlu2 %v2998_v48, %s3203_s23  ;;  %3003 = vpow2.f32 %v2874_v54 }
 0xa7f   :  { %v3000_v52 = vpop.eup %2999 }
 0xa80   :  { %1248 = vrot.lane.b32.xlu1 %v3000_v52, %s3203_s23  ;;  %v3002_v39 = vpop.eup %3001 }
 0xa81   :  { %v3004_v55 = vpop.eup %3003 }
 0xa82   :  { %v1145_v56 = vadd.f32 1.0, %v3004_v55 }
 0xa84   :  { %3005 = vrcp.f32 %v1145_v56  ;;  %v1157_v6 = vand.u32 2147483648, %v1145_v56  ;;  %vm1151_vm13 = vweird.f32 %v1145_v56  ;;  %v1155_v7 = vand.u32 2147483647, %v1145_v56 }
 0xa85   :  { %3007 = vpow2.f32 %v2875_v57 }
 0xa86   :  { %3009 = vpow2.f32 %v2876_v60  ;;  %v1158_v0 = vor.u32 1.1754944e-38, %v1157_v6  ;;  %vm1156_vm15 = vcmp.eq.f32.partialorder %v1155_v7, 8.507059e+37 }
 0xa88   :  { %1290 = vrot.lane.b32.xlu1 %v3002_v39, %s3203_s23 }
 0xa8a   :  { %v3006_v58 = vpop.eup %3005 }
 0xa8b   :  { %v1147_v59 = vmul.f32 %v3006_v58, %v1145_v56  ;;  %v3008_v62 = vpop.eup %3007  ;;  %vm1152_vm12 = vweird.f32 %v3006_v58 }
 0xa8c   :  { %v1187_v27 = vadd.f32 1.0, %v3008_v62  ;;  %v3010_v4 = vpop.eup %3009  ;;  %vm1153_vm14 = vmor %vm1151_vm13, %vm1152_vm12 }
 0xa8d   :  { %v1148_v33 = vsub.f32 1.0, %v1147_v59  ;;  %v1229_v8 = vadd.f32 1.0, %v3010_v4 }
 0xa8e   :  { %3011 = vrcp.f32 %v1187_v27  ;;  %v1199_v30 = vand.u32 2147483648, %v1187_v27  ;;  %vm1193_vm3 = vweird.f32 %v1187_v27  ;;  %v1197_v29 = vand.u32 2147483647, %v1187_v27 }
 0xa8f   :  { %v1149_v63 = vmul.f32 %v3006_v58, %v1148_v33  ;;  %3013 = vpow2.f32 %v2877_v1  ;;  %v1241_v13 = vand.u32 2147483648, %v1229_v8  ;;  %vm1235_vm8 = vweird.f32 %v1229_v8 }
 0xa90   :  { %3015 = vrcp.f32 %v1229_v8  ;;  %v1200_v5 = vor.u32 1.1754944e-38, %v1199_v30  ;;  %vm1198_vm5 = vcmp.eq.f32.partialorder %v1197_v29, 8.507059e+37  ;;  %v1239_v46 = vand.u32 2147483647, %v1229_v8  ;;  %v1347_v30 = vld [vmem:[#allocation3 + $0x118] sm:$0xff] }
 0xa91   :  { %v1150_v3 = vadd.f32 %v3006_v58, %v1149_v63  ;;  %v1242_v49 = vor.u32 1.1754944e-38, %v1241_v13  ;;  %v1343_v29 = vld [vmem:[#allocation3 + $0xf8] sm:$0xff] }
 0xa92   :  { %vm1240_vm10 = vcmp.eq.f32.partialorder %v1239_v46, 8.507059e+37  ;;  %v1323_v13 = vld [vmem:[#allocation3 + $0x58] sm:$0xff]  ;;  %v3833_v46 = vld [vmem:[#allocation3 + $0x20] sm:$0xff] }
 0xa93   :  { %v1154_v9 = vsel %vm1153_vm14, %v3006_v58, %v1150_v3 }
 0xa94   :  { %v3012_v10 = vpop.eup %3011  ;;  %v3781_v61 = vsel %vm1156_vm15, %v1158_v0, %v1154_v9 }
 0xa95   :  { %v3014_v31 = vpop.eup %3013  ;;  %v1189_v41 = vmul.f32 %v3012_v10, %v1187_v27  ;;  %vm1194_vm1 = vweird.f32 %v3012_v10  ;;  %v1162_v62 = vmul.f32 %v3781_v61, %v3567_v16 }
 0xa96   :  { %v1271_v17 = vadd.f32 1.0, %v3014_v31  ;;  %v3016_v20 = vpop.eup %3015  ;;  %vm1195_vm4 = vmor %vm1193_vm3, %vm1194_vm1 }
 0xa97   :  { %v1190_v21 = vsub.f32 1.0, %v1189_v41  ;;  %v1231_v47 = vmul.f32 %v3016_v20, %v1229_v8  ;;  %vm1236_vm6 = vweird.f32 %v3016_v20 }
 0xa98   :  { %3017 = vrcp.f32 %v1271_v17  ;;  %vm1237_vm9 = vmor %vm1235_vm8, %vm1236_vm6  ;;  %v1283_v55 = vand.u32 2147483648, %v1271_v17  ;;  %vm1277_vm13 = vweird.f32 %v1271_v17  ;;  %v1281_v56 = vand.u32 2147483647, %v1271_v17 }
 0xa99   :  { %v1191_v25 = vmul.f32 %v3012_v10, %v1190_v21  ;;  %v1232_v51 = vsub.f32 1.0, %v1231_v47  ;;  %v1371_v47 = vld [vmem:[#allocation3 + $0x1d8] sm:$0xff] }
 0xa9a   :  { %v1284_v58 = vor.u32 1.1754944e-38, %v1283_v55  ;;  %vm1282_vm15 = vcmp.eq.f32.partialorder %v1281_v56, 8.507059e+37 }
 0xa9b   :  { %v1192_v26 = vadd.f32 %v3012_v10, %v1191_v25  ;;  %v1233_v19 = vmul.f32 %v3016_v20, %v1232_v51  ;;  %v1367_v25 = vld [vmem:[#allocation3 + $0x1b8] sm:$0xff] }
 0xa9c   :  { %v1363_v51 = vld [vmem:[#allocation3 + $0x198] sm:$0xff] }
 0xa9d   :  { %v1196_v32 = vsel %vm1195_vm4, %v3012_v10, %v1192_v26  ;;  %v1234_v37 = vadd.f32 %v3016_v20, %v1233_v19  ;;  %v1351_v26 = vld [vmem:[#allocation3 + $0x138] sm:$0xff] }
 0xa9e   :  { %v3018_v15 = vpop.eup %3017  ;;  %v1201_v36 = vsel %vm1198_vm5, %v1200_v5, %v1196_v32  ;;  %v1339_v19 = vld [vmem:[#allocation3 + $0xd8] sm:$0xff]  ;;  %v3817_v32 = vld [vmem:[#allocation3 + $0x80] sm:$0xff] }
 0xa9f   :  { %v1273_v24 = vmul.f32 %v3018_v15, %v1271_v17  ;;  %v1238_v2 = vsel %vm1237_vm9, %v3016_v20, %v1234_v37  ;;  %vm1278_vm12 = vweird.f32 %v3018_v15  ;;  %v1204_v16 = vmul.f32 %v1201_v36, %v3561_v11  ;;  %v1331_v5 = vld [vmem:[#allocation3 + $0x98] sm:$0xff]  ;;  %1387 = vmatpush.msrb.mxu0 %v3817_v32 }
 0xaa0   :  { %v1243_v52 = vsel %vm1240_vm10, %v1242_v49, %v1238_v2  ;;  %vm1279_vm14 = vmor %vm1277_vm13, %vm1278_vm12  ;;  %v1327_v37 = vld [vmem:[#allocation3 + $0x78] sm:$0xff] }
 0xaa1   :  { %v1274_v38 = vsub.f32 1.0, %v1273_v24  ;;  %v1246_v3 = vmul.f32 %v1243_v52, %v3572_v18  ;;  %v1335_v24 = vld [vmem:[#allocation3 + $0xb8] sm:$0xff] }
 0xaa2   :  { %v1319_v2 = vld [vmem:[#allocation3 + $0x38] sm:$0xff] }
 0xaa3   :  { %v1275_v48 = vmul.f32 %v3018_v15, %v1274_v38  ;;  %v1315_v49 = vld [vmem:[#allocation3 + $0x18] sm:$0xff] }
 0xaa5   :  { %v1276_v54 = vadd.f32 %v3018_v15, %v1275_v48  ;;  %v3836_v48 = vld [vmem:[#allocation3] sm:$0xff] }
 0xaa7   :  { %v1280_v57 = vsel %vm1279_vm14, %v3018_v15, %v1276_v54  ;;  %v1359_v15 = vld [vmem:[#allocation3 + $0x178] sm:$0xff] }
 0xaa8   :  { %v3787_v59 = vsel %vm1282_vm15, %v1284_v58, %v1280_v57 }
 0xaa9   :  { %v1288_v18 = vmul.f32 %v3787_v59, %v3577_v22  ;;  %v1375_v22 = vld [vmem:[#allocation3 + $0x1f8] sm:$0xff] }
 0xaaa   :  { %1436 = vmatpush.msrb.mxu3 %v1375_v22 }
 0xaac   :  { %1437 = vmatpush.msrb.mxu3 %v1371_v47 }
 0xaae   :  { %1438 = vmatpush.msrb.mxu3 %v1367_v25 }
 0xab0   :  { %1439 = vmatpush.msrb.mxu3 %v1363_v51 }
 0xab2   :  { %1440 = vmatpush.msrb.mxu3 %v1359_v15 }
 0xad5   :  { %v1165_v12 = vpop.permute.xlu2 %1164 }
 0xad6   :  { %v1167_v14 = vmul.f32 %v1165_v12, %v3781_v61 }
 0xad8   :  { %1169 = vrot.lane.b32.xlu2 %v1167_v14, %s3200_s19 }
 0xaeb   :  { %v1207_v35 = vpop.permute.xlu0 %1206 }
 0xaec   :  { %v1209_v45 = vmul.f32 %v1207_v35, %v1201_v36  ;;  %v3819_v35 = vld [vmem:[#allocation3 + $0x60] sm:$0xff] }
 0xaed   :  { %1388 = vmatpush.msrb.mxu0 %v3819_v35 }
 0xaee   :  { %1211 = vrot.lane.b32.xlu0 %v1209_v45, %s3200_s19  ;;  %v3826_v45 = vld [vmem:[#allocation3 + $0x40] sm:$0xff] }
 0xaef   :  { %1389 = vmatpush.msrb.mxu0 %v3826_v45 }
 0xaf1   :  { %1390 = vmatpush.msrb.mxu0 %v3833_v46 }
 0xaf2   :  { %v1249_v50 = vpop.permute.xlu1 %1248 }
 0xaf3   :  { %v1251_v39 = vmul.f32 %v1249_v50, %v1243_v52  ;;  %1391 = vmatpush.msrb.mxu0 %v3836_v48 }
 0xaf5   :  { %1253 = vrot.lane.b32.xlu2 %v1251_v39, %s3200_s19 }
 0xafa   :  { %v1291_v60 = vpop.permute.xlu1 %1290 }
 0xafb   :  { %v1293_v33 = vmul.f32 %v1291_v60, %v3787_v59 }
 0xafd   :  { %1295 = vrot.lane.b32.xlu0 %v1293_v33, %s3200_s19 }
 0xb32   :  { %v1170_v63 = vpop.permute.xlu2 %1169 }
 0xb33   :  { %v3793_v27 = vadd.f32 %v1170_v63, %v1162_v62 }
 0xb35   :  { %3019 = vtanh.f32 %v3793_v27 }
 0xb3b   :  { %v3020_v1 = vpop.eup %3019 }
 0xb3c   :  { %1175 = vrot.lane.b32.xlu1 %v3020_v1, %s3203_s23 }
 0xb4f   :  { %v1254_v4 = vpop.permute.xlu2 %1253 }
 0xb50   :  { %v3798_v6 = vadd.f32 %v1254_v4, %v1246_v3 }
 0xb52   :  { %3021 = vtanh.f32 %v3798_v6 }
 0xb58   :  { %v3022_v7 = vpop.eup %3021 }
 0xb59   :  { %1259 = vrot.lane.b32.xlu0 %v3022_v7, %s3203_s23 }
 0xb60   :  { %v1212_v8 = vpop.permute.xlu0 %1211 }
 0xb61   :  { %v3803_v9 = vadd.f32 %v1212_v8, %v1204_v16 }
 0xb63   :  { %3023 = vtanh.f32 %v3803_v9 }
 0xb69   :  { %v3024_v0 = vpop.eup %3023 }
 0xb6a   :  { %1217 = vrot.lane.b32.xlu2 %v3024_v0, %s3203_s23 }
 0xb6f   :  { %v1296_v10 = vpop.permute.xlu0 %1295 }
 0xb70   :  { %v3809_v12 = vadd.f32 %v1296_v10, %v1288_v18 }
 0xb72   :  { %3025 = vtanh.f32 %v3809_v12 }
 0xb78   :  { %v3026_v14 = vpop.eup %3025 }
 0xb79   :  { %1301 = vrot.lane.b32.xlu0 %v3026_v14, %s3203_s23 }
 0xbae   :  { %v1176_v11 = vpop.permute.xlu1 %1175 }
 0xbaf   :  { %v1178_v31 = vmul.f32 %v1176_v11, %v3781_v61  ;;  %v1355_v61 = vld [vmem:[#allocation3 + $0x158] sm:$0xff] }
 0xbb0   :  { %1441 = vmatpush.msrb.mxu3 %v1355_v61 }
 0xbb1   :  { %1180 = vrot.lane.b32.xlu1 %v1178_v31, %s3200_s19 }
 0xbb2   :  { %1442 = vmatpush.msrb.mxu3 %v1351_v26 }
 0xbb4   :  { %1443 = vmatpush.msrb.mxu3 %v1347_v30 }
 0xbb6   :  { %1444 = vmatpush.msrb.mxu3 %v1343_v29 }
 0xbb8   :  { %1445 = vmatpush.msrb.mxu3 %v1339_v19 }
 0xbba   :  { %1446 = vmatpush.msrb.mxu3 %v1335_v24 }
 0xbbc   :  { %1447 = vmatpush.msrb.mxu3 %v1331_v5 }
 0xbbe   :  { %1448 = vmatpush.msrb.mxu3 %v1327_v37 }
 0xbc0   :  { %1449 = vmatpush.msrb.mxu3 %v1323_v13 }
 0xbc2   :  { %1450 = vmatpush.msrb.mxu3 %v1319_v2 }
 0xbc4   :  { %v1218_v41 = vpop.permute.xlu2 %1217  ;;  %1451 = vmatpush.msrb.mxu3 %v1315_v49 }
 0xbc5   :  { %v1220_v17 = vmul.f32 %v1218_v41, %v1201_v36 }
 0xbc6   :  { %1751 = vmatpush.msra.mxu3 %v1375_v22 }
 0xbc7   :  { %1222 = vrot.lane.b32.xlu2 %v1220_v17, %s3203_s23 }
 0xbc8   :  { %1752 = vmatpush.msra.mxu3 %v1371_v47 }
 0xbca   :  { %1753 = vmatpush.msra.mxu3 %v1367_v25 }
 0xbcb   :  { %v1260_v20 = vpop.permute.xlu0 %1259 }
 0xbcc   :  { %v1262_v21 = vmul.f32 %v1260_v20, %v1243_v52  ;;  %1754 = vmatpush.msra.mxu3 %v1363_v51 }
 0xbce   :  { %1264 = vrot.lane.b32.xlu1 %v1262_v21, %s3204_s17  ;;  %1755 = vmatpush.msra.mxu3 %v1359_v15 }
 0xbd0   :  { %1756 = vmatpush.msra.mxu3 %v1355_v61 }
 0xbd2   :  { %1757 = vmatpush.msra.mxu3 %v1351_v26 }
 0xbd4   :  { %1758 = vmatpush.msra.mxu3 %v1347_v30 }
 0xbd6   :  { %1759 = vmatpush.msra.mxu3 %v1343_v29 }
 0xbd8   :  { %1760 = vmatpush.msra.mxu3 %v1339_v19 }
 0xbda   :  { %1761 = vmatpush.msra.mxu3 %v1335_v24 }
 0xbdc   :  { %1762 = vmatpush.msra.mxu3 %v1331_v5 }
 0xbde   :  { %1763 = vmatpush.msra.mxu3 %v1327_v37 }
 0xbe0   :  { %1764 = vmatpush.msra.mxu3 %v1323_v13 }
 0xbe2   :  { %1765 = vmatpush.msra.mxu3 %v1319_v2 }
 0xbe4   :  { %1766 = vmatpush.msra.mxu3 %v1315_v49 }
 0xbeb   :  { %v1302_v50 = vpop.permute.xlu0 %1301 }
 0xbec   :  { %v3841_v52 = vmul.f32 %v1302_v50, %v3787_v59 }
 0xc21   :  { %v1223_v38 = vpop.permute.xlu2 %1222 }
 0xc23   :  { %v1181_v36 = vpop.permute.xlu1 %1180 }
 0xc24   :  { %1183 = vst.msk [vmem:[%s4523_s9] sm:$0xff] %vm276_vm7, %v1181_v36 }
 0xc25   :  { %1225 = vst.msk [vmem:[%s4523_s9] sm:$0xff] %vm435_vm2, %v1223_v38 }
 0xc40   :  { %v1265_v39 = vpop.permute.xlu1 %1264 }
 0xc41   :  { %1267 = vst.msk [vmem:[%s4523_s9] sm:$0xff] %vm675_vm0, %v1265_v39 }
 0xc42   :  { %1305 = vst.msk [vmem:[%s4523_s9] sm:$0xff] %vm989_vm11, %v3841_v52 }
 0xc49   :  { %v1311_v54 = vld [vmem:[%s4523_s9] sm:$0xff] }
 0xc4a   :  { %1392 = vmatmul.f32.vlgmr.msrb.gmra.mxu0 %v1311_v54  ;;  %1412 = vmatmul.f32.vlgmr.msra.gmra.mxu1 %v1311_v54 }
 0xc4b   :  { %1432 = vmatmul.f32.vlgmr.msrb.gmra.mxu2 %v1311_v54  ;;  %1452 = vmatmul.f32.vlgmr.msrb.gmra.mxu3 %v1311_v54 }
 0xcc7   :  { %v1393_v55 = vpop.f32.mrf.mxu0  ;;  %v1413_v56 = vpop.f32.mrf.mxu1 }
 0xcc8   :  { %v1394_v57 = vadd.f32 %v1393_v55, %v3363_v34  ;;  %v1414_v58 = vadd.f32 %v1413_v56, %v3388_v23 }
 0xcca   :  { %v1456_v59 = vadd.f32 %v1394_v57, %v3522_v40  ;;  %3027 = vtanh.f32 %v1414_v58  ;;  %v2879_v0 = vmul.f32 -1.442695, %v1414_v58 }
 0xccc   :  { %3029 = vtanh.f32 %v1456_v59  ;;  %v2878_v7 = vmul.f32 -1.442695, %v1456_v59 }
 0xcce   :  { %v1433_v60 = vpop.f32.mrf.mxu2  ;;  %v1453_v1 = vpop.f32.mrf.mxu3 }
 0xccf   :  { %v1434_v33 = vadd.f32 %v1433_v60, %v3426_v43  ;;  %v1454_v3 = vadd.f32 %v1453_v1, %v3532_v53 }
 0xcd0   :  { %v3028_v62 = vpop.eup %3027 }
 0xcd1   :  { %3031 = vtanh.f32 %v1434_v33  ;;  %1521 = vrot.lane.b32.xlu0 %v3028_v62, %s3203_s23  ;;  %v2880_v14 = vmul.f32 -1.442695, %v1434_v33  ;;  %v2881_v20 = vmul.f32 -1.442695, %v1454_v3 }
 0xcd2   :  { %v3030_v63 = vpop.eup %3029  ;;  %3033 = vtanh.f32 %v1454_v3 }
 0xcd3   :  { %1479 = vrot.lane.b32.xlu2 %v3030_v63, %s3203_s23  ;;  %3035 = vpow2.f32 %v2878_v7 }
 0xcd7   :  { %v3032_v4 = vpop.eup %3031 }
 0xcd8   :  { %1563 = vrot.lane.b32.xlu1 %v3032_v4, %s3203_s23  ;;  %v3034_v40 = vpop.eup %3033 }
 0xcd9   :  { %v3036_v16 = vpop.eup %3035 }
 0xcda   :  { %v1460_v8 = vadd.f32 1.0, %v3036_v16 }
 0xcdc   :  { %3037 = vrcp.f32 %v1460_v8  ;;  %v1472_v47 = vand.u32 2147483648, %v1460_v8  ;;  %vm1466_vm3 = vweird.f32 %v1460_v8  ;;  %v1470_v25 = vand.u32 2147483647, %v1460_v8 }
 0xcdd   :  { %3039 = vpow2.f32 %v2879_v0 }
 0xcde   :  { %3041 = vpow2.f32 %v2880_v14  ;;  %v1473_v61 = vor.u32 1.1754944e-38, %v1472_v47  ;;  %vm1471_vm5 = vcmp.eq.f32.partialorder %v1470_v25, 8.507059e+37 }
 0xce0   :  { %1605 = vrot.lane.b32.xlu1 %v3034_v40, %s3203_s23 }
 0xce2   :  { %v3038_v18 = vpop.eup %3037 }
 0xce3   :  { %v1462_v10 = vmul.f32 %v3038_v18, %v1460_v8  ;;  %v3040_v31 = vpop.eup %3039  ;;  %vm1467_vm1 = vweird.f32 %v3038_v18 }
 0xce4   :  { %v1502_v17 = vadd.f32 1.0, %v3040_v31  ;;  %v3042_v22 = vpop.eup %3041  ;;  %vm1468_vm4 = vmor %vm1466_vm3, %vm1467_vm1 }
 0xce5   :  { %v1463_v11 = vsub.f32 1.0, %v1462_v10  ;;  %v1544_v51 = vadd.f32 1.0, %v3042_v22 }
 0xce6   :  { %3043 = vrcp.f32 %v1502_v17  ;;  %v1514_v54 = vand.u32 2147483648, %v1502_v17  ;;  %vm1508_vm8 = vweird.f32 %v1502_v17  ;;  %v1512_v55 = vand.u32 2147483647, %v1502_v17 }
 0xce7   :  { %v1464_v41 = vmul.f32 %v3038_v18, %v1463_v11  ;;  %3045 = vpow2.f32 %v2881_v20  ;;  %v1556_v3 = vand.u32 2147483648, %v1544_v51  ;;  %vm1550_vm13 = vweird.f32 %v1544_v51 }
 0xce8   :  { %3047 = vrcp.f32 %v1544_v51  ;;  %v1515_v59 = vor.u32 1.1754944e-38, %v1514_v54  ;;  %vm1513_vm10 = vcmp.eq.f32.partialorder %v1512_v55, 8.507059e+37  ;;  %v1554_v4 = vand.u32 2147483647, %v1544_v51  ;;  %v3902_v54 = vld [vmem:[#allocation3 + $0x1e8] sm:$0xff]  ;;  %v3904_v55 = vld [vmem:[#allocation3 + $0x1f0] sm:$0xff] }
 0xce9   :  { %v1465_v21 = vadd.f32 %v3038_v18, %v1464_v41  ;;  %v1557_v16 = vor.u32 1.1754944e-38, %v1556_v3  ;;  %1711 = vmatpush.msrb.mxu1 %v3902_v54  ;;  %1731 = vmatpush.msra.mxu2 %v3904_v55  ;;  %v3935_v3 = vld [vmem:[#allocation3 + $0x168] sm:$0xff] }
 0xcea   :  { %vm1555_vm15 = vcmp.eq.f32.partialorder %v1554_v4, 8.507059e+37  ;;  %v3939_v4 = vld [vmem:[#allocation3 + $0x170] sm:$0xff] }
 0xceb   :  { %v1469_v15 = vsel %vm1468_vm4, %v3038_v18, %v1465_v21 }
 0xcec   :  { %v3044_v26 = vpop.eup %3043  ;;  %v3864_v29 = vsel %vm1471_vm5, %v1473_v61, %v1469_v15 }
 0xced   :  { %v3046_v24 = vpop.eup %3045  ;;  %v1504_v5 = vmul.f32 %v3044_v26, %v1502_v17  ;;  %vm1509_vm6 = vweird.f32 %v3044_v26  ;;  %v1477_v22 = vmul.f32 %v3864_v29, %v3793_v27 }
 0xcee   :  { %v1586_v36 = vadd.f32 1.0, %v3046_v24  ;;  %v3048_v37 = vpop.eup %3047  ;;  %vm1510_vm9 = vmor %vm1508_vm8, %vm1509_vm6 }
 0xcef   :  { %v1505_v38 = vsub.f32 1.0, %v1504_v5  ;;  %v1546_v13 = vmul.f32 %v3048_v37, %v1544_v51  ;;  %vm1551_vm12 = vweird.f32 %v3048_v37 }
 0xcf0   :  { %3049 = vrcp.f32 %v1586_v36  ;;  %vm1552_vm14 = vmor %vm1550_vm13, %vm1551_vm12  ;;  %v1598_v14 = vand.u32 2147483648, %v1586_v36  ;;  %vm1592_vm3 = vweird.f32 %v1586_v36  ;;  %v1596_v11 = vand.u32 2147483647, %v1586_v36 }
 0xcf1   :  { %v1506_v2 = vmul.f32 %v3044_v26, %v1505_v38  ;;  %v1547_v49 = vsub.f32 1.0, %v1546_v13 }
 0xcf2   :  { %v1599_v41 = vor.u32 1.1754944e-38, %v1598_v14  ;;  %vm1597_vm5 = vcmp.eq.f32.partialorder %v1596_v11, 8.507059e+37  ;;  %v3962_v14 = vld [vmem:[#allocation3 + $0x108] sm:$0xff]  ;;  %v3966_v11 = vld [vmem:[#allocation3 + $0x110] sm:$0xff] }
 0xcf3   :  { %v1507_v39 = vadd.f32 %v3044_v26, %v1506_v2  ;;  %v1548_v56 = vmul.f32 %v3048_v37, %v1547_v49 }
 0xcf5   :  { %v1511_v58 = vsel %vm1510_vm9, %v3044_v26, %v1507_v39  ;;  %v1549_v62 = vadd.f32 %v3048_v37, %v1548_v56  ;;  %v3910_v56 = vld [vmem:[#allocation3 + $0x1c8] sm:$0xff] }
 0xcf6   :  { %v3050_v50 = vpop.eup %3049  ;;  %v1516_v33 = vsel %vm1513_vm10, %v1515_v59, %v1511_v58  ;;  %v3915_v58 = vld [vmem:[#allocation3 + $0x1a0] sm:$0xff]  ;;  %v3917_v59 = vld [vmem:[#allocation3 + $0x1a8] sm:$0xff]  ;;  %1712 = vmatpush.msrb.mxu1 %v3910_v56 }
 0xcf7   :  { %v1588_v57 = vmul.f32 %v3050_v50, %v1586_v36  ;;  %v1553_v40 = vsel %vm1552_vm14, %v3048_v37, %v1549_v62  ;;  %vm1593_vm1 = vweird.f32 %v3050_v50  ;;  %v1519_v27 = vmul.f32 %v1516_v33, %v3803_v9  ;;  %v3926_v62 = vld [vmem:[#allocation3 + $0x188] sm:$0xff] }
 0xcf8   :  { %v1558_v0 = vsel %vm1555_vm15, %v1557_v16, %v1553_v40  ;;  %vm1594_vm4 = vmor %vm1592_vm3, %vm1593_vm1  ;;  %1713 = vmatpush.msrb.mxu1 %v3917_v59  ;;  %v3942_v40 = vld [vmem:[#allocation3 + $0x140] sm:$0xff]  ;;  %v3948_v16 = vld [vmem:[#allocation3 + $0x150] sm:$0xff] }
 0xcf9   :  { %v1589_v63 = vsub.f32 1.0, %v1588_v57  ;;  %v1561_v15 = vmul.f32 %v1558_v0, %v3798_v6  ;;  %v3912_v57 = vld [vmem:[#allocation3 + $0x1d0] sm:$0xff] }
 0xcfa   :  { %1732 = vmatpush.msra.mxu2 %v3912_v57  ;;  %1714 = vmatpush.msrb.mxu1 %v3926_v62 }
 0xcfb   :  { %v1590_v7 = vmul.f32 %v3050_v50, %v1589_v63  ;;  %v3930_v63 = vld [vmem:[#allocation3 + $0x190] sm:$0xff] }
 0xcfc   :  { %1715 = vmatpush.msrb.mxu1 %v3935_v3 }
 0xcfd   :  { %v1591_v10 = vadd.f32 %v3050_v50, %v1590_v7  ;;  %v3944_v7 = vld [vmem:[#allocation3 + $0x148] sm:$0xff] }
 0xcfe   :  { %1716 = vmatpush.msrb.mxu1 %v3944_v7 }
 0xcff   :  { %v1595_v31 = vsel %vm1594_vm4, %v3050_v50, %v1591_v10  ;;  %v3960_v10 = vld [vmem:[#allocation3 + $0x100] sm:$0xff] }
 0xd00   :  { %v3870_v17 = vsel %vm1597_vm5, %v1599_v41, %v1595_v31  ;;  %v3969_v31 = vld [vmem:[#allocation3 + $0xe0] sm:$0xff]  ;;  %v3971_v41 = vld [vmem:[#allocation3 + $0xe8] sm:$0xff] }
 0xd01   :  { %v1603_v6 = vmul.f32 %v3870_v17, %v3809_v12  ;;  %v3900_v12 = vld [vmem:[#allocation3 + $0x1e0] sm:$0xff] }
 0xd02   :  { %1691 = vmatpush.msra.mxu0 %v3900_v12 }
 0xd2d   :  { %v1480_v30 = vpop.permute.xlu2 %1479 }
 0xd2e   :  { %v1482_v19 = vmul.f32 %v1480_v30, %v3864_v29 }
 0xd30   :  { %1484 = vrot.lane.b32.xlu2 %v1482_v19, %s3200_s19 }
 0xd43   :  { %v1522_v60 = vpop.permute.xlu0 %1521 }
 0xd44   :  { %v1524_v1 = vmul.f32 %v1522_v60, %v1516_v33  ;;  %v3921_v60 = vld [vmem:[#allocation3 + $0x1b0] sm:$0xff] }
 0xd45   :  { %1733 = vmatpush.msra.mxu2 %v3921_v60 }
 0xd46   :  { %1526 = vrot.lane.b32.xlu0 %v1524_v1, %s3200_s19  ;;  %v3933_v1 = vld [vmem:[#allocation3 + $0x160] sm:$0xff] }
 0xd47   :  { %1734 = vmatpush.msra.mxu2 %v3930_v63 }
 0xd49   :  { %1735 = vmatpush.msra.mxu2 %v3939_v4 }
 0xd4a   :  { %v1564_v8 = vpop.permute.xlu1 %1563 }
 0xd4b   :  { %v1566_v18 = vmul.f32 %v1564_v8, %v1558_v0  ;;  %v3951_v8 = vld [vmem:[#allocation3 + $0x120] sm:$0xff]  ;;  %1736 = vmatpush.msra.mxu2 %v3948_v16 }
 0xd4d   :  { %1568 = vrot.lane.b32.xlu2 %v1566_v18, %s3200_s19  ;;  %v3957_v18 = vld [vmem:[#allocation3 + $0x130] sm:$0xff] }
 0xd4e   :  { %1737 = vmatpush.msra.mxu2 %v3957_v18 }
 0xd50   :  { %1738 = vmatpush.msra.mxu2 %v3966_v11 }
 0xd52   :  { %v1606_v20 = vpop.permute.xlu1 %1605 }
 0xd53   :  { %v1608_v21 = vmul.f32 %v1606_v20, %v3870_v17  ;;  %v3975_v20 = vld [vmem:[#allocation3 + $0xf0] sm:$0xff] }
 0xd54   :  { %1739 = vmatpush.msra.mxu2 %v3975_v20 }
 0xd55   :  { %1610 = vrot.lane.b32.xlu0 %v1608_v21, %s3200_s19  ;;  %v3978_v21 = vld [vmem:[#allocation3 + $0xc0] sm:$0xff] }
 0xd8a   :  { %v1485_v47 = vpop.permute.xlu2 %1484 }
 0xd8b   :  { %v3876_v25 = vadd.f32 %v1485_v47, %v1477_v22  ;;  %v3980_v22 = vld [vmem:[#allocation3 + $0xc8] sm:$0xff]  ;;  %v3984_v47 = vld [vmem:[#allocation3 + $0xd0] sm:$0xff] }
 0xd8c   :  { %1740 = vmatpush.msra.mxu2 %v3984_v47 }
 0xd8d   :  { %3051 = vtanh.f32 %v3876_v25 }
 0xd93   :  { %v3052_v51 = vpop.eup %3051 }
 0xd94   :  { %1490 = vrot.lane.b32.xlu1 %v3052_v51, %s3203_s23  ;;  %v3987_v51 = vld [vmem:[#allocation3 + $0xa0] sm:$0xff] }
 0xda7   :  { %v1569_v61 = vpop.permute.xlu2 %1568 }
 0xda8   :  { %v3881_v26 = vadd.f32 %v1569_v61, %v1561_v15  ;;  %v3989_v15 = vld [vmem:[#allocation3 + $0xa8] sm:$0xff]  ;;  %v3993_v61 = vld [vmem:[#allocation3 + $0xb0] sm:$0xff] }
 0xda9   :  { %1741 = vmatpush.msra.mxu2 %v3993_v61 }
 0xdaa   :  { %3053 = vtanh.f32 %v3881_v26 }
 0xdb0   :  { %v3054_v30 = vpop.eup %3053 }
 0xdb1   :  { %1574 = vrot.lane.b32.xlu0 %v3054_v30, %s3203_s23  ;;  %v4002_v30 = vld [vmem:[#allocation3 + $0x88] sm:$0xff] }
 0xdb8   :  { %v1527_v19 = vpop.permute.xlu0 %1526 }
 0xdb9   :  { %v3886_v24 = vadd.f32 %v1527_v19, %v1519_v27  ;;  %v4004_v27 = vld [vmem:[#allocation3 + $0x90] sm:$0xff]  ;;  %v4006_v19 = vld [vmem:[#allocation3 + $0x68] sm:$0xff] }
 0xdba   :  { %1742 = vmatpush.msra.mxu2 %v4004_v27 }
 0xdbb   :  { %3055 = vtanh.f32 %v3886_v24 }
 0xdc1   :  { %v3056_v5 = vpop.eup %3055 }
 0xdc2   :  { %1532 = vrot.lane.b32.xlu2 %v3056_v5, %s3203_s23 }
 0xdc7   :  { %v1611_v36 = vpop.permute.xlu0 %1610 }
 0xdc8   :  { %v3892_v37 = vadd.f32 %v1611_v36, %v1603_v6  ;;  %v4011_v6 = vld [vmem:[#allocation3 + $0x70] sm:$0xff] }
 0xdc9   :  { %1743 = vmatpush.msra.mxu2 %v4011_v6  ;;  %v4030_v36 = vld [vmem:[#allocation3 + $0x30] sm:$0xff] }
 0xdca   :  { %3057 = vtanh.f32 %v3892_v37 }
 0xdd0   :  { %v3058_v38 = vpop.eup %3057 }
 0xdd1   :  { %1616 = vrot.lane.b32.xlu0 %v3058_v38, %s3203_s23  ;;  %v4037_v38 = vld [vmem:[#allocation3 + $0x10] sm:$0xff] }
 0xe06   :  { %v1491_v9 = vpop.permute.xlu1 %1490 }
 0xe07   :  { %v1493_v13 = vmul.f32 %v1491_v9, %v3864_v29  ;;  %v3908_v29 = vld [vmem:[#allocation3 + $0x1c0] sm:$0xff] }
 0xe08   :  { %1692 = vmatpush.msra.mxu0 %v3908_v29 }
 0xe09   :  { %1495 = vrot.lane.b32.xlu1 %v1493_v13, %s3200_s19 }
 0xe0a   :  { %1693 = vmatpush.msra.mxu0 %v3915_v58 }
 0xe1c   :  { %v1533_v2 = vpop.permute.xlu2 %1532 }
 0xe1d   :  { %v1535_v49 = vmul.f32 %v1533_v2, %v1516_v33  ;;  %v3924_v33 = vld [vmem:[#allocation3 + $0x180] sm:$0xff] }
 0xe1e   :  { %1694 = vmatpush.msra.mxu0 %v3924_v33 }
 0xe1f   :  { %1537 = vrot.lane.b32.xlu2 %v1535_v49, %s3203_s23 }
 0xe20   :  { %1695 = vmatpush.msra.mxu0 %v3933_v1 }
 0xe22   :  { %1696 = vmatpush.msra.mxu0 %v3942_v40 }
 0xe23   :  { %v1575_v50 = vpop.permute.xlu0 %1574 }
 0xe24   :  { %v1577_v39 = vmul.f32 %v1575_v50, %v1558_v0  ;;  %v3953_v0 = vld [vmem:[#allocation3 + $0x128] sm:$0xff]  ;;  %1697 = vmatpush.msra.mxu0 %v3951_v8 }
 0xe25   :  { %1717 = vmatpush.msrb.mxu1 %v3953_v0 }
 0xe26   :  { %1579 = vrot.lane.b32.xlu1 %v1577_v39, %s3204_s17  ;;  %1698 = vmatpush.msra.mxu0 %v3960_v10 }
 0xe27   :  { %1718 = vmatpush.msrb.mxu1 %v3962_v14 }
 0xe28   :  { %1699 = vmatpush.msra.mxu0 %v3969_v31 }
 0xe29   :  { %1719 = vmatpush.msrb.mxu1 %v3971_v41 }
 0xe2a   :  { %1700 = vmatpush.msra.mxu0 %v3978_v21 }
 0xe2b   :  { %1720 = vmatpush.msrb.mxu1 %v3980_v22 }
 0xe2c   :  { %1701 = vmatpush.msra.mxu0 %v3987_v51 }
 0xe2d   :  { %1721 = vmatpush.msrb.mxu1 %v3989_v15 }
 0xe2e   :  { %1702 = vmatpush.msra.mxu0 %v3817_v32 }
 0xe2f   :  { %1722 = vmatpush.msrb.mxu1 %v4002_v30 }
 0xe30   :  { %1703 = vmatpush.msra.mxu0 %v3819_v35  ;;  %v4017_v35 = vld [vmem:[#allocation3 + $0x48] sm:$0xff] }
 0xe31   :  { %1723 = vmatpush.msrb.mxu1 %v4006_v19 }
 0xe32   :  { %1704 = vmatpush.msra.mxu0 %v3826_v45  ;;  %v4019_v45 = vld [vmem:[#allocation3 + $0x50] sm:$0xff] }
 0xe33   :  { %1724 = vmatpush.msrb.mxu1 %v4017_v35  ;;  %1744 = vmatpush.msra.mxu2 %v4019_v45 }
 0xe34   :  { %1705 = vmatpush.msra.mxu0 %v3833_v46  ;;  %v4028_v46 = vld [vmem:[#allocation3 + $0x28] sm:$0xff] }
 0xe35   :  { %1725 = vmatpush.msrb.mxu1 %v4028_v46  ;;  %1745 = vmatpush.msra.mxu2 %v4030_v36 }
 0xe36   :  { %1706 = vmatpush.msra.mxu0 %v3836_v48  ;;  %v4035_v48 = vld [vmem:[#allocation3 + $0x8] sm:$0xff] }
 0xe37   :  { %1726 = vmatpush.msrb.mxu1 %v4035_v48  ;;  %1746 = vmatpush.msra.mxu2 %v4037_v38 }
 0xe38   :  { %2006 = vmatpush.msrb.mxu0 %v3900_v12 }
 0xe39   :  { %2026 = vmatpush.msra.mxu1 %v3902_v54  ;;  %2046 = vmatpush.msrb.mxu2 %v3904_v55 }
 0xe3a   :  { %2007 = vmatpush.msrb.mxu0 %v3908_v29 }
 0xe3b   :  { %2027 = vmatpush.msra.mxu1 %v3910_v56  ;;  %2047 = vmatpush.msrb.mxu2 %v3912_v57 }
 0xe3c   :  { %2008 = vmatpush.msrb.mxu0 %v3915_v58 }
 0xe3d   :  { %2028 = vmatpush.msra.mxu1 %v3917_v59  ;;  %2048 = vmatpush.msrb.mxu2 %v3921_v60 }
 0xe3e   :  { %2009 = vmatpush.msrb.mxu0 %v3924_v33 }
 0xe3f   :  { %2029 = vmatpush.msra.mxu1 %v3926_v62  ;;  %2049 = vmatpush.msrb.mxu2 %v3930_v63 }
 0xe40   :  { %2010 = vmatpush.msrb.mxu0 %v3933_v1 }
 0xe41   :  { %2030 = vmatpush.msra.mxu1 %v3935_v3  ;;  %2050 = vmatpush.msrb.mxu2 %v3939_v4 }
 0xe42   :  { %2011 = vmatpush.msrb.mxu0 %v3942_v40 }
 0xe43   :  { %2031 = vmatpush.msra.mxu1 %v3944_v7  ;;  %2051 = vmatpush.msrb.mxu2 %v3948_v16  ;;  %v1617_v9 = vpop.permute.xlu0 %1616 }
 0xe44   :  { %2012 = vmatpush.msrb.mxu0 %v3951_v8  ;;  %v4074_v13 = vmul.f32 %v1617_v9, %v3870_v17 }
 0xe45   :  { %2032 = vmatpush.msra.mxu1 %v3953_v0  ;;  %2052 = vmatpush.msrb.mxu2 %v3957_v18 }
 0xe46   :  { %2013 = vmatpush.msrb.mxu0 %v3960_v10 }
 0xe47   :  { %2033 = vmatpush.msra.mxu1 %v3962_v14  ;;  %2053 = vmatpush.msrb.mxu2 %v3966_v11 }
 0xe48   :  { %2014 = vmatpush.msrb.mxu0 %v3969_v31 }
 0xe49   :  { %2034 = vmatpush.msra.mxu1 %v3971_v41  ;;  %2054 = vmatpush.msrb.mxu2 %v3975_v20 }
 0xe4a   :  { %2015 = vmatpush.msrb.mxu0 %v3978_v21 }
 0xe4b   :  { %2035 = vmatpush.msra.mxu1 %v3980_v22  ;;  %2055 = vmatpush.msrb.mxu2 %v3984_v47 }
 0xe4c   :  { %2016 = vmatpush.msrb.mxu0 %v3987_v51 }
 0xe4d   :  { %2036 = vmatpush.msra.mxu1 %v3989_v15  ;;  %2056 = vmatpush.msrb.mxu2 %v3993_v61 }
 0xe4f   :  { %2037 = vmatpush.msra.mxu1 %v4002_v30  ;;  %2057 = vmatpush.msrb.mxu2 %v4004_v27 }
 0xe51   :  { %2038 = vmatpush.msra.mxu1 %v4006_v19  ;;  %2058 = vmatpush.msrb.mxu2 %v4011_v6 }
 0xe53   :  { %2039 = vmatpush.msra.mxu1 %v4017_v35  ;;  %2059 = vmatpush.msrb.mxu2 %v4019_v45 }
 0xe55   :  { %2040 = vmatpush.msra.mxu1 %v4028_v46  ;;  %2060 = vmatpush.msrb.mxu2 %v4030_v36 }
 0xe57   :  { %2041 = vmatpush.msra.mxu1 %v4035_v48  ;;  %2061 = vmatpush.msrb.mxu2 %v4037_v38 }
 0xe79   :  { %v1538_v32 = vpop.permute.xlu2 %1537 }
 0xe7b   :  { %v1496_v5 = vpop.permute.xlu1 %1495 }
 0xe7c   :  { %1498 = vst.msk [vmem:[%s4523_s9] sm:$0xff] %vm276_vm7, %v1496_v5 }
 0xe7d   :  { %1540 = vst.msk [vmem:[%s4523_s9] sm:$0xff] %vm435_vm2, %v1538_v32 }
 0xe98   :  { %v1580_v2 = vpop.permute.xlu1 %1579 }
 0xe99   :  { %1582 = vst.msk [vmem:[%s4523_s9] sm:$0xff] %vm675_vm0, %v1580_v2 }
 0xe9a   :  { %1620 = vst.msk [vmem:[%s4523_s9] sm:$0xff] %vm989_vm11, %v4074_v13 }
 0xea1   :  { %v1626_v17 = vld [vmem:[%s4523_s9] sm:$0xff] }
 0xea2   :  { %1707 = vmatmul.f32.vlgmr.msra.gmra.mxu0 %v1626_v17  ;;  %1727 = vmatmul.f32.vlgmr.msrb.gmra.mxu1 %v1626_v17 }
 0xea3   :  { %1747 = vmatmul.f32.vlgmr.msra.gmra.mxu2 %v1626_v17  ;;  %1767 = vmatmul.f32.vlgmr.msra.gmra.mxu3 %v1626_v17 }
 0xf1f   :  { %v1708_v49 = vpop.f32.mrf.mxu0  ;;  %v1728_v50 = vpop.f32.mrf.mxu1 }
 0xf20   :  { %v1709_v39 = vadd.f32 %v1708_v49, %v3363_v34  ;;  %v1729_v12 = vadd.f32 %v1728_v50, %v3388_v23 }
 0xf22   :  { %v1771_v54 = vadd.f32 %v1709_v39, %v3524_v42  ;;  %3059 = vtanh.f32 %v1729_v12  ;;  %v2883_v1 = vmul.f32 -1.442695, %v1729_v12 }
 0xf24   :  { %3061 = vtanh.f32 %v1771_v54  ;;  %v2882_v33 = vmul.f32 -1.442695, %v1771_v54 }
 0xf26   :  { %v1748_v55 = vpop.f32.mrf.mxu2  ;;  %v1768_v58 = vpop.f32.mrf.mxu3 }
 0xf27   :  { %v1749_v29 = vadd.f32 %v1748_v55, %v3426_v43  ;;  %v1769_v59 = vadd.f32 %v1768_v58, %v3532_v53 }
 0xf28   :  { %v3060_v56 = vpop.eup %3059 }
 0xf29   :  { %3063 = vtanh.f32 %v1749_v29  ;;  %1836 = vrot.lane.b32.xlu0 %v3060_v56, %s3203_s23  ;;  %v2884_v40 = vmul.f32 -1.442695, %v1749_v29  ;;  %v2885_v18 = vmul.f32 -1.442695, %v1769_v59 }
 0xf2a   :  { %v3062_v57 = vpop.eup %3061  ;;  %3065 = vtanh.f32 %v1769_v59 }
 0xf2b   :  { %1794 = vrot.lane.b32.xlu2 %v3062_v57, %s3203_s23  ;;  %3067 = vpow2.f32 %v2882_v33 }
 0xf2f   :  { %v3064_v60 = vpop.eup %3063 }
 0xf30   :  { %1878 = vrot.lane.b32.xlu1 %v3064_v60, %s3203_s23  ;;  %v3066_v42 = vpop.eup %3065 }
 0xf31   :  { %v3068_v62 = vpop.eup %3067 }
 0xf32   :  { %v1775_v63 = vadd.f32 1.0, %v3068_v62 }
 0xf34   :  { %3069 = vrcp.f32 %v1775_v63  ;;  %v1787_v11 = vand.u32 2147483648, %v1775_v63  ;;  %vm1781_vm8 = vweird.f32 %v1775_v63  ;;  %v1785_v31 = vand.u32 2147483647, %v1775_v63 }
 0xf35   :  { %3071 = vpow2.f32 %v2883_v1 }
 0xf36   :  { %3073 = vpow2.f32 %v2884_v40  ;;  %v1788_v21 = vor.u32 1.1754944e-38, %v1787_v11  ;;  %vm1786_vm10 = vcmp.eq.f32.partialorder %v1785_v31, 8.507059e+37 }
 0xf38   :  { %1920 = vrot.lane.b32.xlu1 %v3066_v42, %s3203_s23 }
 0xf3a   :  { %v3070_v3 = vpop.eup %3069 }
 0xf3b   :  { %v1777_v4 = vmul.f32 %v3070_v3, %v1775_v63  ;;  %v3072_v16 = vpop.eup %3071  ;;  %vm1782_vm6 = vweird.f32 %v3070_v3 }
 0xf3c   :  { %v1817_v0 = vadd.f32 1.0, %v3072_v16  ;;  %v3074_v14 = vpop.eup %3073  ;;  %vm1783_vm9 = vmor %vm1781_vm8, %vm1782_vm6 }
 0xf3d   :  { %v1778_v7 = vsub.f32 1.0, %v1777_v4  ;;  %v1859_v41 = vadd.f32 1.0, %v3074_v14 }
 0xf3e   :  { %3075 = vrcp.f32 %v1817_v0  ;;  %v1829_v54 = vand.u32 2147483648, %v1817_v0  ;;  %vm1823_vm13 = vweird.f32 %v1817_v0  ;;  %v1827_v55 = vand.u32 2147483647, %v1817_v0 }
 0xf3f   :  { %v1779_v8 = vmul.f32 %v3070_v3, %v1778_v7  ;;  %3077 = vpow2.f32 %v2885_v18  ;;  %v1871_v63 = vand.u32 2147483648, %v1859_v41  ;;  %vm1865_vm3 = vweird.f32 %v1859_v41 }
 0xf40   :  { %3079 = vrcp.f32 %v1859_v41  ;;  %v1830_v58 = vor.u32 1.1754944e-38, %v1829_v54  ;;  %vm1828_vm15 = vcmp.eq.f32.partialorder %v1827_v55, 8.507059e+37  ;;  %v1869_v1 = vand.u32 2147483647, %v1859_v41 }
 0xf41   :  { %v1780_v10 = vadd.f32 %v3070_v3, %v1779_v8  ;;  %v1872_v40 = vor.u32 1.1754944e-38, %v1871_v63  ;;  %v4175_v63 = vld [vmem:[#allocation3 + $0xf8] sm:$0xff] }
 0xf42   :  { %vm1870_vm5 = vcmp.eq.f32.partialorder %v1869_v1, 8.507059e+37  ;;  %v4179_v1 = vld [vmem:[#allocation3 + $0xd8] sm:$0xff] }
 0xf43   :  { %v1784_v20 = vsel %vm1783_vm9, %v3070_v3, %v1780_v10 }
 0xf44   :  { %v3076_v22 = vpop.eup %3075  ;;  %v4109_v51 = vsel %vm1786_vm10, %v1788_v21, %v1784_v20 }
 0xf45   :  { %v3078_v61 = vpop.eup %3077  ;;  %v1819_v5 = vmul.f32 %v3076_v22, %v1817_v0  ;;  %vm1824_vm12 = vweird.f32 %v3076_v22  ;;  %v1792_v21 = vmul.f32 %v4109_v51, %v3876_v25 }
 0xf46   :  { %v1901_v32 = vadd.f32 1.0, %v3078_v61  ;;  %v3080_v9 = vpop.eup %3079  ;;  %vm1825_vm14 = vmor %vm1823_vm13, %vm1824_vm12 }
 0xf47   :  { %v1820_v2 = vsub.f32 1.0, %v1819_v5  ;;  %v1861_v17 = vmul.f32 %v3080_v9, %v1859_v41  ;;  %vm1866_vm1 = vweird.f32 %v3080_v9 }
 0xf48   :  { %3081 = vrcp.f32 %v1901_v32  ;;  %vm1867_vm4 = vmor %vm1865_vm3, %vm1866_vm1  ;;  %v1913_v18 = vand.u32 2147483648, %v1901_v32  ;;  %vm1907_vm8 = vweird.f32 %v1901_v32  ;;  %v1911_v10 = vand.u32 2147483647, %v1901_v32 }
 0xf49   :  { %v1821_v49 = vmul.f32 %v3076_v22, %v1820_v2  ;;  %v1862_v50 = vsub.f32 1.0, %v1861_v17 }
 0xf4a   :  { %v1914_v11 = vor.u32 1.1754944e-38, %v1913_v18  ;;  %vm1912_vm10 = vcmp.eq.f32.partialorder %v1911_v10, 8.507059e+37  ;;  %v1950_v18 = vld [vmem:[#allocation3 + $0x40] sm:$0xff]  ;;  %v4198_v10 = vld [vmem:[#allocation3 + $0x58] sm:$0xff] }
 0xf4b   :  { %v1822_v12 = vadd.f32 %v3076_v22, %v1821_v49  ;;  %v1863_v29 = vmul.f32 %v3080_v9, %v1862_v50 }
 0xf4d   :  { %v1826_v57 = vsel %vm1825_vm14, %v3076_v22, %v1822_v12  ;;  %v1864_v42 = vadd.f32 %v3080_v9, %v1863_v29 }
 0xf4e   :  { %v3082_v39 = vpop.eup %3081  ;;  %v1831_v60 = vsel %vm1828_vm15, %v1830_v58, %v1826_v57  ;;  %v4147_v58 = vld [vmem:[#allocation3 + $0x1d8] sm:$0xff] }
 0xf4f   :  { %v1903_v56 = vmul.f32 %v3082_v39, %v1901_v32  ;;  %v1868_v3 = vsel %vm1867_vm4, %v3080_v9, %v1864_v42  ;;  %vm1908_vm6 = vweird.f32 %v3082_v39  ;;  %v1834_v25 = vmul.f32 %v1831_v60, %v3886_v24  ;;  %v4163_v42 = vld [vmem:[#allocation3 + $0x158] sm:$0xff] }
 0xf50   :  { %v1873_v16 = vsel %vm1870_vm5, %v1872_v40, %v1868_v3  ;;  %vm1909_vm9 = vmor %vm1907_vm8, %vm1908_vm6  ;;  %v4183_v3 = vld [vmem:[#allocation3 + $0xb8] sm:$0xff] }
 0xf51   :  { %v1904_v33 = vsub.f32 1.0, %v1903_v56  ;;  %v1876_v61 = vmul.f32 %v1873_v16, %v3881_v26  ;;  %v4189_v40 = vld [vmem:[#allocation3 + $0x98] sm:$0xff] }
 0xf53   :  { %v1905_v4 = vmul.f32 %v3082_v39, %v1904_v33  ;;  %v4167_v33 = vld [vmem:[#allocation3 + $0x138] sm:$0xff] }
 0xf55   :  { %v1906_v0 = vadd.f32 %v3082_v39, %v1905_v4  ;;  %v1958_v4 = vld [vmem:[#allocation3 + $0x80] sm:$0xff] }
 0xf56   :  { %2017 = vmatpush.msrb.mxu0 %v1958_v4 }
 0xf57   :  { %v1910_v14 = vsel %vm1909_vm9, %v3082_v39, %v1906_v0 }
 0xf58   :  { %v4115_v31 = vsel %vm1912_vm10, %v1914_v11, %v1910_v14  ;;  %v1946_v14 = vld [vmem:[#allocation3 + $0x20] sm:$0xff]  ;;  %v4206_v11 = vld [vmem:[#allocation3 + $0x38] sm:$0xff] }
 0xf59   :  { %v1918_v26 = vmul.f32 %v4115_v31, %v3892_v37  ;;  %v4145_v37 = vld [vmem:[#allocation3 + $0x1f8] sm:$0xff] }
 0xf5a   :  { %2066 = vmatpush.msrb.mxu3 %v4145_v37  ;;  %2345 = vmatpush.msra.mxu2 %v4145_v37 }
 0xf5c   :  { %2067 = vmatpush.msrb.mxu3 %v4147_v58  ;;  %2346 = vmatpush.msra.mxu2 %v4147_v58 }
 0xf85   :  { %v1795_v47 = vpop.permute.xlu2 %1794 }
 0xf86   :  { %v1797_v15 = vmul.f32 %v1795_v47, %v4109_v51 }
 0xf88   :  { %1799 = vrot.lane.b32.xlu2 %v1797_v15, %s3200_s19 }
 0xf9b   :  { %v1837_v59 = vpop.permute.xlu0 %1836 }
 0xf9c   :  { %v1839_v62 = vmul.f32 %v1837_v59, %v1831_v60  ;;  %v4151_v59 = vld [vmem:[#allocation3 + $0x1b8] sm:$0xff] }
 0xf9d   :  { %2068 = vmatpush.msrb.mxu3 %v4151_v59  ;;  %2347 = vmatpush.msra.mxu2 %v4151_v59 }
 0xf9e   :  { %1841 = vrot.lane.b32.xlu0 %v1839_v62, %s3200_s19  ;;  %v4171_v62 = vld [vmem:[#allocation3 + $0x118] sm:$0xff] }
 0xfa2   :  { %v1879_v7 = vpop.permute.xlu1 %1878 }
 0xfa3   :  { %v1881_v8 = vmul.f32 %v1879_v7, %v1873_v16  ;;  %v1954_v7 = vld [vmem:[#allocation3 + $0x60] sm:$0xff] }
 0xfa4   :  { %2018 = vmatpush.msrb.mxu0 %v1954_v7 }
 0xfa5   :  { %1883 = vrot.lane.b32.xlu2 %v1881_v8, %s3200_s19  ;;  %v4192_v8 = vld [vmem:[#allocation3 + $0x78] sm:$0xff] }
 0xfa6   :  { %2019 = vmatpush.msrb.mxu0 %v1950_v18 }
 0xfa8   :  { %2020 = vmatpush.msrb.mxu0 %v1946_v14 }
 0xfaa   :  { %v1921_v41 = vpop.permute.xlu1 %1920 }
 0xfab   :  { %v1923_v20 = vmul.f32 %v1921_v41, %v4115_v31  ;;  %v1942_v41 = vld [vmem:[#allocation3] sm:$0xff] }
 0xfac   :  { %2021 = vmatpush.msrb.mxu0 %v1942_v41 }
 0xfad   :  { %1925 = vrot.lane.b32.xlu0 %v1923_v20, %s3200_s19  ;;  %v4210_v20 = vld [vmem:[#allocation3 + $0x18] sm:$0xff] }
 0xfe2   :  { %v1800_v22 = vpop.permute.xlu2 %1799 }
 0xfe3   :  { %v4121_v47 = vadd.f32 %v1800_v22, %v1792_v21 }
 0xfe5   :  { %3083 = vtanh.f32 %v4121_v47 }
 0xfeb   :  { %v3084_v15 = vpop.eup %3083 }
 0xfec   :  { %1805 = vrot.lane.b32.xlu1 %v3084_v15, %s3203_s23 }
 0xfff   :  { %v1884_v5 = vpop.permute.xlu2 %1883 }
0x1000   :  { %v4126_v32 = vadd.f32 %v1884_v5, %v1876_v61 }
0x1002   :  { %3085 = vtanh.f32 %v4126_v32 }
0x1008   :  { %v3086_v9 = vpop.eup %3085 }
0x1009   :  { %1889 = vrot.lane.b32.xlu0 %v3086_v9, %s3203_s23 }
0x1010   :  { %v1842_v2 = vpop.permute.xlu0 %1841 }
0x1011   :  { %v4131_v17 = vadd.f32 %v1842_v2, %v1834_v25 }
0x1013   :  { %3087 = vtanh.f32 %v4131_v17 }
0x1019   :  { %v3088_v49 = vpop.eup %3087 }
0x101a   :  { %1847 = vrot.lane.b32.xlu2 %v3088_v49, %s3203_s23 }
0x101f   :  { %v1926_v50 = vpop.permute.xlu0 %1925 }
0x1020   :  { %v4137_v39 = vadd.f32 %v1926_v50, %v1918_v26 }
0x1022   :  { %3089 = vtanh.f32 %v4137_v39 }
0x1028   :  { %v3090_v12 = vpop.eup %3089 }
0x1029   :  { %1931 = vrot.lane.b32.xlu0 %v3090_v12, %s3203_s23 }
0x105e   :  { %v1806_v24 = vpop.permute.xlu1 %1805 }
0x105f   :  { %v1808_v54 = vmul.f32 %v1806_v24, %v4109_v51  ;;  %v4155_v51 = vld [vmem:[#allocation3 + $0x198] sm:$0xff] }
0x1060   :  { %2069 = vmatpush.msrb.mxu3 %v4155_v51  ;;  %2348 = vmatpush.msra.mxu2 %v4155_v51 }
0x1061   :  { %1810 = vrot.lane.b32.xlu1 %v1808_v54, %s3200_s19 }
0x1074   :  { %v1848_v55 = vpop.permute.xlu2 %1847 }
0x1075   :  { %v1850_v29 = vmul.f32 %v1848_v55, %v1831_v60  ;;  %v4159_v60 = vld [vmem:[#allocation3 + $0x178] sm:$0xff] }
0x1076   :  { %2070 = vmatpush.msrb.mxu3 %v4159_v60  ;;  %2349 = vmatpush.msra.mxu2 %v4159_v60 }
0x1077   :  { %1852 = vrot.lane.b32.xlu2 %v1850_v29, %s3203_s23 }
0x1078   :  { %2071 = vmatpush.msrb.mxu3 %v4163_v42  ;;  %2350 = vmatpush.msra.mxu2 %v4163_v42 }
0x107a   :  { %2072 = vmatpush.msrb.mxu3 %v4167_v33  ;;  %2351 = vmatpush.msra.mxu2 %v4167_v33 }
0x107b   :  { %v1890_v56 = vpop.permute.xlu0 %1889 }
0x107c   :  { %v1892_v57 = vmul.f32 %v1890_v56, %v1873_v16  ;;  %2073 = vmatpush.msrb.mxu3 %v4171_v62  ;;  %2352 = vmatpush.msra.mxu2 %v4171_v62 }
0x107e   :  { %1894 = vrot.lane.b32.xlu1 %v1892_v57, %s3204_s17  ;;  %2074 = vmatpush.msrb.mxu3 %v4175_v63 }
0x107f   :  { %2353 = vmatpush.msra.mxu2 %v4175_v63 }
0x1080   :  { %2075 = vmatpush.msrb.mxu3 %v4179_v1 }
0x1081   :  { %2354 = vmatpush.msra.mxu2 %v4179_v1 }
0x1082   :  { %2076 = vmatpush.msrb.mxu3 %v4183_v3 }
0x1083   :  { %2355 = vmatpush.msra.mxu2 %v4183_v3 }
0x1084   :  { %2077 = vmatpush.msrb.mxu3 %v4189_v40 }
0x1085   :  { %2356 = vmatpush.msra.mxu2 %v4189_v40 }
0x1086   :  { %2078 = vmatpush.msrb.mxu3 %v4192_v8 }
0x1087   :  { %2357 = vmatpush.msra.mxu2 %v4192_v8 }
0x1088   :  { %2079 = vmatpush.msrb.mxu3 %v4198_v10 }
0x1089   :  { %2358 = vmatpush.msra.mxu2 %v4198_v10 }
0x108a   :  { %2080 = vmatpush.msrb.mxu3 %v4206_v11 }
0x108b   :  { %2359 = vmatpush.msra.mxu2 %v4206_v11 }
0x108c   :  { %2081 = vmatpush.msrb.mxu3 %v4210_v20 }
0x108d   :  { %2360 = vmatpush.msra.mxu2 %v4210_v20 }
0x109b   :  { %v1932_v21 = vpop.permute.xlu0 %1931 }
0x109c   :  { %v4218_v22 = vmul.f32 %v1932_v21, %v4115_v31 }
0x10d1   :  { %v1853_v0 = vpop.permute.xlu2 %1852 }
0x10d3   :  { %v1811_v16 = vpop.permute.xlu1 %1810 }
0x10d4   :  { %1813 = vst.msk [vmem:[%s4523_s9] sm:$0xff] %vm276_vm7, %v1811_v16 }
0x10d5   :  { %1855 = vst.msk [vmem:[%s4523_s9] sm:$0xff] %vm435_vm2, %v1853_v0 }
0x10f0   :  { %v1895_v15 = vpop.permute.xlu1 %1894 }
0x10f1   :  { %1897 = vst.msk [vmem:[%s4523_s9] sm:$0xff] %vm675_vm0, %v1895_v15 }
0x10f2   :  { %1935 = vst.msk [vmem:[%s4523_s9] sm:$0xff] %vm989_vm11, %v4218_v22 }
0x10f9   :  { %v1941_v61 = vld [vmem:[%s4523_s9] sm:$0xff] }
0x10fa   :  { %2022 = vmatmul.f32.vlgmr.msrb.gmra.mxu0 %v1941_v61  ;;  %2042 = vmatmul.f32.vlgmr.msra.gmra.mxu1 %v1941_v61 }
0x10fb   :  { %2062 = vmatmul.f32.vlgmr.msrb.gmra.mxu2 %v1941_v61  ;;  %2082 = vmatmul.f32.vlgmr.msrb.gmra.mxu3 %v1941_v61 }
0x1177   :  { %v2023_v31 = vpop.f32.mrf.mxu0  ;;  %v2043_v5 = vpop.f32.mrf.mxu1 }
0x1178   :  { %v2024_v9 = vadd.f32 %v2023_v31, %v3363_v34  ;;  %v2044_v25 = vadd.f32 %v2043_v5, %v3388_v23 }
0x117a   :  { %v2086_v2 = vadd.f32 %v2024_v9, %v3526_v44  ;;  %3091 = vtanh.f32 %v2044_v25  ;;  %v2887_v57 = vmul.f32 -1.442695, %v2044_v25 }
0x117c   :  { %3093 = vtanh.f32 %v2086_v2  ;;  %v2886_v55 = vmul.f32 -1.442695, %v2086_v2 }
0x117e   :  { %v2063_v49 = vpop.f32.mrf.mxu2  ;;  %v2083_v24 = vpop.f32.mrf.mxu3 }
0x117f   :  { %v2064_v26 = vadd.f32 %v2063_v49, %v3426_v43  ;;  %v2084_v54 = vadd.f32 %v2083_v24, %v3532_v53 }
0x1180   :  { %v3092_v50 = vpop.eup %3091 }
0x1181   :  { %3095 = vtanh.f32 %v2064_v26  ;;  %2151 = vrot.lane.b32.xlu0 %v3092_v50, %s3203_s23  ;;  %v2888_v16 = vmul.f32 -1.442695, %v2064_v26  ;;  %v2889_v21 = vmul.f32 -1.442695, %v2084_v54 }
0x1182   :  { %v3094_v12 = vpop.eup %3093  ;;  %3097 = vtanh.f32 %v2084_v54 }
0x1183   :  { %2109 = vrot.lane.b32.xlu2 %v3094_v12, %s3203_s23  ;;  %3099 = vpow2.f32 %v2886_v55 }
0x1187   :  { %v3096_v34 = vpop.eup %3095 }
0x1188   :  { %2193 = vrot.lane.b32.xlu1 %v3096_v34, %s3203_s23  ;;  %v3098_v44 = vpop.eup %3097 }
0x1189   :  { %v3100_v29 = vpop.eup %3099 }
0x118a   :  { %v2090_v56 = vadd.f32 1.0, %v3100_v29 }
0x118c   :  { %3101 = vrcp.f32 %v2090_v56  ;;  %v2102_v31 = vand.u32 2147483648, %v2090_v56  ;;  %vm2096_vm13 = vweird.f32 %v2090_v56  ;;  %v2100_v5 = vand.u32 2147483647, %v2090_v56 }
0x118d   :  { %3103 = vpow2.f32 %v2887_v57 }
0x118e   :  { %3105 = vpow2.f32 %v2888_v16  ;;  %v2103_v2 = vor.u32 1.1754944e-38, %v2102_v31  ;;  %vm2101_vm15 = vcmp.eq.f32.partialorder %v2100_v5, 8.507059e+37 }
0x1190   :  { %2235 = vrot.lane.b32.xlu1 %v3098_v44, %s3203_s23 }
0x1192   :  { %v3102_v4 = vpop.eup %3101 }
0x1193   :  { %v2092_v7 = vmul.f32 %v3102_v4, %v2090_v56  ;;  %v3104_v18 = vpop.eup %3103  ;;  %vm2097_vm12 = vweird.f32 %v3102_v4 }
0x1194   :  { %v2132_v41 = vadd.f32 1.0, %v3104_v18  ;;  %v3106_v61 = vpop.eup %3105  ;;  %vm2098_vm14 = vmor %vm2096_vm13, %vm2097_vm12 }
0x1195   :  { %v2093_v0 = vsub.f32 1.0, %v2092_v7  ;;  %v2174_v9 = vadd.f32 1.0, %v3106_v61 }
0x1196   :  { %3107 = vrcp.f32 %v2132_v41  ;;  %v2144_v16 = vand.u32 2147483648, %v2132_v41  ;;  %vm2138_vm3 = vweird.f32 %v2132_v41 }
0x1197   :  { %v2094_v14 = vmul.f32 %v3102_v4, %v2093_v0  ;;  %3109 = vpow2.f32 %v2889_v21  ;;  %v2142_v0 = vand.u32 2147483647, %v2132_v41  ;;  %vm2180_vm8 = vweird.f32 %v2174_v9 }
0x1198   :  { %3111 = vrcp.f32 %v2174_v9 }
0x1199   :  { %v2095_v15 = vadd.f32 %v3102_v4, %v2094_v14  ;;  %vm2143_vm5 = vcmp.eq.f32.partialorder %v2142_v0, 8.507059e+37 }
0x119b   :  { %v2099_v25 = vsel %vm2098_vm14, %v3102_v4, %v2095_v15  ;;  %v2145_v15 = vor.u32 1.1754944e-38, %v2144_v16 }
0x119c   :  { %v3108_v49 = vpop.eup %3107  ;;  %v4241_v50 = vsel %vm2101_vm15, %v2103_v2, %v2099_v25 }
0x119d   :  { %v3110_v24 = vpop.eup %3109  ;;  %v2134_v54 = vmul.f32 %v3108_v49, %v2132_v41  ;;  %vm2139_vm1 = vweird.f32 %v3108_v49 }
0x119e   :  { %v2216_v34 = vadd.f32 1.0, %v3110_v24  ;;  %v3112_v44 = vpop.eup %3111  ;;  %vm2140_vm4 = vmor %vm2138_vm3, %vm2139_vm1 }
0x119f   :  { %v2135_v55 = vsub.f32 1.0, %v2134_v54  ;;  %v2176_v29 = vmul.f32 %v3112_v44, %v2174_v9  ;;  %vm2181_vm6 = vweird.f32 %v3112_v44 }
0x11a0   :  { %3113 = vrcp.f32 %v2216_v34  ;;  %vm2182_vm9 = vmor %vm2180_vm8, %vm2181_vm6  ;;  %vm2222_vm13 = vweird.f32 %v2216_v34 }
0x11a1   :  { %v2136_v56 = vmul.f32 %v3108_v49, %v2135_v55  ;;  %v2177_v57 = vsub.f32 1.0, %v2176_v29 }
0x11a3   :  { %v2137_v7 = vadd.f32 %v3108_v49, %v2136_v56  ;;  %v2178_v18 = vmul.f32 %v3112_v44, %v2177_v57  ;;  %v2228_v57 = vand.u32 2147483648, %v2216_v34 }
0x11a5   :  { %v2141_v21 = vsel %vm2140_vm4, %v3108_v49, %v2137_v7  ;;  %v2179_v5 = vadd.f32 %v3112_v44, %v2178_v18  ;;  %v2226_v7 = vand.u32 2147483647, %v2216_v34 }
0x11a6   :  { %v3114_v4 = vpop.eup %3113  ;;  %v2146_v31 = vsel %vm2143_vm5, %v2145_v15, %v2141_v21 }
0x11a7   :  { %v2218_v14 = vmul.f32 %v3114_v4, %v2216_v34  ;;  %v2183_v24 = vsel %vm2182_vm9, %v3112_v44, %v2179_v5  ;;  %vm2223_vm12 = vweird.f32 %v3114_v4  ;;  %vm2227_vm15 = vcmp.eq.f32.partialorder %v2226_v7, 8.507059e+37 }
0x11a8   :  { %vm2224_vm14 = vmor %vm2222_vm13, %vm2223_vm12 }
0x11a9   :  { %v2219_v25 = vsub.f32 1.0, %v2218_v14  ;;  %v2107_v14 = vmul.f32 %v4241_v50, %v4121_v47  ;;  %v2149_v47 = vmul.f32 %v2146_v31, %v4131_v17 }
0x11ab   :  { %v2220_v41 = vmul.f32 %v3114_v4, %v2219_v25 }
0x11ad   :  { %v2221_v56 = vadd.f32 %v3114_v4, %v2220_v41 }
0x11af   :  { %v2225_v16 = vsel %vm2224_vm14, %v3114_v4, %v2221_v56 }
0x11dd   :  { %v2110_v26 = vpop.permute.xlu2 %2109 }
0x11de   :  { %v2112_v12 = vmul.f32 %v2110_v26, %v4241_v50  ;;  %v2186_v26 = vand.u32 2147483648, %v2174_v9 }
0x11e0   :  { %2114 = vrot.lane.b32.xlu2 %v2112_v12, %s3200_s19  ;;  %v2184_v12 = vand.u32 2147483647, %v2174_v9  ;;  %v2187_v54 = vor.u32 1.1754944e-38, %v2186_v26  ;;  %v2229_v9 = vor.u32 1.1754944e-38, %v2228_v57 }
0x11e2   :  { %vm2185_vm10 = vcmp.eq.f32.partialorder %v2184_v12, 8.507059e+37  ;;  %v4247_v0 = vsel %vm2227_vm15, %v2229_v9, %v2225_v16  ;;  %v2303_v16 = vld [vmem:[#allocation3 + $0x1f0] sm:$0xff]  ;;  %v2299_v9 = vld [vmem:[#allocation3 + $0x1c8] sm:$0xff] }
0x11e3   :  { %v2188_v49 = vsel %vm2185_vm10, %v2187_v54, %v2183_v24  ;;  %2325 = vmatpush.msrb.mxu1 %v2303_v16  ;;  %2525 = vmatpush.msra.mxu3 %v2303_v16 }
0x11e4   :  { %v2191_v4 = vmul.f32 %v2188_v49, %v4126_v32  ;;  %v2233_v32 = vmul.f32 %v4247_v0, %v4137_v39  ;;  %v2302_v39 = vld [vmem:[#allocation3 + $0x1e8] sm:$0xff] }
0x11e5   :  { %2305 = vmatpush.msra.mxu0 %v2302_v39 }
0x11e7   :  { %2306 = vmatpush.msra.mxu0 %v2299_v9 }
0x11f3   :  { %v2152_v61 = vpop.permute.xlu0 %2151 }
0x11f4   :  { %v2154_v2 = vmul.f32 %v2152_v61, %v2146_v31 }
0x11f6   :  { %2156 = vrot.lane.b32.xlu0 %v2154_v2, %s3200_s19 }
0x11fa   :  { %v2194_v55 = vpop.permute.xlu1 %2193 }
0x11fb   :  { %v2196_v29 = vmul.f32 %v2194_v55, %v2188_v49 }
0x11fd   :  { %2198 = vrot.lane.b32.xlu2 %v2196_v29, %s3200_s19 }
0x1202   :  { %v2236_v44 = vpop.permute.xlu1 %2235 }
0x1203   :  { %v2238_v18 = vmul.f32 %v2236_v44, %v4247_v0  ;;  %v2300_v44 = vld [vmem:[#allocation3 + $0x1d0] sm:$0xff] }
0x1204   :  { %2326 = vmatpush.msrb.mxu1 %v2300_v44  ;;  %2526 = vmatpush.msra.mxu3 %v2300_v44 }
0x1205   :  { %2240 = vrot.lane.b32.xlu0 %v2238_v18, %s3200_s19  ;;  %v2296_v18 = vld [vmem:[#allocation3 + $0x1a8] sm:$0xff] }
0x1206   :  { %2307 = vmatpush.msra.mxu0 %v2296_v18 }
0x123a   :  { %v2115_v21 = vpop.permute.xlu2 %2114 }
0x123b   :  { %v4253_v15 = vadd.f32 %v2115_v21, %v2107_v14  ;;  %v2297_v14 = vld [vmem:[#allocation3 + $0x1b0] sm:$0xff] }
0x123c   :  { %v2294_v21 = vld [vmem:[#allocation3 + $0x190] sm:$0xff]  ;;  %2327 = vmatpush.msrb.mxu1 %v2297_v14  ;;  %2527 = vmatpush.msra.mxu3 %v2297_v14 }
0x123d   :  { %3115 = vtanh.f32 %v4253_v15 }
0x123e   :  { %2328 = vmatpush.msrb.mxu1 %v2294_v21  ;;  %2528 = vmatpush.msra.mxu3 %v2294_v21 }
0x1243   :  { %v3116_v34 = vpop.eup %3115 }
0x1244   :  { %2120 = vrot.lane.b32.xlu1 %v3116_v34, %s3203_s23  ;;  %v2287_v34 = vld [vmem:[#allocation3 + $0x148] sm:$0xff] }
0x1257   :  { %v2199_v61 = vpop.permute.xlu2 %2198 }
0x1258   :  { %v4258_v5 = vadd.f32 %v2199_v61, %v2191_v4  ;;  %v2288_v4 = vld [vmem:[#allocation3 + $0x150] sm:$0xff]  ;;  %v2284_v61 = vld [vmem:[#allocation3 + $0x128] sm:$0xff] }
0x125a   :  { %3117 = vtanh.f32 %v4258_v5 }
0x1260   :  { %v3118_v25 = vpop.eup %3117 }
0x1261   :  { %2204 = vrot.lane.b32.xlu0 %v3118_v25, %s3203_s23  ;;  %v2285_v25 = vld [vmem:[#allocation3 + $0x130] sm:$0xff] }
0x1268   :  { %v2157_v2 = vpop.permute.xlu0 %2156 }
0x1269   :  { %v4263_v26 = vadd.f32 %v2157_v2, %v2149_v47  ;;  %v2281_v47 = vld [vmem:[#allocation3 + $0x108] sm:$0xff]  ;;  %v2282_v2 = vld [vmem:[#allocation3 + $0x110] sm:$0xff] }
0x126b   :  { %3119 = vtanh.f32 %v4263_v26 }
0x1271   :  { %v3120_v12 = vpop.eup %3119 }
0x1272   :  { %2162 = vrot.lane.b32.xlu2 %v3120_v12, %s3203_s23  ;;  %v2278_v12 = vld [vmem:[#allocation3 + $0xe8] sm:$0xff] }
0x1277   :  { %v2241_v24 = vpop.permute.xlu0 %2240 }
0x1278   :  { %v4269_v41 = vadd.f32 %v2241_v24, %v2233_v32  ;;  %v2279_v32 = vld [vmem:[#allocation3 + $0xf0] sm:$0xff]  ;;  %v2275_v24 = vld [vmem:[#allocation3 + $0xc8] sm:$0xff] }
0x127a   :  { %3121 = vtanh.f32 %v4269_v41 }
0x1280   :  { %v3122_v54 = vpop.eup %3121 }
0x1281   :  { %2246 = vrot.lane.b32.xlu0 %v3122_v54, %s3203_s23  ;;  %v2276_v54 = vld [vmem:[#allocation3 + $0xd0] sm:$0xff] }
0x12b6   :  { %v2121_v17 = vpop.permute.xlu1 %2120 }
0x12b7   :  { %v2123_v55 = vmul.f32 %v2121_v17, %v4241_v50  ;;  %v2293_v50 = vld [vmem:[#allocation3 + $0x188] sm:$0xff] }
0x12b8   :  { %2308 = vmatpush.msra.mxu0 %v2293_v50  ;;  %v2272_v17 = vld [vmem:[#allocation3 + $0xa8] sm:$0xff] }
0x12b9   :  { %2125 = vrot.lane.b32.xlu1 %v2123_v55, %s3200_s19  ;;  %v2273_v55 = vld [vmem:[#allocation3 + $0xb0] sm:$0xff] }
0x12cc   :  { %v2163_v29 = vpop.permute.xlu2 %2162 }
0x12cd   :  { %v2165_v56 = vmul.f32 %v2163_v29, %v2146_v31  ;;  %v2290_v31 = vld [vmem:[#allocation3 + $0x168] sm:$0xff] }
0x12ce   :  { %2309 = vmatpush.msra.mxu0 %v2290_v31 }
0x12cf   :  { %2167 = vrot.lane.b32.xlu2 %v2165_v56, %s3203_s23 }
0x12d0   :  { %2310 = vmatpush.msra.mxu0 %v2287_v34 }
0x12d2   :  { %2311 = vmatpush.msra.mxu0 %v2284_v61 }
0x12d3   :  { %v2205_v57 = vpop.permute.xlu0 %2204 }
0x12d4   :  { %v2207_v7 = vmul.f32 %v2205_v57, %v2188_v49  ;;  %v2291_v49 = vld [vmem:[#allocation3 + $0x170] sm:$0xff]  ;;  %2312 = vmatpush.msra.mxu0 %v2281_v47 }
0x12d5   :  { %2329 = vmatpush.msrb.mxu1 %v2291_v49  ;;  %2529 = vmatpush.msra.mxu3 %v2291_v49 }
0x12d6   :  { %2209 = vrot.lane.b32.xlu1 %v2207_v7, %s3204_s17  ;;  %2313 = vmatpush.msra.mxu0 %v2278_v12 }
0x12d7   :  { %2330 = vmatpush.msrb.mxu1 %v2288_v4  ;;  %2530 = vmatpush.msra.mxu3 %v2288_v4 }
0x12d8   :  { %2314 = vmatpush.msra.mxu0 %v2275_v24 }
0x12d9   :  { %2331 = vmatpush.msrb.mxu1 %v2285_v25  ;;  %2531 = vmatpush.msra.mxu3 %v2285_v25 }
0x12da   :  { %2315 = vmatpush.msra.mxu0 %v2272_v17 }
0x12db   :  { %2332 = vmatpush.msrb.mxu1 %v2282_v2  ;;  %2532 = vmatpush.msra.mxu3 %v2282_v2 }
0x12dc   :  { %2316 = vmatpush.msra.mxu0 %v4002_v30 }
0x12dd   :  { %2333 = vmatpush.msrb.mxu1 %v2279_v32  ;;  %2533 = vmatpush.msra.mxu3 %v2279_v32 }
0x12de   :  { %2317 = vmatpush.msra.mxu0 %v4006_v19 }
0x12df   :  { %2334 = vmatpush.msrb.mxu1 %v2276_v54  ;;  %2534 = vmatpush.msra.mxu3 %v2276_v54 }
0x12e0   :  { %2318 = vmatpush.msra.mxu0 %v4017_v35 }
0x12e1   :  { %2335 = vmatpush.msrb.mxu1 %v2273_v55  ;;  %2535 = vmatpush.msra.mxu3 %v2273_v55 }
0x12e2   :  { %2319 = vmatpush.msra.mxu0 %v4028_v46 }
0x12e3   :  { %2336 = vmatpush.msrb.mxu1 %v4004_v27 }
0x12e4   :  { %2320 = vmatpush.msra.mxu0 %v4035_v48 }
0x12e5   :  { %2337 = vmatpush.msrb.mxu1 %v4011_v6 }
0x12e6   :  { %2545 = vmatpush.msrb.mxu0 %v4145_v37 }
0x12e7   :  { %2338 = vmatpush.msrb.mxu1 %v4019_v45 }
0x12e8   :  { %2546 = vmatpush.msrb.mxu0 %v4147_v58 }
0x12e9   :  { %2339 = vmatpush.msrb.mxu1 %v4030_v36 }
0x12ea   :  { %2547 = vmatpush.msrb.mxu0 %v4151_v59 }
0x12eb   :  { %2340 = vmatpush.msrb.mxu1 %v4037_v38 }
0x12ec   :  { %2548 = vmatpush.msrb.mxu0 %v4155_v51 }
0x12ee   :  { %2549 = vmatpush.msrb.mxu0 %v4159_v60 }
0x12f0   :  { %2550 = vmatpush.msrb.mxu0 %v4163_v42 }
0x12f2   :  { %2551 = vmatpush.msrb.mxu0 %v4167_v33 }
0x12f3   :  { %v2247_v30 = vpop.permute.xlu0 %2246 }
0x12f4   :  { %2552 = vmatpush.msrb.mxu0 %v4171_v62  ;;  %v4310_v27 = vmul.f32 %v2247_v30, %v4247_v0 }
0x12f6   :  { %2553 = vmatpush.msrb.mxu0 %v4175_v63 }
0x12f8   :  { %2554 = vmatpush.msrb.mxu0 %v4179_v1 }
0x12fa   :  { %2555 = vmatpush.msrb.mxu0 %v4183_v3 }
0x12fc   :  { %2556 = vmatpush.msrb.mxu0 %v4189_v40 }
0x12fe   :  { %2557 = vmatpush.msrb.mxu0 %v4192_v8 }
0x1300   :  { %2558 = vmatpush.msrb.mxu0 %v4198_v10 }
0x1302   :  { %2559 = vmatpush.msrb.mxu0 %v4206_v11 }
0x1304   :  { %2560 = vmatpush.msrb.mxu0 %v4210_v20 }
0x1329   :  { %v2168_v56 = vpop.permute.xlu2 %2167 }
0x132b   :  { %v2126_v29 = vpop.permute.xlu1 %2125 }
0x132c   :  { %2128 = vst.msk [vmem:[%s4523_s9] sm:$0xff] %vm276_vm7, %v2126_v29 }
0x132d   :  { %2170 = vst.msk [vmem:[%s4523_s9] sm:$0xff] %vm435_vm2, %v2168_v56 }
0x1348   :  { %v2210_v19 = vpop.permute.xlu1 %2209 }
0x1349   :  { %2212 = vst.msk [vmem:[%s4523_s9] sm:$0xff] %vm675_vm0, %v2210_v19 }
0x134a   :  { %2250 = vst.msk [vmem:[%s4523_s9] sm:$0xff] %vm989_vm11, %v4310_v27 }
0x1351   :  { %v2256_v6 = vld [vmem:[%s4523_s9] sm:$0xff] }
0x1352   :  { %2321 = vmatmul.f32.vlgmr.msra.gmra.mxu0 %v2256_v6  ;;  %2341 = vmatmul.f32.vlgmr.msrb.gmra.mxu1 %v2256_v6 }
0x1353   :  { %2361 = vmatmul.f32.vlgmr.msra.gmra.mxu2 %v2256_v6 }
0x13cf   :  { %v2322_v35 = vpop.f32.mrf.mxu0  ;;  %v2342_v45 = vpop.f32.mrf.mxu1 }
0x13d0   :  { %v2323_v46 = vadd.f32 %v2322_v35, %v3388_v23  ;;  %v2343_v36 = vadd.f32 %v2342_v45, %v3426_v43 }
0x13d2   :  { %3123 = vtanh.f32 %v2323_v46  ;;  %v2890_v51 = vmul.f32 -1.442695, %v2323_v46  ;;  %v2891_v1 = vmul.f32 -1.442695, %v2343_v36 }
0x13d3   :  { %3125 = vtanh.f32 %v2343_v36 }
0x13d6   :  { %v2362_v48 = vpop.f32.mrf.mxu2 }
0x13d7   :  { %v2363_v38 = vadd.f32 %v2362_v48, %v3532_v53 }
0x13d8   :  { %v3124_v37 = vpop.eup %3123 }
0x13d9   :  { %v3126_v58 = vpop.eup %3125  ;;  %2387 = vrot.lane.b32.xlu2 %v3124_v37, %s3203_s23  ;;  %3127 = vtanh.f32 %v2363_v38  ;;  %v2892_v23 = vmul.f32 -1.442695, %v2363_v38 }
0x13da   :  { %2429 = vrot.lane.b32.xlu0 %v3126_v58, %s3203_s23  ;;  %3129 = vpow2.f32 %v2890_v51 }
0x13db   :  { %3131 = vpow2.f32 %v2892_v23 }
0x13df   :  { %v3128_v59 = vpop.eup %3127 }
0x13e0   :  { %v3130_v60 = vpop.eup %3129 }
0x13e1   :  { %2471 = vrot.lane.b32.xlu2 %v3128_v59, %s3203_s23  ;;  %v2368_v42 = vadd.f32 1.0, %v3130_v60  ;;  %v3132_v33 = vpop.eup %3131 }
0x13e2   :  { %v2452_v62 = vadd.f32 1.0, %v3132_v33 }
0x13e3   :  { %3133 = vrcp.f32 %v2368_v42  ;;  %v2380_v16 = vand.u32 2147483648, %v2368_v42  ;;  %vm2374_vm3 = vweird.f32 %v2368_v42  ;;  %v2378_v9 = vand.u32 2147483647, %v2368_v42 }
0x13e4   :  { %3135 = vrcp.f32 %v2452_v62  ;;  %v2464_v34 = vand.u32 2147483648, %v2452_v62  ;;  %vm2458_vm8 = vweird.f32 %v2452_v62  ;;  %v2462_v61 = vand.u32 2147483647, %v2452_v62 }
0x13e5   :  { %3137 = vpow2.f32 %v2891_v1  ;;  %v2381_v14 = vor.u32 1.1754944e-38, %v2380_v16  ;;  %vm2379_vm5 = vcmp.eq.f32.partialorder %v2378_v9, 8.507059e+37 }
0x13e6   :  { %v2465_v47 = vor.u32 1.1754944e-38, %v2464_v34  ;;  %vm2463_vm10 = vcmp.eq.f32.partialorder %v2462_v61, 8.507059e+37 }
0x13e9   :  { %v3134_v63 = vpop.eup %3133 }
0x13ea   :  { %v2370_v3 = vmul.f32 %v3134_v63, %v2368_v42  ;;  %v3136_v8 = vpop.eup %3135  ;;  %vm2375_vm1 = vweird.f32 %v3134_v63 }
0x13eb   :  { %v2454_v11 = vmul.f32 %v3136_v8, %v2452_v62  ;;  %v3138_v0 = vpop.eup %3137  ;;  %vm2376_vm4 = vmor %vm2374_vm3, %vm2375_vm1  ;;  %vm2459_vm6 = vweird.f32 %v3136_v8 }
0x13ec   :  { %v2371_v40 = vsub.f32 1.0, %v2370_v3  ;;  %v2410_v57 = vadd.f32 1.0, %v3138_v0  ;;  %vm2460_vm9 = vmor %vm2458_vm8, %vm2459_vm6  ;;  %v2499_v3 = vld [vmem:[#allocation3 + $0x70] sm:$0xff] }
0x13ed   :  { %v2455_v39 = vsub.f32 1.0, %v2454_v11 }
0x13ee   :  { %v2372_v10 = vmul.f32 %v3134_v63, %v2371_v40  ;;  %3139 = vrcp.f32 %v2410_v57  ;;  %v2422_v29 = vand.u32 2147483648, %v2410_v57  ;;  %vm2416_vm13 = vweird.f32 %v2410_v57  ;;  %v2497_v40 = vld [vmem:[#allocation3 + $0x50] sm:$0xff] }
0x13ef   :  { %v2456_v18 = vmul.f32 %v3136_v8, %v2455_v39  ;;  %v2420_v56 = vand.u32 2147483647, %v2410_v57 }
0x13f0   :  { %v2373_v7 = vadd.f32 %v3134_v63, %v2372_v10  ;;  %v2423_v19 = vor.u32 1.1754944e-38, %v2422_v29  ;;  %v2493_v10 = vld [vmem:[#allocation3 + $0x10] sm:$0xff] }
0x13f1   :  { %v2457_v49 = vadd.f32 %v3136_v8, %v2456_v18  ;;  %vm2421_vm15 = vcmp.eq.f32.partialorder %v2420_v56, 8.507059e+37 }
0x13f2   :  { %v2377_v44 = vsel %vm2376_vm4, %v3134_v63, %v2373_v7 }
0x13f3   :  { %v2382_v21 = vsel %vm2379_vm5, %v2381_v14, %v2377_v44  ;;  %v2461_v25 = vsel %vm2460_vm9, %v3136_v8, %v2457_v49  ;;  %v2495_v8 = vld [vmem:[#allocation3 + $0x30] sm:$0xff] }
0x13f4   :  { %v3140_v4 = vpop.eup %3139  ;;  %v2466_v12 = vsel %vm2463_vm10, %v2465_v47, %v2461_v25  ;;  %v2385_v46 = vmul.f32 %v2382_v21, %v4263_v26 }
0x13f5   :  { %v2412_v2 = vmul.f32 %v3140_v4, %v2410_v57  ;;  %vm2417_vm12 = vweird.f32 %v3140_v4  ;;  %v2469_v38 = vmul.f32 %v2466_v12, %v4269_v41 }
0x13f6   :  { %vm2418_vm14 = vmor %vm2416_vm13, %vm2417_vm12 }
0x13f7   :  { %v2413_v54 = vsub.f32 1.0, %v2412_v2 }
0x13f9   :  { %v2414_v17 = vmul.f32 %v3140_v4, %v2413_v54 }
0x13fb   :  { %v2415_v55 = vadd.f32 %v3140_v4, %v2414_v17 }
0x13fd   :  { %v2419_v30 = vsel %vm2418_vm14, %v3140_v4, %v2415_v55 }
0x13fe   :  { %v2424_v35 = vsel %vm2421_vm15, %v2423_v19, %v2419_v30 }
0x13ff   :  { %v2427_v26 = vmul.f32 %v2424_v35, %v4258_v5  ;;  %v2501_v5 = vld [vmem:[#allocation3 + $0x90] sm:$0xff] }
0x1400   :  { %2536 = vmatpush.msra.mxu3 %v2501_v5 }
0x1402   :  { %2537 = vmatpush.msra.mxu3 %v2499_v3  ;;  %v2666_v3 = vld [vmem:[#allocation3 + $0x1f8] sm:$0xff] }
0x1403   :  { %2667 = vmatpush.msra.mxu1 %v2666_v3 }
0x1404   :  { %2538 = vmatpush.msra.mxu3 %v2497_v40  ;;  %v2665_v40 = vld [vmem:[#allocation3 + $0x1d8] sm:$0xff] }
0x1405   :  { %2668 = vmatpush.msra.mxu1 %v2665_v40 }
0x1406   :  { %2539 = vmatpush.msra.mxu3 %v2495_v8  ;;  %v2664_v8 = vld [vmem:[#allocation3 + $0x1b8] sm:$0xff] }
0x1407   :  { %2669 = vmatpush.msra.mxu1 %v2664_v8 }
0x1408   :  { %2540 = vmatpush.msra.mxu3 %v2493_v10  ;;  %v2663_v10 = vld [vmem:[#allocation3 + $0x198] sm:$0xff] }
0x1409   :  { %2670 = vmatpush.msra.mxu1 %v2663_v10 }
0x1433   :  { %v2388_v50 = vpop.permute.xlu2 %2387 }
0x1434   :  { %v2390_v31 = vmul.f32 %v2388_v50, %v2382_v21 }
0x1436   :  { %2392 = vrot.lane.b32.xlu1 %v2390_v31, %s3200_s19 }
0x143b   :  { %v2472_v32 = vpop.permute.xlu2 %2471 }
0x143c   :  { %v2474_v24 = vmul.f32 %v2472_v32, %v2466_v12 }
0x143e   :  { %2476 = vrot.lane.b32.xlu1 %v2474_v24, %s3200_s19 }
0x144c   :  { %v2430_v6 = vpop.permute.xlu0 %2429 }
0x144d   :  { %v2432_v45 = vmul.f32 %v2430_v6, %v2424_v35 }
0x144f   :  { %2434 = vrot.lane.b32.xlu0 %v2432_v45, %s3200_s19 }
0x14a8   :  { %v2393_v36 = vpop.permute.xlu1 %2392 }
0x14a9   :  { %v4336_v48 = vadd.f32 %v2393_v36, %v2385_v46 }
0x14ab   :  { %3141 = vtanh.f32 %v4336_v48 }
0x14b0   :  { %v2477_v37 = vpop.permute.xlu1 %2476 }
0x14b1   :  { %v3142_v58 = vpop.eup %3141  ;;  %v4340_v59 = vadd.f32 %v2477_v37, %v2469_v38 }
0x14b2   :  { %2398 = vrot.lane.b32.xlu2 %v3142_v58, %s3203_s23 }
0x14b3   :  { %3143 = vtanh.f32 %v4340_v59 }
0x14b9   :  { %v3144_v51 = vpop.eup %3143 }
0x14ba   :  { %2482 = vrot.lane.b32.xlu2 %v3144_v51, %s3203_s23 }
0x14c1   :  { %v2435_v23 = vpop.permute.xlu0 %2434 }
0x14c2   :  { %v4346_v60 = vadd.f32 %v2435_v23, %v2427_v26 }
0x14c4   :  { %3145 = vtanh.f32 %v4346_v60 }
0x14ca   :  { %v3146_v42 = vpop.eup %3145 }
0x14cb   :  { %2440 = vrot.lane.b32.xlu0 %v3146_v42, %s3203_s23 }
0x150c   :  { %v2399_v41 = vpop.permute.xlu2 %2398 }
0x150d   :  { %v2401_v33 = vmul.f32 %v2399_v41, %v2382_v21 }
0x150f   :  { %2403 = vrot.lane.b32.xlu1 %v2401_v33, %s3203_s23 }
0x1514   :  { %v2483_v11 = vpop.permute.xlu2 %2482 }
0x1515   :  { %v4356_v0 = vmul.f32 %v2483_v11, %v2466_v12  ;;  %v2661_v11 = vld [vmem:[#allocation3 + $0x158] sm:$0xff] }
0x153d   :  { %v2441_v62 = vpop.permute.xlu0 %2440 }
0x153e   :  { %v2443_v63 = vmul.f32 %v2441_v62, %v2424_v35 }
0x1540   :  { %2445 = vrot.lane.b32.xlu0 %v2443_v63, %s3204_s17 }
0x1581   :  { %v2404_v1 = vpop.permute.xlu1 %2403 }
0x1582   :  { %2406 = vst.msk [vmem:[%s4523_s9] sm:$0xff] %vm435_vm2, %v2404_v1 }
0x15b2   :  { %v2446_v57 = vpop.permute.xlu0 %2445 }
0x15b3   :  { %2448 = vst.msk [vmem:[%s4523_s9] sm:$0xff] %vm675_vm0, %v2446_v57  ;;  %v2660_v57 = vld [vmem:[#allocation3 + $0x138] sm:$0xff] }
0x15b4   :  { %2486 = vst.msk [vmem:[%s4523_s9] sm:$0xff] %vm989_vm11, %v4356_v0 }
0x15bb   :  { %v2492_v7 = vld [vmem:[%s4523_s9] sm:$0xff] }
0x15bc   :  { %2541 = vmatmul.f32.vlgmr.msra.gmra.mxu3 %v2492_v7  ;;  %2561 = vmatmul.f32.vlgmr.msrb.gmra.mxu0 %v2492_v7  ;;  %v2659_v7 = vld [vmem:[#allocation3 + $0x118] sm:$0xff] }
0x1639   :  { %v2562_v39 = vpop.f32.mrf.mxu0 }
0x163a   :  { %v2563_v16 = vadd.f32 %v2562_v39, %v3532_v53  ;;  %v2658_v39 = vld [vmem:[#allocation3 + $0xf8] sm:$0xff] }
0x163c   :  { %3147 = vtanh.f32 %v2563_v16  ;;  %v2894_v50 = vmul.f32 -1.442695, %v2563_v16  ;;  %v2657_v16 = vld [vmem:[#allocation3 + $0xd8] sm:$0xff] }
0x163f   :  { %v2542_v9 = vpop.f32.mrf.mxu3 }
0x1640   :  { %v2543_v44 = vadd.f32 %v2542_v9, %v3426_v43  ;;  %v2656_v9 = vld [vmem:[#allocation3 + $0xb8] sm:$0xff] }
0x1642   :  { %v3148_v18 = vpop.eup %3147  ;;  %3149 = vtanh.f32 %v2543_v44  ;;  %v2893_v4 = vmul.f32 -1.442695, %v2543_v44  ;;  %v2654_v44 = vld [vmem:[#allocation3 + $0x78] sm:$0xff] }
0x1643   :  { %2629 = vrot.lane.b32.xlu2 %v3148_v18, %s3203_s23  ;;  %3151 = vpow2.f32 %v2894_v50  ;;  %v2653_v18 = vld [vmem:[#allocation3 + $0x58] sm:$0xff]  ;;  %v2740_v50 = vld [vmem:[%s4520_s6 + $0x10] sm:$0xff] }
0x1648   :  { %v3150_v14 = vpop.eup %3149 }
0x1649   :  { %2587 = vrot.lane.b32.xlu1 %v3150_v14, %s3203_s23  ;;  %v3152_v21 = vpop.eup %3151  ;;  %v2652_v14 = vld [vmem:[#allocation3 + $0x38] sm:$0xff] }
0x164a   :  { %v2610_v31 = vadd.f32 1.0, %v3152_v21 }
0x164c   :  { %3153 = vrcp.f32 %v2610_v31  ;;  %v2622_v43 = vand.u32 2147483648, %v2610_v31  ;;  %vm2616_vm3 = vweird.f32 %v2610_v31  ;;  %v2620_v12 = vand.u32 2147483647, %v2610_v31 }
0x164d   :  { %3155 = vpow2.f32 %v2893_v4 }
0x164e   :  { %v2623_v54 = vor.u32 1.1754944e-38, %v2622_v43  ;;  %vm2621_vm5 = vcmp.eq.f32.partialorder %v2620_v12, 8.507059e+37 }
0x1652   :  { %v3154_v49 = vpop.eup %3153 }
0x1653   :  { %v2612_v34 = vmul.f32 %v3154_v49, %v2610_v31  ;;  %vm2617_vm1 = vweird.f32 %v3154_v49  ;;  %v3156_v2 = vpop.eup %3155 }
0x1654   :  { %vm2618_vm4 = vmor %vm2616_vm3, %vm2617_vm1  ;;  %v2568_v24 = vadd.f32 1.0, %v3156_v2 }
0x1655   :  { %v2613_v61 = vsub.f32 1.0, %v2612_v34 }
0x1656   :  { %3157 = vrcp.f32 %v2568_v24  ;;  %v2580_v45 = vand.u32 2147483648, %v2568_v24  ;;  %vm2574_vm8 = vweird.f32 %v2568_v24  ;;  %v2578_v46 = vand.u32 2147483647, %v2568_v24 }
0x1657   :  { %v2614_v25 = vmul.f32 %v3154_v49, %v2613_v61 }
0x1658   :  { %v2581_v38 = vor.u32 1.1754944e-38, %v2580_v45  ;;  %vm2579_vm10 = vcmp.eq.f32.partialorder %v2578_v46, 8.507059e+37 }
0x1659   :  { %v2615_v47 = vadd.f32 %v3154_v49, %v2614_v25 }
0x165b   :  { %v2619_v32 = vsel %vm2618_vm4, %v3154_v49, %v2615_v47 }
0x165c   :  { %v4374_v55 = vsel %vm2621_vm5, %v2623_v54, %v2619_v32  ;;  %v3158_v56 = vpop.eup %3157  ;;  %v4442_v32 = vld [vmem:[%s4521_s7] ss:$0 sm:$0xff] }
0x165d   :  { %v2570_v30 = vmul.f32 %v3158_v56, %v2568_v24  ;;  %vm2575_vm6 = vweird.f32 %v3158_v56  ;;  %v2627_v26 = vmul.f32 %v4374_v55, %v4340_v59 }
0x165e   :  { %vm2576_vm9 = vmor %vm2574_vm8, %vm2575_vm6 }
0x165f   :  { %v2571_v19 = vsub.f32 1.0, %v2570_v30 }
0x1661   :  { %v2572_v6 = vmul.f32 %v3158_v56, %v2571_v19 }
0x1663   :  { %v2573_v35 = vadd.f32 %v3158_v56, %v2572_v6 }
0x1665   :  { %v2577_v36 = vsel %vm2576_vm9, %v3158_v56, %v2573_v35 }
0x1666   :  { %v2582_v58 = vsel %vm2579_vm10, %v2581_v38, %v2577_v36 }
0x1667   :  { %v2585_v33 = vmul.f32 %v2582_v58, %v4346_v60  ;;  %v2662_v60 = vld [vmem:[#allocation3 + $0x178] sm:$0xff] }
0x1668   :  { %2671 = vmatpush.msra.mxu1 %v2662_v60 }
0x166a   :  { %2672 = vmatpush.msra.mxu1 %v2661_v11 }
0x166c   :  { %2673 = vmatpush.msra.mxu1 %v2660_v57 }
0x166e   :  { %2674 = vmatpush.msra.mxu1 %v2659_v7 }
0x1670   :  { %2675 = vmatpush.msra.mxu1 %v2658_v39 }
0x1672   :  { %2676 = vmatpush.msra.mxu1 %v2657_v16 }
0x1674   :  { %2677 = vmatpush.msra.mxu1 %v2656_v9 }
0x169d   :  { %v2630_v17 = vpop.permute.xlu2 %2629 }
0x169e   :  { %v2632_v29 = vmul.f32 %v2630_v17, %v4374_v55 }
0x16a0   :  { %2634 = vrot.lane.b32.xlu1 %v2632_v29, %s3200_s19 }
0x16bb   :  { %v2588_v37 = vpop.permute.xlu1 %2587 }
0x16bc   :  { %v2590_v51 = vmul.f32 %v2588_v37, %v2582_v58 }
0x16be   :  { %2592 = vrot.lane.b32.xlu0 %v2590_v51, %s3200_s19 }
0x1712   :  { %v2635_v23 = vpop.permute.xlu1 %2634 }
0x1713   :  { %v4381_v42 = vadd.f32 %v2635_v23, %v2627_v26 }
0x1715   :  { %3159 = vtanh.f32 %v4381_v42 }
0x171b   :  { %v3160_v41 = vpop.eup %3159 }
0x171c   :  { %2640 = vrot.lane.b32.xlu0 %v3160_v41, %s3203_s23 }
0x1730   :  { %v2593_v62 = vpop.permute.xlu0 %2592 }
0x1731   :  { %v4386_v63 = vadd.f32 %v2593_v62, %v2585_v33 }
0x1733   :  { %3161 = vtanh.f32 %v4386_v63 }
0x1739   :  { %v3162_v1 = vpop.eup %3161 }
0x173a   :  { %2598 = vrot.lane.b32.xlu2 %v3162_v1, %s3203_s23 }
0x178e   :  { %v2641_v21 = vpop.permute.xlu0 %2640 }
0x178f   :  { %v2643_v31 = vmul.f32 %v2641_v21, %v4374_v55 }
0x1794   :  { %v2599_v5 = vpop.permute.xlu2 %2598 }
0x1795   :  { %v2601_v59 = vmul.f32 %v2599_v5, %v2582_v58 }
0x1797   :  { %2603 = vrot.lane.b32.xlu1 %v2601_v59, %s3204_s17 }
0x179f   :  { %992 = vrot.lane.b32.xlu1 %v3749_v28, %s3200_s19  ;;  %v2655_v28 = vld [vmem:[#allocation3 + $0x98] sm:$0xff] }
0x17a0   :  { %2678 = vmatpush.msra.mxu1 %v2655_v28 }
0x17a2   :  { %2679 = vmatpush.msra.mxu1 %v2654_v44 }
0x17a4   :  { %2680 = vmatpush.msra.mxu1 %v2653_v18 }
0x17a6   :  { %2681 = vmatpush.msra.mxu1 %v2652_v14 }
0x17a7   :  { %1622 = vrot.lane.b32.xlu1 %v4074_v13, %s3200_s19  ;;  %v2741_v13 = vld [vmem:[%s4520_s6 + $0x18] sm:$0xff] }
0x17a8   :  { %2682 = vmatpush.msra.mxu1 %v4210_v20  ;;  %2782 = vmatpush.msrb.mxu2 %v2741_v13 }
0x17aa   :  { %2783 = vmatpush.msrb.mxu2 %v2740_v50 }
0x17af   :  { %2488 = vrot.lane.b32.xlu1 %v4356_v0, %s3200_s19  ;;  %v2738_v0 = vld [vmem:[%s4520_s6] sm:$0xff] }
0x17b7   :  { %2820 = vrot.lane.b32.xlu1 %v4253_v15, %s3204_s17  ;;  %v2739_v15 = vld [vmem:[%s4520_s6 + $0x8] sm:$0xff] }
0x17b8   :  { %2784 = vmatpush.msrb.mxu2 %v2739_v15 }
0x17ba   :  { %2785 = vmatpush.msrb.mxu2 %v2738_v0 }
0x1809   :  { %v2604_v49 = vpop.permute.xlu1 %2603 }
0x180a   :  { %2606 = vst.msk [vmem:[%s4523_s9] sm:$0xff] %vm675_vm0, %v2604_v49 }
0x180b   :  { %2644 = vst.msk [vmem:[%s4523_s9] sm:$0xff] %vm989_vm11, %v2643_v31 }
0x1811   :  { %v993_v20 = vpop.permute.xlu1 %992 }
0x1812   :  { %995 = vst.msk [vmem:[#allocation2] sm:$0xff] %vm276_vm7, %v993_v20  ;;  %v2650_v34 = vld [vmem:[%s4523_s9] sm:$0xff] }
0x1813   :  { %2683 = vmatmul.f32.vlgmr.msra.gmra.mxu1 %v2650_v34 }
0x1819   :  { %v1623_v4 = vpop.permute.xlu1 %1622  ;;  %v2730_v61 = vld [vmem:[#allocation2] sm:$0xff] }
0x181a   :  { %1625 = vst.msk [vmem:[#allocation2 + $0x10] sm:$0xff] %vm276_vm7, %v1623_v4  ;;  %2896 = vmatmul.msk.f32.vlgmr.msrb.gmra.mxu2 %vm276_vm7, %v2730_v61 }
0x1821   :  { %v2489_v25 = vpop.permute.xlu1 %2488  ;;  %v2732_v26 = vld [vmem:[#allocation2 + $0x10] sm:$0xff] }
0x1822   :  { %2491 = vst.msk [vmem:[#allocation2 + $0x28] sm:$0xff] %vm276_vm7, %v2489_v25 }
0x1829   :  { %v2821_v47 = vpop.permute.xlu1 %2820  ;;  %v2735_v57 = vld [vmem:[#allocation2 + $0x28] sm:$0xff] }
0x182a   :  { %2823 = vst.msk [vmem:[%s4524_s10] sm:$0xff] %vm276_vm7, %v2821_v47 }
0x182b   :  { %2824 = vst.msk [vmem:[%s4524_s10] sm:$0xff] %vm435_vm2, %v4336_v48 }
0x1890   :  { %v2684_v43 = vpop.f32.mrf.mxu1 }
0x1891   :  { %v2685_v2 = vadd.f32 %v2684_v43, %v3532_v53 }
0x1893   :  { %3163 = vtanh.f32 %v2685_v2  ;;  %v2895_v53 = vmul.f32 -1.442695, %v2685_v2 }
0x1895   :  { %3165 = vpow2.f32 %v2895_v53 }
0x1899   :  { %v3164_v12 = vpop.eup %3163 }
0x189a   :  { %2709 = vrot.lane.b32.xlu2 %v3164_v12, %s3203_s23 }
0x189b   :  { %v3166_v48 = vpop.eup %3165 }
0x189c   :  { %v2690_v17 = vadd.f32 1.0, %v3166_v48 }
0x189d   :  { %v2787_v24 = vpop.f32.mrf.mxu2 }
0x189e   :  { %v2788_v54 = vadd.f32 %v4442_v32, %v2787_v24  ;;  %3167 = vrcp.f32 %v2690_v17  ;;  %vm2696_vm12 = vweird.f32 %v2690_v17  ;;  %v2700_v6 = vand.u32 2147483647, %v2690_v17 }
0x18a0   :  { %2811 = vst [vmem:[%s4522_s8] sm:$0xff] %v2788_v54  ;;  %vm2701_vm14 = vcmp.eq.f32.partialorder %v2700_v6, 8.507059e+37 }
0x18a2   :  { %1307 = vrot.lane.b32.xlu2 %v3841_v52, %s3200_s19  ;;  %v2702_v52 = vand.u32 2147483648, %v2690_v17 }
0x18a4   :  { %v3168_v55 = vpop.eup %3167  ;;  %v2703_v35 = vor.u32 1.1754944e-38, %v2702_v52 }
0x18a5   :  { %v2692_v29 = vmul.f32 %v3168_v55, %v2690_v17  ;;  %vm2697_vm2 = vweird.f32 %v3168_v55 }
0x18a6   :  { %vm2698_vm13 = vmor %vm2696_vm12, %vm2697_vm2 }
0x18a7   :  { %v2693_v56 = vsub.f32 1.0, %v2692_v29 }
0x18a9   :  { %v2694_v30 = vmul.f32 %v3168_v55, %v2693_v56 }
0x18aa   :  { %1937 = vrot.lane.b32.xlu2 %v4218_v22, %s3200_s19 }
0x18ab   :  { %v2695_v19 = vadd.f32 %v3168_v55, %v2694_v30 }
0x18ad   :  { %v2699_v22 = vsel %vm2698_vm13, %v3168_v55, %v2695_v19 }
0x18ae   :  { %v2704_v46 = vsel %vm2701_vm14, %v2703_v35, %v2699_v22 }
0x18af   :  { %v2707_v33 = vmul.f32 %v2704_v46, %v4381_v42 }
0x18b2   :  { %2646 = vrot.lane.b32.xlu2 %v2643_v31, %s3200_s19 }
0x18ba   :  { %2826 = vrot.lane.b32.xlu2 %v4386_v63, %s3200_s19 }
0x18f4   :  { %v2710_v45 = vpop.permute.xlu2 %2709 }
0x18f5   :  { %v2712_v36 = vmul.f32 %v2710_v45, %v2704_v46 }
0x18f7   :  { %2714 = vrot.lane.b32.xlu0 %v2712_v36, %s3200_s19 }
0x18fc   :  { %v1308_v38 = vpop.permute.xlu2 %1307 }
0x18fd   :  { %1310 = vst.msk [vmem:[#allocation2 + $0x8] sm:$0xff] %vm276_vm7, %v1308_v38 }
0x1904   :  { %v1938_v37 = vpop.permute.xlu2 %1937  ;;  %v2731_v58 = vld [vmem:[#allocation2 + $0x8] sm:$0xff] }
0x1905   :  { %1940 = vst.msk [vmem:[#allocation2 + $0x18] sm:$0xff] %vm276_vm7, %v1938_v37  ;;  %2897 = vmatmul.msk.f32.gmra.mxu2 %vm276_vm7, %v2731_v58 }
0x190c   :  { %v2647_v51 = vpop.permute.xlu2 %2646  ;;  %v2733_v41 = vld [vmem:[#allocation2 + $0x18] sm:$0xff] }
0x190d   :  { %2649 = vst.msk [vmem:[#allocation2 + $0x30] sm:$0xff] %vm276_vm7, %v2647_v51  ;;  %2898 = vmatmul.msk.f32.gmra.mxu2 %vm276_vm7, %v2732_v26 }
0x1914   :  { %v2827_v23 = vpop.permute.xlu2 %2826  ;;  %v2736_v7 = vld [vmem:[#allocation2 + $0x30] sm:$0xff] }
0x1915   :  { %2829 = vst.msk [vmem:[%s4524_s10] sm:$0xff] %vm675_vm0, %v2827_v23  ;;  %2899 = vmatmul.msk.f32.gmra.mxu2 %vm276_vm7, %v2733_v41 }
0x1969   :  { %v2715_v62 = vpop.permute.xlu0 %2714 }
0x196a   :  { %v2717_v63 = vadd.f32 %v2715_v62, %v2707_v33 }
0x196c   :  { %3169 = vtanh.f32 %v2717_v63 }
0x1972   :  { %v3170_v1 = vpop.eup %3169 }
0x1973   :  { %2720 = vrot.lane.b32.xlu0 %v3170_v1, %s3203_s23 }
0x197b   :  { %2252 = vrot.lane.b32.xlu0 %v4310_v27, %s3200_s19 }
0x1988   :  { %v2790_v5 = vpop.f32.mrf.mxu2 }
0x1989   :  { %v2791_v59 = vadd.f32 %v4442_v32, %v2790_v5 }
0x198b   :  { %2812 = vst [vmem:[%s4522_s8 + $0x8] sm:$0xff] %v2791_v59 }
0x1990   :  { %v2793_v3 = vpop.f32.mrf.mxu2 }
0x1991   :  { %v2794_v40 = vadd.f32 %v4442_v32, %v2793_v3 }
0x1993   :  { %2813 = vst [vmem:[%s4522_s8 + $0x10] sm:$0xff] %v2794_v40 }
0x1998   :  { %v2796_v42 = vpop.f32.mrf.mxu2 }
0x1999   :  { %v2797_v8 = vadd.f32 %v4442_v32, %v2796_v42 }
0x199b   :  { %2814 = vst [vmem:[%s4522_s8 + $0x18] sm:$0xff] %v2797_v8 }
0x19e5   :  { %v2721_v27 = vpop.permute.xlu0 %2720 }
0x19e6   :  { %v2723_v10 = vmul.f32 %v2721_v27, %v2704_v46 }
0x19e8   :  { %2724 = vst.msk [vmem:[%s4523_s9] sm:$0xff] %vm989_vm11, %v2723_v10  ;;  %2726 = vrot.lane.b32.xlu0 %v2723_v10, %s3200_s19 }
0x19ed   :  { %v2253_v60 = vpop.permute.xlu0 %2252 }
0x19ee   :  { %2255 = vst.msk [vmem:[#allocation2 + $0x20] sm:$0xff] %vm276_vm7, %v2253_v60 }
0x19f0   :  { %2831 = vrot.lane.b32.xlu0 %v2717_v63, %s3203_s23 }
0x19f5   :  { %v2734_v11 = vld [vmem:[#allocation2 + $0x20] sm:$0xff] }
0x19f6   :  { %2900 = vmatmul.msk.f32.gmra.mxu2 %vm276_vm7, %v2734_v11 }
0x19fe   :  { %2901 = vmatmul.msk.f32.gmra.mxu2 %vm276_vm7, %v2735_v57 }
0x1a06   :  { %2902 = vmatmul.msk.f32.gmra.mxu2 %vm276_vm7, %v2736_v7 }
0x1a5a   :  { %v2727_v39 = vpop.permute.xlu0 %2726 }
0x1a5b   :  { %2729 = vst.msk [vmem:[#allocation2 + $0x38] sm:$0xff] %vm276_vm7, %v2727_v39 }
0x1a62   :  { %v2832_v16 = vpop.permute.xlu0 %2831  ;;  %v2737_v9 = vld [vmem:[#allocation2 + $0x38] sm:$0xff] }
0x1a63   :  { %2834 = vst.msk [vmem:[%s4524_s10] sm:$0xff] %vm989_vm11, %v2832_v16  ;;  %2903 = vmatmul.msk.f32.gmra.mxu2 %vm276_vm7, %v2737_v9 }
0x1a79   :  { %v2799_v28 = vpop.f32.mrf.mxu2 }
0x1a7a   :  { %v2800_v44 = vadd.f32 %v4442_v32, %v2799_v28 }
0x1a7c   :  { %2815 = vst [vmem:[%s4522_s8 + $0x20] sm:$0xff] %v2800_v44 }
0x1a81   :  { %v2802_v18 = vpop.f32.mrf.mxu2 }
0x1a82   :  { %v2803_v14 = vadd.f32 %v4442_v32, %v2802_v18 }
0x1a84   :  { %2816 = vst [vmem:[%s4522_s8 + $0x28] sm:$0xff] %v2803_v14 }
0x1a89   :  { %v2805_v13 = vpop.f32.mrf.mxu2 }
0x1a8a   :  { %v2806_v50 = vadd.f32 %v4442_v32, %v2805_v13 }
0x1a8c   :  { %2817 = vst [vmem:[%s4522_s8 + $0x30] sm:$0xff] %v2806_v50 }
0x1ae6   :  { %v2808_v15 = vpop.f32.mrf.mxu2 }
0x1ae7   :  { %v2809_v0 = vadd.f32 %v4442_v32, %v2808_v15 }
0x1ae9   :  { %2818 = vst [vmem:[%s4522_s8 + $0x38] sm:$0xff] %v2809_v0 }
0x1aea   :  { %2847 = vsyncpa [#allocation4], 1 }

</bundles_post_ra>
